<compile_context>
chip_gen: v5e
topology: v5e:2x2
jax: 0.10.0
libtpu: 0.0.40
codegen_flags: <defaults>
</compile_context>

<pallas_src>
import numpy as np
import jax
import jax.numpy as jnp
from jax.experimental import pallas as pl
from jax.experimental.pallas import tpu as pltpu


def _round_up(x, m):
    return ((x + m - 1) // m) * m


# ---------------------------------------------------------------------------
# Pallas kernel factory: one full GRU recurrence per invocation / grid step.
# ---------------------------------------------------------------------------
def _make_gru_kernel(T, Bp, Hp, Pp, emit_seq):
    """Kernel refs (per grid step):
         x_ref   : (T, Bp, Pp)   padded, time-major inputs
         h0_ref  : (Bp, Hp)      initial hidden state (shared across grid)
         wih_ref : (Pp, 3*Hp)    input weights, gate tiles [r|z|n], each Hp wide
         whh_ref : (Hp, 3*Hp)    hidden weights, same gate-tile layout
         b_ref   : (8, 3*Hp)     row0 = [b_ir+b_hr | b_iz+b_hz | b_in]
                                 row1 = [0 | 0 | b_hn]   (stays inside r*(...))
         out_ref : (T, Bp, Hp) if emit_seq else (Bp, Hp)
         gi_scr  : (T, Bp, 3*Hp) VMEM scratch for the hoisted input projection
    """
    H3 = 3 * Hp

    def kernel(x_ref, h0_ref, wih_ref, whh_ref, b_ref, out_ref, gi_scr):
        # Hoisted input projection: one MXU dot covers all gates, all T steps.
        # (T, 8, 128) -> (T*8, 128) merge does not cross an (8,128) tile.
        x = x_ref[...].reshape(T * Bp, Pp)
        gi = jnp.dot(x, wih_ref[...], preferred_element_type=jnp.float32)
        gi_scr[...] = (gi + b_ref[0:1, :]).reshape(T, Bp, H3)

        whh = whh_ref[...]        # constant RHS for every sequential step
        bhn = b_ref[1:2, :]       # nonzero only in the n-gate lane tile

        def step(t, h):
            # Single (Bp,Hp)@(Hp,3Hp) dot per step; gate slices at 128-lane
            # boundaries are unmasked.
            gh = jnp.dot(h, whh, preferred_element_type=jnp.float32) + bhn
            gi_t = gi_scr[t]                                    # (Bp, 3Hp)
            r = jax.nn.sigmoid(gi_t[:, 0 * Hp:1 * Hp] + gh[:, 0 * Hp:1 * Hp])
            zg = jax.nn.sigmoid(gi_t[:, 1 * Hp:2 * Hp] + gh[:, 1 * Hp:2 * Hp])
            n = jnp.tanh(gi_t[:, 2 * Hp:3 * Hp] + r * gh[:, 2 * Hp:3 * Hp])
            h_new = (1.0 - zg) * n + zg * h
            if emit_seq:
                out_ref[t] = h_new                              # (8,128) store
            return h_new

        # T is small (10): full unroll is the right choice.
        # TODO(synk): switch to bounded unroll (4-8) if T grows beyond ~32.
        h_last = jax.lax.fori_loop(0, T, step, h0_ref[...], unroll=True)
        if not emit_seq:
            out_ref[...] = h_last

    return kernel


# ---------------------------------------------------------------------------
# pallas_call wrappers.
# ---------------------------------------------------------------------------
def _gru_encoder_last(x_pad, h0_pad, wih, whh, bias):
    """Single GRU, returns only the final hidden state (Bp, Hp)."""
    T, Bp, Pp = x_pad.shape
    Hp = h0_pad.shape[-1]
    vmem = pl.BlockSpec(memory_space=pltpu.MemorySpace.VMEM)
    return pl.pallas_call(
        _make_gru_kernel(T, Bp, Hp, Pp, emit_seq=False),
        out_shape=jax.ShapeDtypeStruct((Bp, Hp), jnp.float32),
        in_specs=[vmem] * 5,
        out_specs=vmem,
        scratch_shapes=[pltpu.VMEM((T, Bp, 3 * Hp), jnp.float32)],
    )(x_pad, h0_pad, wih, whh, bias)


def _gru_decoder_fused(x_all, h0_pad, wih_all, whh_all, bias_all):
    """All p decoder GRUs in one call. Returns hseq (p, T, Bp, Hp)."""
    p, T, Bp, Pp = x_all.shape
    Hp = h0_pad.shape[-1]
    return pl.pallas_call(
        _make_gru_kernel(T, Bp, Hp, Pp, emit_seq=True),
        out_shape=jax.ShapeDtypeStruct((p, T, Bp, Hp), jnp.float32),
        grid=(p,),
        in_specs=[
            pl.BlockSpec((None, T, Bp, Pp), lambda i: (i, 0, 0, 0)),   # x
            pl.BlockSpec((Bp, Hp), lambda i: (0, 0)),                  # shared z
            pl.BlockSpec((None, Pp, 3 * Hp), lambda i: (i, 0, 0)),     # W_ih
            pl.BlockSpec((None, Hp, 3 * Hp), lambda i: (i, 0, 0)),     # W_hh
            pl.BlockSpec((None, 8, 3 * Hp), lambda i: (i, 0, 0)),      # bias
        ],
        out_specs=pl.BlockSpec((None, T, Bp, Hp), lambda i: (i, 0, 0, 0)),
        scratch_shapes=[pltpu.VMEM((T, Bp, 3 * Hp), jnp.float32)],
        compiler_params=pltpu.CompilerParams(
            dimension_semantics=("parallel",)),   # megacore sharding on v7x
    )(x_all, h0_pad, wih_all, whh_all, bias_all)


# ---------------------------------------------------------------------------
# Weight / input packing (trace-time, fused by XLA under jit).
# ---------------------------------------------------------------------------
def _pack_gru_weights(gp, H, Hp, Pp):
    """Pack PyTorch-style GRU params into gate-tiled slabs + bias slab."""
    f32 = jnp.float32
    w_ih_t = gp["w_ih_t"].astype(f32)              # (P, 3H), gate order [r|z|n]
    w_hh_t = gp["w_hh_t"].astype(f32)              # (H, 3H)
    b_ih = gp["b_ih"].reshape(-1).astype(f32)      # (3H,)
    b_hh = gp["b_hh"].reshape(-1).astype(f32)
    P = w_ih_t.shape[0]

    def pad_slab(w, rows, rp):
        out = jnp.zeros((rp, 3 * Hp), f32)
        for g in range(3):
            out = out.at[:rows, g * Hp:g * Hp + H].set(w[:, g * H:(g + 1) * H])
        return out

    wih = pad_slab(w_ih_t, P, Pp)
    whh = pad_slab(w_hh_t, H, Hp)
    bias = jnp.zeros((8, 3 * Hp), f32)
    bias = bias.at[0, 0 * Hp:0 * Hp + H].set(b_ih[0:H] + b_hh[0:H])          # r
    bias = bias.at[0, 1 * Hp:1 * Hp + H].set(b_ih[H:2 * H] + b_hh[H:2 * H])  # z
    bias = bias.at[0, 2 * Hp:2 * Hp + H].set(b_ih[2 * H:3 * H])              # b_in
    bias = bias.at[1, 2 * Hp:2 * Hp + H].set(b_hh[2 * H:3 * H])              # b_hn
    return wih, whh, bias


def _pad_inputs(x_tbp, Bp, Pp):
    T, B, P = x_tbp.shape
    return jnp.zeros((T, Bp, Pp), jnp.float32).at[:, :B, :P].set(
        x_tbp.astype(jnp.float32))


# ---------------------------------------------------------------------------
# CRVAE forward, mode='train' (phase 0; phase 1 train path is identical).
# ---------------------------------------------------------------------------
def make_crvae_forward(connection, hidden):
    """connection handled statically (host-side np.where), whole forward jitted."""
    conn = np.asarray(connection)
    p = conn.shape[1]
    idx_per_net = [np.where(conn[:, i] != 0)[0] for i in range(p)]
    H = hidden
    Hp = _round_up(H, 128)

    @jax.jit
    def forward(X, eps, params):
        B, S, num_series = X.shape
        Bp = _round_up(max(B, 1), 8)
        Pp = _round_up(num_series, 128)     # covers every net's input width
        f32 = jnp.float32

        # zero-prepend along time (phase 0/1 train path)
        Xz = jnp.concatenate([jnp.zeros((B, 1, num_series), X.dtype), X], axis=1)

        # ---- Encoder: gru_left over X[:, 1:11, :], zero initial hidden. ----
        enc_in = jnp.transpose(Xz[:, 1:11, :], (1, 0, 2))            # (10,B,ns)
        wih_l, whh_l, bias_l = _pack_gru_weights(params["gru_left"], H, Hp, Pp)
        h0 = jnp.zeros((Bp, Hp), f32)
        h_last = _gru_encoder_last(_pad_inputs(enc_in, Bp, Pp), h0,
                                   wih_l, whh_l, bias_l)[:B, :H]     # (B, H)
        mu = h_last @ params["fc_mu_w"] + params["fc_mu_b"]
        log_var = h_last @ params["fc_std_w"] + params["fc_std_b"]
        sigma = jnp.exp(0.5 * log_var)
        z = mu + sigma * eps                                         # (B, H)

        # ---- Decoder: all p GRU networks fused into ONE pallas_call. ----
        xs, wihs, whhs, biases = [], [], [], []
        for i in range(p):
            Xs = Xz[:, :, idx_per_net[i]]
            Xc = jnp.concatenate([Xs[:, 0:1, :], Xs[:, 11:-1, :]], axis=1)
            xs.append(_pad_inputs(jnp.transpose(Xc, (1, 0, 2)), Bp, Pp))
            wih_i, whh_i, bias_i = _pack_gru_weights(params["networks"][i],
                                                     H, Hp, Pp)
            wihs.append(wih_i)
            whhs.append(whh_i)
            biases.append(bias_i)
        x_all = jnp.stack(xs)                                        # (p,T,Bp,Pp)
        wih_all = jnp.stack(wihs)                                    # (p,Pp,3Hp)
        whh_all = jnp.stack(whhs)                                    # (p,Hp,3Hp)
        bias_all = jnp.stack(biases)                                 # (p,8,3Hp)
        z_pad = jnp.zeros((Bp, Hp), f32).at[:B, :H].set(z)

        hseq = _gru_decoder_fused(x_all, z_pad, wih_all, whh_all, bias_all)
        hseq = hseq[:, :, :B, :H]                                    # (p,T,B,H)

        # Final Linear(hidden, 1) for all nets in one batched einsum (kept out
        # of the kernel: lane width 1).
        w_lin = jnp.stack([n["w_lin_t"] for n in params["networks"]])  # (p,H,1)
        b_lin = jnp.stack([n["b_lin"] for n in params["networks"]])    # (p,1,1)
        y = jnp.einsum("ptbh,pho->ptbo", hseq, w_lin) + b_lin[:, None, :, :]
        pred = [jnp.transpose(y[i], (1, 0, 2)) for i in range(p)]      # (B,T,1)
        return pred, log_var, mu
        # TODO(synk): mode='test' autoregressive rollout (phases 0/1) not implemented.

    return forward


# ---------------------------------------------------------------------------
# Pure-JAX reference (lax.scan) for correctness checking.
# ---------------------------------------------------------------------------
def _gru_scan_ref(x_tbp, h0, w_ih_t, w_hh_t, b_ih, b_hh):
    H = h0.shape[-1]

    def step(h, x_t):
        gi = x_t @ w_ih_t + b_ih
        gh = h @ w_hh_t + b_hh
        r = jax.nn.sigmoid(gi[:, :H] + gh[:, :H])
        zg = jax.nn.sigmoid(gi[:, H:2 * H] + gh[:, H:2 * H])
        n = jnp.tanh(gi[:, 2 * H:] + r * gh[:, 2 * H:])
        h_new = (1.0 - zg) * n + zg * h
        return h_new, h_new

    h_final, h_seq = jax.lax.scan(step, h0, x_tbp)
    return h_seq, h_final


def _crvae_forward_ref(X, eps, connection, params):
    B, S, p = X.shape
    H = params["fc_mu_w"].shape[0]
    Xz = jnp.concatenate([jnp.zeros((B, 1, p), X.dtype), X], axis=1)
    enc_in = jnp.transpose(Xz[:, 1:11, :], (1, 0, 2))
    h0 = jnp.zeros((B, H), jnp.float32)
    left = params["gru_left"]
    _, h_t = _gru_scan_ref(enc_in, h0, left["w_ih_t"], left["w_hh_t"],
                           left["b_ih"], left["b_hh"])
    mu = h_t @ params["fc_mu_w"] + params["fc_mu_b"]
    log_var = h_t @ params["fc_std_w"] + params["fc_std_b"]
    sigma = jnp.exp(0.5 * log_var)
    z = mu + sigma * eps

    conn = np.asarray(connection)
    preds = []
    for i in range(p):
        idx = np.where(conn[:, i] != 0)[0]
        net = params["networks"][i]
        Xs = Xz[:, :, idx]
        Xc = jnp.concatenate([Xs[:, 0:1, :], Xs[:, 11:-1, :]], axis=1)
        x_tbp = jnp.transpose(Xc, (1, 0, 2))
        h_seq, _ = _gru_scan_ref(x_tbp, z, net["w_ih_t"], net["w_hh_t"],
                                 net["b_ih"], net["b_hh"])
        y = jnp.einsum("tbh,ho->tbo", h_seq, net["w_lin_t"]) + net["b_lin"]
        preds.append(jnp.transpose(y, (1, 0, 2)))
    return preds, log_var, mu


if __name__ == "__main__":
    # Small shapes consistent with the module (Lorenz96-style multivariate series)
    batch = 2
    seq = 20           # needs seq >= 12 so the X[:, 11:-1, :] slice is non-empty
    num_series = 10    # p
    hidden = 32

    key = jax.random.PRNGKey(0)
    keys = jax.random.split(key, num_series + 7)
    bound = 1.0 / np.sqrt(hidden)

    def uniform(k, shape):
        return jax.random.uniform(k, shape, jnp.float32, -bound, bound)

    def make_gru_params(k, p_in):
        ks = jax.random.split(k, 4)
        return {
            "w_ih_t": uniform(ks[0], (p_in, 3 * hidden)),   # stored transposed
            "w_hh_t": uniform(ks[1], (hidden, 3 * hidden)),
            "b_ih": uniform(ks[2], (1, 3 * hidden)),
            "b_hh": uniform(ks[3], (1, 3 * hidden)),
        }

    connection = np.ones((num_series, num_series), dtype=np.float32)

    params = {
        "gru_left": make_gru_params(keys[0], num_series),
        "fc_mu_w": uniform(keys[1], (hidden, hidden)),
        "fc_mu_b": uniform(keys[2], (hidden,)),
        "fc_std_w": uniform(keys[3], (hidden, hidden)),
        "fc_std_b": uniform(keys[4], (hidden,)),
        "networks": [],
    }
    for i in range(num_series):
        p_in = int(connection[:, i].sum())
        kk = jax.random.split(keys[5 + i], 3)
        net = make_gru_params(kk[0], p_in)
        net["w_lin_t"] = uniform(kk[1], (hidden, 1))
        net["b_lin"] = uniform(kk[2], (1, 1))
        params["networks"].append(net)

    X = jax.random.normal(keys[num_series + 5], (batch, seq, num_series), jnp.float32)
    eps = jax.random.normal(keys[num_series + 6], (batch, hidden), jnp.float32)

    crvae_forward_train = make_crvae_forward(connection, hidden)
    pred, log_var, mu = crvae_forward_train(X, eps, params)
    pred = [jax.block_until_ready(pi) for pi in pred]
    log_var = jax.block_until_ready(log_var)
    mu = jax.block_until_ready(mu)

    # Correctness check against the pure-JAX reference.
    pred_ref, log_var_ref, mu_ref = _crvae_forward_ref(X, eps, connection, params)

    T_out = 1 + (seq + 1 - 1 - 11)     # = 10 decoded steps per series
    assert len(pred) == num_series
    for p_out, p_ref in zip(pred, pred_ref):
        assert p_out.shape == (batch, T_out, 1)
        np.testing.assert_allclose(np.asarray(p_out), np.asarray(p_ref),
                                   rtol=1e-2, atol=1e-3)
    np.testing.assert_allclose(np.asarray(mu), np.asarray(mu_ref),
                               rtol=1e-2, atol=1e-3)
    np.testing.assert_allclose(np.asarray(log_var), np.asarray(log_var_ref),
                               rtol=1e-2, atol=1e-3)

    print("KERNEL_OK")
</pallas_src>

<mosaic_0001>
module attributes {stable_mosaic.version = 11 : i64} {
  func.func @kernel(%arg0: memref<10x8x128xf32, #tpu.memory_space<vmem>>, %arg1: memref<8x128xf32, #tpu.memory_space<vmem>>, %arg2: memref<128x384xf32, #tpu.memory_space<vmem>>, %arg3: memref<128x384xf32, #tpu.memory_space<vmem>>, %arg4: memref<8x384xf32, #tpu.memory_space<vmem>>, %arg5: memref<8x128xf32, #tpu.memory_space<vmem>>, %arg6: memref<10x8x384xf32, #tpu.memory_space<vmem>>) attributes {dimension_semantics = [], scalar_prefetch = 0 : i64, scratch_operands = 1 : i64, tpu.core_type = #tpu.core_type<tc>} {
    %c0 = arith.constant 0 : index
    %c0_0 = arith.constant 0 : index
    %c0_1 = arith.constant 0 : index
    %0 = vector.load %arg0[%c0, %c0_0, %c0_1] : memref<10x8x128xf32, #tpu.memory_space<vmem>>, vector<10x8x128xf32>
    %1 = vector.shape_cast %0 : vector<10x8x128xf32> to vector<80x128xf32>
    %c0_2 = arith.constant 0 : index
    %c0_3 = arith.constant 0 : index
    %2 = vector.load %arg2[%c0_2, %c0_3] : memref<128x384xf32, #tpu.memory_space<vmem>>, vector<128x384xf32>
    %cst = arith.constant dense<0.000000e+00> : vector<80x384xf32>
    %3 = tpu.matmul %1, %2, %cst {dimension_numbers = #tpu.dot_dimension_numbers<[1], [0], [0], [1], [0, 0, 1, 1], [], []>} : vector<80x128xf32>, vector<128x384xf32>, vector<80x384xf32> -> vector<80x384xf32>
    %c0_4 = arith.constant 0 : index
    %c0_5 = arith.constant 0 : index
    %4 = vector.load %arg4[%c0_4, %c0_5] : memref<8x384xf32, #tpu.memory_space<vmem>>, vector<1x384xf32>
    %5 = vector.broadcast %4 : vector<1x384xf32> to vector<80x384xf32>
    %6 = arith.addf %3, %5 : vector<80x384xf32>
    %7 = vector.shape_cast %6 : vector<80x384xf32> to vector<10x8x384xf32>
    %c0_6 = arith.constant 0 : index
    %c0_7 = arith.constant 0 : index
    %c0_8 = arith.constant 0 : index
    %8 = vector.load %arg6[%c0_6, %c0_7, %c0_8] : memref<10x8x384xf32, #tpu.memory_space<vmem>>, vector<10x8x384xf32>
    tpu.vector_store %arg6[%c0_6, %c0_7, %c0_8], %7 {strides = array<i32>} : memref<10x8x384xf32, #tpu.memory_space<vmem>>, vector<10x8x384xf32>,
    %c0_9 = arith.constant 0 : index
    %c0_10 = arith.constant 0 : index
    %9 = vector.load %arg3[%c0_9, %c0_10] : memref<128x384xf32, #tpu.memory_space<vmem>>, vector<128x384xf32>
    %c1 = arith.constant 1 : index
    %c0_11 = arith.constant 0 : index
    %10 = vector.load %arg4[%c1, %c0_11] : memref<8x384xf32, #tpu.memory_space<vmem>>, vector<1x384xf32>
    %c0_12 = arith.constant 0 : index
    %c0_13 = arith.constant 0 : index
    %11 = vector.load %arg1[%c0_12, %c0_13] : memref<8x128xf32, #tpu.memory_space<vmem>>, vector<8x128xf32>
    %c0_i32 = arith.constant 0 : i32
    %cst_14 = arith.constant dense<0.000000e+00> : vector<8x384xf32>
    %12 = tpu.matmul %11, %9, %cst_14 {dimension_numbers = #tpu.dot_dimension_numbers<[1], [0], [0], [1], [0, 0, 1, 1], [], []>} : vector<8x128xf32>, vector<128x384xf32>, vector<8x384xf32> -> vector<8x384xf32>
    %13 = vector.broadcast %10 : vector<1x384xf32> to vector<8x384xf32>
    %14 = arith.addf %12, %13 : vector<8x384xf32>
    %15 = arith.index_cast %c0_i32 : i32 to index
    %c0_15 = arith.constant 0 : index
    %c0_16 = arith.constant 0 : index
    %16 = vector.load %arg6[%15, %c0_15, %c0_16] : memref<10x8x384xf32, #tpu.memory_space<vmem>>, vector<1x8x384xf32>
    %17 = vector.shape_cast %16 : vector<1x8x384xf32> to vector<8x384xf32>
    %18 = vector.extract_strided_slice %17 {offsets = [0, 0], sizes = [8, 128], strides = [1, 1]} : vector<8x384xf32> to vector<8x128xf32>
    %19 = vector.extract_strided_slice %14 {offsets = [0, 0], sizes = [8, 128], strides = [1, 1]} : vector<8x384xf32> to vector<8x128xf32>
    %20 = arith.addf %18, %19 : vector<8x128xf32>
    %21 = arith.negf %20 : vector<8x128xf32>
    %22 = math.exp %21 : vector<8x128xf32>
    %cst_17 = arith.constant 1.000000e+00 : f32
    %23 = vector.broadcast %cst_17 : f32 to vector<8x128xf32>
    %24 = arith.addf %23, %22 : vector<8x128xf32>
    %25 = arith.divf %23, %24 : vector<8x128xf32>
    %26 = vector.extract_strided_slice %17 {offsets = [0, 128], sizes = [8, 128], strides = [1, 1]} : vector<8x384xf32> to vector<8x128xf32>
    %27 = vector.extract_strided_slice %14 {offsets = [0, 128], sizes = [8, 128], strides = [1, 1]} : vector<8x384xf32> to vector<8x128xf32>
    %28 = arith.addf %26, %27 : vector<8x128xf32>
    %29 = arith.negf %28 : vector<8x128xf32>
    %30 = math.exp %29 : vector<8x128xf32>
    %cst_18 = arith.constant 1.000000e+00 : f32
    %31 = vector.broadcast %cst_18 : f32 to vector<8x128xf32>
    %32 = arith.addf %31, %30 : vector<8x128xf32>
    %33 = arith.divf %31, %32 : vector<8x128xf32>
    %34 = vector.extract_strided_slice %17 {offsets = [0, 256], sizes = [8, 128], strides = [1, 1]} : vector<8x384xf32> to vector<8x128xf32>
    %35 = vector.extract_strided_slice %14 {offsets = [0, 256], sizes = [8, 128], strides = [1, 1]} : vector<8x384xf32> to vector<8x128xf32>
    %36 = arith.mulf %25, %35 : vector<8x128xf32>
    %37 = arith.addf %34, %36 : vector<8x128xf32>
    %38 = math.tanh %37 : vector<8x128xf32>
    %cst_19 = arith.constant 1.000000e+00 : f32
    %39 = vector.broadcast %cst_19 : f32 to vector<8x128xf32>
    %40 = arith.subf %39, %33 : vector<8x128xf32>
    %41 = arith.mulf %40, %38 : vector<8x128xf32>
    %42 = arith.mulf %33, %11 : vector<8x128xf32>
    %43 = arith.addf %41, %42 : vector<8x128xf32>
    %c1_i32 = arith.constant 1 : i32
    %cst_20 = arith.constant dense<0.000000e+00> : vector<8x384xf32>
    %44 = tpu.matmul %43, %9, %cst_20 {dimension_numbers = #tpu.dot_dimension_numbers<[1], [0], [0], [1], [0, 0, 1, 1], [], []>} : vector<8x128xf32>, vector<128x384xf32>, vector<8x384xf32> -> vector<8x384xf32>
    %45 = vector.broadcast %10 : vector<1x384xf32> to vector<8x384xf32>
    %46 = arith.addf %44, %45 : vector<8x384xf32>
    %47 = arith.index_cast %c1_i32 : i32 to index
    %c0_21 = arith.constant 0 : index
    %c0_22 = arith.constant 0 : index
    %48 = vector.load %arg6[%47, %c0_21, %c0_22] : memref<10x8x384xf32, #tpu.memory_space<vmem>>, vector<1x8x384xf32>
    %49 = vector.shape_cast %48 : vector<1x8x384xf32> to vector<8x384xf32>
    %50 = vector.extract_strided_slice %49 {offsets = [0, 0], sizes = [8, 128], strides = [1, 1]} : vector<8x384xf32> to vector<8x128xf32>
    %51 = vector.extract_strided_slice %46 {offsets = [0, 0], sizes = [8, 128], strides = [1, 1]} : vector<8x384xf32> to vector<8x128xf32>
    %52 = arith.addf %50, %51 : vector<8x128xf32>
    %53 = arith.negf %52 : vector<8x128xf32>
    %54 = math.exp %53 : vector<8x128xf32>
    %cst_23 = arith.constant 1.000000e+00 : f32
    %55 = vector.broadcast %cst_23 : f32 to vector<8x128xf32>
    %56 = arith.addf %55, %54 : vector<8x128xf32>
    %57 = arith.divf %55, %56 : vector<8x128xf32>
    %58 = vector.extract_strided_slice %49 {offsets = [0, 128], sizes = [8, 128], strides = [1, 1]} : vector<8x384xf32> to vector<8x128xf32>
    %59 = vector.extract_strided_slice %46 {offsets = [0, 128], sizes = [8, 128], strides = [1, 1]} : vector<8x384xf32> to vector<8x128xf32>
    %60 = arith.addf %58, %59 : vector<8x128xf32>
    %61 = arith.negf %60 : vector<8x128xf32>
    %62 = math.exp %61 : vector<8x128xf32>
    %cst_24 = arith.constant 1.000000e+00 : f32
    %63 = vector.broadcast %cst_24 : f32 to vector<8x128xf32>
    %64 = arith.addf %63, %62 : vector<8x128xf32>
    %65 = arith.divf %63, %64 : vector<8x128xf32>
    %66 = vector.extract_strided_slice %49 {offsets = [0, 256], sizes = [8, 128], strides = [1, 1]} : vector<8x384xf32> to vector<8x128xf32>
    %67 = vector.extract_strided_slice %46 {offsets = [0, 256], sizes = [8, 128], strides = [1, 1]} : vector<8x384xf32> to vector<8x128xf32>
    %68 = arith.mulf %57, %67 : vector<8x128xf32>
    %69 = arith.addf %66, %68 : vector<8x128xf32>
    %70 = math.tanh %69 : vector<8x128xf32>
    %cst_25 = arith.constant 1.000000e+00 : f32
    %71 = vector.broadcast %cst_25 : f32 to vector<8x128xf32>
    %72 = arith.subf %71, %65 : vector<8x128xf32>
    %73 = arith.mulf %72, %70 : vector<8x128xf32>
    %74 = arith.mulf %65, %43 : vector<8x128xf32>
    %75 = arith.addf %73, %74 : vector<8x128xf32>
    %c2_i32 = arith.constant 2 : i32
    %cst_26 = arith.constant dense<0.000000e+00> : vector<8x384xf32>
    %76 = tpu.matmul %75, %9, %cst_26 {dimension_numbers = #tpu.dot_dimension_numbers<[1], [0], [0], [1], [0, 0, 1, 1], [], []>} : vector<8x128xf32>, vector<128x384xf32>, vector<8x384xf32> -> vector<8x384xf32>
    %77 = vector.broadcast %10 : vector<1x384xf32> to vector<8x384xf32>
    %78 = arith.addf %76, %77 : vector<8x384xf32>
    %79 = arith.index_cast %c2_i32 : i32 to index
    %c0_27 = arith.constant 0 : index
    %c0_28 = arith.constant 0 : index
    %80 = vector.load %arg6[%79, %c0_27, %c0_28] : memref<10x8x384xf32, #tpu.memory_space<vmem>>, vector<1x8x384xf32>
    %81 = vector.shape_cast %80 : vector<1x8x384xf32> to vector<8x384xf32>
    %82 = vector.extract_strided_slice %81 {offsets = [0, 0], sizes = [8, 128], strides = [1, 1]} : vector<8x384xf32> to vector<8x128xf32>
    %83 = vector.extract_strided_slice %78 {offsets = [0, 0], sizes = [8, 128], strides = [1, 1]} : vector<8x384xf32> to vector<8x128xf32>
    %84 = arith.addf %82, %83 : vector<8x128xf32>
    %85 = arith.negf %84 : vector<8x128xf32>
    %86 = math.exp %85 : vector<8x128xf32>
    %cst_29 = arith.constant 1.000000e+00 : f32
    %87 = vector.broadcast %cst_29 : f32 to vector<8x128xf32>
    %88 = arith.addf %87, %86 : vector<8x128xf32>
    %89 = arith.divf %87, %88 : vector<8x128xf32>
    %90 = vector.extract_strided_slice %81 {offsets = [0, 128], sizes = [8, 128], strides = [1, 1]} : vector<8x384xf32> to vector<8x128xf32>
    %91 = vector.extract_strided_slice %78 {offsets = [0, 128], sizes = [8, 128], strides = [1, 1]} : vector<8x384xf32> to vector<8x128xf32>
    %92 = arith.addf %90, %91 : vector<8x128xf32>
    %93 = arith.negf %92 : vector<8x128xf32>
    %94 = math.exp %93 : vector<8x128xf32>
    %cst_30 = arith.constant 1.000000e+00 : f32
    %95 = vector.broadcast %cst_30 : f32 to vector<8x128xf32>
    %96 = arith.addf %95, %94 : vector<8x128xf32>
    %97 = arith.divf %95, %96 : vector<8x128xf32>
    %98 = vector.extract_strided_slice %81 {offsets = [0, 256], sizes = [8, 128], strides = [1, 1]} : vector<8x384xf32> to vector<8x128xf32>
    %99 = vector.extract_strided_slice %78 {offsets = [0, 256], sizes = [8, 128], strides = [1, 1]} : vector<8x384xf32> to vector<8x128xf32>
    %100 = arith.mulf %89, %99 : vector<8x128xf32>
    %101 = arith.addf %98, %100 : vector<8x128xf32>
    %102 = math.tanh %101 : vector<8x128xf32>
    %cst_31 = arith.constant 1.000000e+00 : f32
    %103 = vector.broadcast %cst_31 : f32 to vector<8x128xf32>
    %104 = arith.subf %103, %97 : vector<8x128xf32>
    %105 = arith.mulf %104, %102 : vector<8x128xf32>
    %106 = arith.mulf %97, %75 : vector<8x128xf32>
    %107 = arith.addf %105, %106 : vector<8x128xf32>
    %c3_i32 = arith.constant 3 : i32
    %cst_32 = arith.constant dense<0.000000e+00> : vector<8x384xf32>
    %108 = tpu.matmul %107, %9, %cst_32 {dimension_numbers = #tpu.dot_dimension_numbers<[1], [0], [0], [1], [0, 0, 1, 1], [], []>} : vector<8x128xf32>, vector<128x384xf32>, vector<8x384xf32> -> vector<8x384xf32>
    %109 = vector.broadcast %10 : vector<1x384xf32> to vector<8x384xf32>
    %110 = arith.addf %108, %109 : vector<8x384xf32>
    %111 = arith.index_cast %c3_i32 : i32 to index
    %c0_33 = arith.constant 0 : index
    %c0_34 = arith.constant 0 : index
    %112 = vector.load %arg6[%111, %c0_33, %c0_34] : memref<10x8x384xf32, #tpu.memory_space<vmem>>, vector<1x8x384xf32>
    %113 = vector.shape_cast %112 : vector<1x8x384xf32> to vector<8x384xf32>
    %114 = vector.extract_strided_slice %113 {offsets = [0, 0], sizes = [8, 128], strides = [1, 1]} : vector<8x384xf32> to vector<8x128xf32>
    %115 = vector.extract_strided_slice %110 {offsets = [0, 0], sizes = [8, 128], strides = [1, 1]} : vector<8x384xf32> to vector<8x128xf32>
    %116 = arith.addf %114, %115 : vector<8x128xf32>
    %117 = arith.negf %116 : vector<8x128xf32>
    %118 = math.exp %117 : vector<8x128xf32>
    %cst_35 = arith.constant 1.000000e+00 : f32
    %119 = vector.broadcast %cst_35 : f32 to vector<8x128xf32>
    %120 = arith.addf %119, %118 : vector<8x128xf32>
    %121 = arith.divf %119, %120 : vector<8x128xf32>
    %122 = vector.extract_strided_slice %113 {offsets = [0, 128], sizes = [8, 128], strides = [1, 1]} : vector<8x384xf32> to vector<8x128xf32>
    %123 = vector.extract_strided_slice %110 {offsets = [0, 128], sizes = [8, 128], strides = [1, 1]} : vector<8x384xf32> to vector<8x128xf32>
    %124 = arith.addf %122, %123 : vector<8x128xf32>
    %125 = arith.negf %124 : vector<8x128xf32>
    %126 = math.exp %125 : vector<8x128xf32>
    %cst_36 = arith.constant 1.000000e+00 : f32
    %127 = vector.broadcast %cst_36 : f32 to vector<8x128xf32>
    %128 = arith.addf %127, %126 : vector<8x128xf32>
    %129 = arith.divf %127, %128 : vector<8x128xf32>
    %130 = vector.extract_strided_slice %113 {offsets = [0, 256], sizes = [8, 128], strides = [1, 1]} : vector<8x384xf32> to vector<8x128xf32>
    %131 = vector.extract_strided_slice %110 {offsets = [0, 256], sizes = [8, 128], strides = [1, 1]} : vector<8x384xf32> to vector<8x128xf32>
    %132 = arith.mulf %121, %131 : vector<8x128xf32>
    %133 = arith.addf %130, %132 : vector<8x128xf32>
    %134 = math.tanh %133 : vector<8x128xf32>
    %cst_37 = arith.constant 1.000000e+00 : f32
    %135 = vector.broadcast %cst_37 : f32 to vector<8x128xf32>
    %136 = arith.subf %135, %129 : vector<8x128xf32>
    %137 = arith.mulf %136, %134 : vector<8x128xf32>
    %138 = arith.mulf %129, %107 : vector<8x128xf32>
    %139 = arith.addf %137, %138 : vector<8x128xf32>
    %c4_i32 = arith.constant 4 : i32
    %cst_38 = arith.constant dense<0.000000e+00> : vector<8x384xf32>
    %140 = tpu.matmul %139, %9, %cst_38 {dimension_numbers = #tpu.dot_dimension_numbers<[1], [0], [0], [1], [0, 0, 1, 1], [], []>} : vector<8x128xf32>, vector<128x384xf32>, vector<8x384xf32> -> vector<8x384xf32>
    %141 = vector.broadcast %10 : vector<1x384xf32> to vector<8x384xf32>
    %142 = arith.addf %140, %141 : vector<8x384xf32>
    %143 = arith.index_cast %c4_i32 : i32 to index
    %c0_39 = arith.constant 0 : index
    %c0_40 = arith.constant 0 : index
    %144 = vector.load %arg6[%143, %c0_39, %c0_40] : memref<10x8x384xf32, #tpu.memory_space<vmem>>, vector<1x8x384xf32>
    %145 = vector.shape_cast %144 : vector<1x8x384xf32> to vector<8x384xf32>
    %146 = vector.extract_strided_slice %145 {offsets = [0, 0], sizes = [8, 128], strides = [1, 1]} : vector<8x384xf32> to vector<8x128xf32>
    %147 = vector.extract_strided_slice %142 {offsets = [0, 0], sizes = [8, 128], strides = [1, 1]} : vector<8x384xf32> to vector<8x128xf32>
    %148 = arith.addf %146, %147 : vector<8x128xf32>
    %149 = arith.negf %148 : vector<8x128xf32>
    %150 = math.exp %149 : vector<8x128xf32>
    %cst_41 = arith.constant 1.000000e+00 : f32
    %151 = vector.broadcast %cst_41 : f32 to vector<8x128xf32>
    %152 = arith.addf %151, %150 : vector<8x128xf32>
    %153 = arith.divf %151, %152 : vector<8x128xf32>
    %154 = vector.extract_strided_slice %145 {offsets = [0, 128], sizes = [8, 128], strides = [1, 1]} : vector<8x384xf32> to vector<8x128xf32>
    %155 = vector.extract_strided_slice %142 {offsets = [0, 128], sizes = [8, 128], strides = [1, 1]} : vector<8x384xf32> to vector<8x128xf32>
    %156 = arith.addf %154, %155 : vector<8x128xf32>
    %157 = arith.negf %156 : vector<8x128xf32>
    %158 = math.exp %157 : vector<8x128xf32>
    %cst_42 = arith.constant 1.000000e+00 : f32
    %159 = vector.broadcast %cst_42 : f32 to vector<8x128xf32>
    %160 = arith.addf %159, %158 : vector<8x128xf32>
    %161 = arith.divf %159, %160 : vector<8x128xf32>
    %162 = vector.extract_strided_slice %145 {offsets = [0, 256], sizes = [8, 128], strides = [1, 1]} : vector<8x384xf32> to vector<8x128xf32>
    %163 = vector.extract_strided_slice %142 {offsets = [0, 256], sizes = [8, 128], strides = [1, 1]} : vector<8x384xf32> to vector<8x128xf32>
    %164 = arith.mulf %153, %163 : vector<8x128xf32>
    %165 = arith.addf %162, %164 : vector<8x128xf32>
    %166 = math.tanh %165 : vector<8x128xf32>
    %cst_43 = arith.constant 1.000000e+00 : f32
    %167 = vector.broadcast %cst_43 : f32 to vector<8x128xf32>
    %168 = arith.subf %167, %161 : vector<8x128xf32>
    %169 = arith.mulf %168, %166 : vector<8x128xf32>
    %170 = arith.mulf %161, %139 : vector<8x128xf32>
    %171 = arith.addf %169, %170 : vector<8x128xf32>
    %c5_i32 = arith.constant 5 : i32
    %cst_44 = arith.constant dense<0.000000e+00> : vector<8x384xf32>
    %172 = tpu.matmul %171, %9, %cst_44 {dimension_numbers = #tpu.dot_dimension_numbers<[1], [0], [0], [1], [0, 0, 1, 1], [], []>} : vector<8x128xf32>, vector<128x384xf32>, vector<8x384xf32> -> vector<8x384xf32>
    %173 = vector.broadcast %10 : vector<1x384xf32> to vector<8x384xf32>
    %174 = arith.addf %172, %173 : vector<8x384xf32>
    %175 = arith.index_cast %c5_i32 : i32 to index
    %c0_45 = arith.constant 0 : index
    %c0_46 = arith.constant 0 : index
    %176 = vector.load %arg6[%175, %c0_45, %c0_46] : memref<10x8x384xf32, #tpu.memory_space<vmem>>, vector<1x8x384xf32>
    %177 = vector.shape_cast %176 : vector<1x8x384xf32> to vector<8x384xf32>
    %178 = vector.extract_strided_slice %177 {offsets = [0, 0], sizes = [8, 128], strides = [1, 1]} : vector<8x384xf32> to vector<8x128xf32>
    %179 = vector.extract_strided_slice %174 {offsets = [0, 0], sizes = [8, 128], strides = [1, 1]} : vector<8x384xf32> to vector<8x128xf32>
    %180 = arith.addf %178, %179 : vector<8x128xf32>
    %181 = arith.negf %180 : vector<8x128xf32>
    %182 = math.exp %181 : vector<8x128xf32>
    %cst_47 = arith.constant 1.000000e+00 : f32
    %183 = vector.broadcast %cst_47 : f32 to vector<8x128xf32>
    %184 = arith.addf %183, %182 : vector<8x128xf32>
    %185 = arith.divf %183, %184 : vector<8x128xf32>
    %186 = vector.extract_strided_slice %177 {offsets = [0, 128], sizes = [8, 128], strides = [1, 1]} : vector<8x384xf32> to vector<8x128xf32>
    %187 = vector.extract_strided_slice %174 {offsets = [0, 128], sizes = [8, 128], strides = [1, 1]} : vector<8x384xf32> to vector<8x128xf32>
    %188 = arith.addf %186, %187 : vector<8x128xf32>
    %189 = arith.negf %188 : vector<8x128xf32>
    %190 = math.exp %189 : vector<8x128xf32>
    %cst_48 = arith.constant 1.000000e+00 : f32
    %191 = vector.broadcast %cst_48 : f32 to vector<8x128xf32>
    %192 = arith.addf %191, %190 : vector<8x128xf32>
    %193 = arith.divf %191, %192 : vector<8x128xf32>
    %194 = vector.extract_strided_slice %177 {offsets = [0, 256], sizes = [8, 128], strides = [1, 1]} : vector<8x384xf32> to vector<8x128xf32>
    %195 = vector.extract_strided_slice %174 {offsets = [0, 256], sizes = [8, 128], strides = [1, 1]} : vector<8x384xf32> to vector<8x128xf32>
    %196 = arith.mulf %185, %195 : vector<8x128xf32>
    %197 = arith.addf %194, %196 : vector<8x128xf32>
    %198 = math.tanh %197 : vector<8x128xf32>
    %cst_49 = arith.constant 1.000000e+00 : f32
    %199 = vector.broadcast %cst_49 : f32 to vector<8x128xf32>
    %200 = arith.subf %199, %193 : vector<8x128xf32>
    %201 = arith.mulf %200, %198 : vector<8x128xf32>
    %202 = arith.mulf %193, %171 : vector<8x128xf32>
    %203 = arith.addf %201, %202 : vector<8x128xf32>
    %c6_i32 = arith.constant 6 : i32
    %cst_50 = arith.constant dense<0.000000e+00> : vector<8x384xf32>
    %204 = tpu.matmul %203, %9, %cst_50 {dimension_numbers = #tpu.dot_dimension_numbers<[1], [0], [0], [1], [0, 0, 1, 1], [], []>} : vector<8x128xf32>, vector<128x384xf32>, vector<8x384xf32> -> vector<8x384xf32>
    %205 = vector.broadcast %10 : vector<1x384xf32> to vector<8x384xf32>
    %206 = arith.addf %204, %205 : vector<8x384xf32>
    %207 = arith.index_cast %c6_i32 : i32 to index
    %c0_51 = arith.constant 0 : index
    %c0_52 = arith.constant 0 : index
    %208 = vector.load %arg6[%207, %c0_51, %c0_52] : memref<10x8x384xf32, #tpu.memory_space<vmem>>, vector<1x8x384xf32>
    %209 = vector.shape_cast %208 : vector<1x8x384xf32> to vector<8x384xf32>
    %210 = vector.extract_strided_slice %209 {offsets = [0, 0], sizes = [8, 128], strides = [1, 1]} : vector<8x384xf32> to vector<8x128xf32>
    %211 = vector.extract_strided_slice %206 {offsets = [0, 0], sizes = [8, 128], strides = [1, 1]} : vector<8x384xf32> to vector<8x128xf32>
    %212 = arith.addf %210, %211 : vector<8x128xf32>
    %213 = arith.negf %212 : vector<8x128xf32>
    %214 = math.exp %213 : vector<8x128xf32>
    %cst_53 = arith.constant 1.000000e+00 : f32
    %215 = vector.broadcast %cst_53 : f32 to vector<8x128xf32>
    %216 = arith.addf %215, %214 : vector<8x128xf32>
    %217 = arith.divf %215, %216 : vector<8x128xf32>
    %218 = vector.extract_strided_slice %209 {offsets = [0, 128], sizes = [8, 128], strides = [1, 1]} : vector<8x384xf32> to vector<8x128xf32>
    %219 = vector.extract_strided_slice %206 {offsets = [0, 128], sizes = [8, 128], strides = [1, 1]} : vector<8x384xf32> to vector<8x128xf32>
    %220 = arith.addf %218, %219 : vector<8x128xf32>
    %221 = arith.negf %220 : vector<8x128xf32>
    %222 = math.exp %221 : vector<8x128xf32>
    %cst_54 = arith.constant 1.000000e+00 : f32
    %223 = vector.broadcast %cst_54 : f32 to vector<8x128xf32>
    %224 = arith.addf %223, %222 : vector<8x128xf32>
    %225 = arith.divf %223, %224 : vector<8x128xf32>
    %226 = vector.extract_strided_slice %209 {offsets = [0, 256], sizes = [8, 128], strides = [1, 1]} : vector<8x384xf32> to vector<8x128xf32>
    %227 = vector.extract_strided_slice %206 {offsets = [0, 256], sizes = [8, 128], strides = [1, 1]} : vector<8x384xf32> to vector<8x128xf32>
    %228 = arith.mulf %217, %227 : vector<8x128xf32>
    %229 = arith.addf %226, %228 : vector<8x128xf32>
    %230 = math.tanh %229 : vector<8x128xf32>
    %cst_55 = arith.constant 1.000000e+00 : f32
    %231 = vector.broadcast %cst_55 : f32 to vector<8x128xf32>
    %232 = arith.subf %231, %225 : vector<8x128xf32>
    %233 = arith.mulf %232, %230 : vector<8x128xf32>
    %234 = arith.mulf %225, %203 : vector<8x128xf32>
    %235 = arith.addf %233, %234 : vector<8x128xf32>
    %c7_i32 = arith.constant 7 : i32
    %cst_56 = arith.constant dense<0.000000e+00> : vector<8x384xf32>
    %236 = tpu.matmul %235, %9, %cst_56 {dimension_numbers = #tpu.dot_dimension_numbers<[1], [0], [0], [1], [0, 0, 1, 1], [], []>} : vector<8x128xf32>, vector<128x384xf32>, vector<8x384xf32> -> vector<8x384xf32>
    %237 = vector.broadcast %10 : vector<1x384xf32> to vector<8x384xf32>
    %238 = arith.addf %236, %237 : vector<8x384xf32>
    %239 = arith.index_cast %c7_i32 : i32 to index
    %c0_57 = arith.constant 0 : index
    %c0_58 = arith.constant 0 : index
    %240 = vector.load %arg6[%239, %c0_57, %c0_58] : memref<10x8x384xf32, #tpu.memory_space<vmem>>, vector<1x8x384xf32>
    %241 = vector.shape_cast %240 : vector<1x8x384xf32> to vector<8x384xf32>
    %242 = vector.extract_strided_slice %241 {offsets = [0, 0], sizes = [8, 128], strides = [1, 1]} : vector<8x384xf32> to vector<8x128xf32>
    %243 = vector.extract_strided_slice %238 {offsets = [0, 0], sizes = [8, 128], strides = [1, 1]} : vector<8x384xf32> to vector<8x128xf32>
    %244 = arith.addf %242, %243 : vector<8x128xf32>
    %245 = arith.negf %244 : vector<8x128xf32>
    %246 = math.exp %245 : vector<8x128xf32>
    %cst_59 = arith.constant 1.000000e+00 : f32
    %247 = vector.broadcast %cst_59 : f32 to vector<8x128xf32>
    %248 = arith.addf %247, %246 : vector<8x128xf32>
    %249 = arith.divf %247, %248 : vector<8x128xf32>
    %250 = vector.extract_strided_slice %241 {offsets = [0, 128], sizes = [8, 128], strides = [1, 1]} : vector<8x384xf32> to vector<8x128xf32>
    %251 = vector.extract_strided_slice %238 {offsets = [0, 128], sizes = [8, 128], strides = [1, 1]} : vector<8x384xf32> to vector<8x128xf32>
    %252 = arith.addf %250, %251 : vector<8x128xf32>
    %253 = arith.negf %252 : vector<8x128xf32>
    %254 = math.exp %253 : vector<8x128xf32>
    %cst_60 = arith.constant 1.000000e+00 : f32
    %255 = vector.broadcast %cst_60 : f32 to vector<8x128xf32>
    %256 = arith.addf %255, %254 : vector<8x128xf32>
    %257 = arith.divf %255, %256 : vector<8x128xf32>
    %258 = vector.extract_strided_slice %241 {offsets = [0, 256], sizes = [8, 128], strides = [1, 1]} : vector<8x384xf32> to vector<8x128xf32>
    %259 = vector.extract_strided_slice %238 {offsets = [0, 256], sizes = [8, 128], strides = [1, 1]} : vector<8x384xf32> to vector<8x128xf32>
    %260 = arith.mulf %249, %259 : vector<8x128xf32>
    %261 = arith.addf %258, %260 : vector<8x128xf32>
    %262 = math.tanh %261 : vector<8x128xf32>
    %cst_61 = arith.constant 1.000000e+00 : f32
    %263 = vector.broadcast %cst_61 : f32 to vector<8x128xf32>
    %264 = arith.subf %263, %257 : vector<8x128xf32>
    %265 = arith.mulf %264, %262 : vector<8x128xf32>
    %266 = arith.mulf %257, %235 : vector<8x128xf32>
    %267 = arith.addf %265, %266 : vector<8x128xf32>
    %c8_i32 = arith.constant 8 : i32
    %cst_62 = arith.constant dense<0.000000e+00> : vector<8x384xf32>
    %268 = tpu.matmul %267, %9, %cst_62 {dimension_numbers = #tpu.dot_dimension_numbers<[1], [0], [0], [1], [0, 0, 1, 1], [], []>} : vector<8x128xf32>, vector<128x384xf32>, vector<8x384xf32> -> vector<8x384xf32>
    %269 = vector.broadcast %10 : vector<1x384xf32> to vector<8x384xf32>
    %270 = arith.addf %268, %269 : vector<8x384xf32>
    %271 = arith.index_cast %c8_i32 : i32 to index
    %c0_63 = arith.constant 0 : index
    %c0_64 = arith.constant 0 : index
    %272 = vector.load %arg6[%271, %c0_63, %c0_64] : memref<10x8x384xf32, #tpu.memory_space<vmem>>, vector<1x8x384xf32>
    %273 = vector.shape_cast %272 : vector<1x8x384xf32> to vector<8x384xf32>
    %274 = vector.extract_strided_slice %273 {offsets = [0, 0], sizes = [8, 128], strides = [1, 1]} : vector<8x384xf32> to vector<8x128xf32>
    %275 = vector.extract_strided_slice %270 {offsets = [0, 0], sizes = [8, 128], strides = [1, 1]} : vector<8x384xf32> to vector<8x128xf32>
    %276 = arith.addf %274, %275 : vector<8x128xf32>
    %277 = arith.negf %276 : vector<8x128xf32>
    %278 = math.exp %277 : vector<8x128xf32>
    %cst_65 = arith.constant 1.000000e+00 : f32
    %279 = vector.broadcast %cst_65 : f32 to vector<8x128xf32>
    %280 = arith.addf %279, %278 : vector<8x128xf32>
    %281 = arith.divf %279, %280 : vector<8x128xf32>
    %282 = vector.extract_strided_slice %273 {offsets = [0, 128], sizes = [8, 128], strides = [1, 1]} : vector<8x384xf32> to vector<8x128xf32>
    %283 = vector.extract_strided_slice %270 {offsets = [0, 128], sizes = [8, 128], strides = [1, 1]} : vector<8x384xf32> to vector<8x128xf32>
    %284 = arith.addf %282, %283 : vector<8x128xf32>
    %285 = arith.negf %284 : vector<8x128xf32>
    %286 = math.exp %285 : vector<8x128xf32>
    %cst_66 = arith.constant 1.000000e+00 : f32
    %287 = vector.broadcast %cst_66 : f32 to vector<8x128xf32>
    %288 = arith.addf %287, %286 : vector<8x128xf32>
    %289 = arith.divf %287, %288 : vector<8x128xf32>
    %290 = vector.extract_strided_slice %273 {offsets = [0, 256], sizes = [8, 128], strides = [1, 1]} : vector<8x384xf32> to vector<8x128xf32>
    %291 = vector.extract_strided_slice %270 {offsets = [0, 256], sizes = [8, 128], strides = [1, 1]} : vector<8x384xf32> to vector<8x128xf32>
    %292 = arith.mulf %281, %291 : vector<8x128xf32>
    %293 = arith.addf %290, %292 : vector<8x128xf32>
    %294 = math.tanh %293 : vector<8x128xf32>
    %cst_67 = arith.constant 1.000000e+00 : f32
    %295 = vector.broadcast %cst_67 : f32 to vector<8x128xf32>
    %296 = arith.subf %295, %289 : vector<8x128xf32>
    %297 = arith.mulf %296, %294 : vector<8x128xf32>
    %298 = arith.mulf %289, %267 : vector<8x128xf32>
    %299 = arith.addf %297, %298 : vector<8x128xf32>
    %c9_i32 = arith.constant 9 : i32
    %cst_68 = arith.constant dense<0.000000e+00> : vector<8x384xf32>
    %300 = tpu.matmul %299, %9, %cst_68 {dimension_numbers = #tpu.dot_dimension_numbers<[1], [0], [0], [1], [0, 0, 1, 1], [], []>} : vector<8x128xf32>, vector<128x384xf32>, vector<8x384xf32> -> vector<8x384xf32>
    %301 = vector.broadcast %10 : vector<1x384xf32> to vector<8x384xf32>
    %302 = arith.addf %300, %301 : vector<8x384xf32>
    %303 = arith.index_cast %c9_i32 : i32 to index
    %c0_69 = arith.constant 0 : index
    %c0_70 = arith.constant 0 : index
    %304 = vector.load %arg6[%303, %c0_69, %c0_70] : memref<10x8x384xf32, #tpu.memory_space<vmem>>, vector<1x8x384xf32>
    %305 = vector.shape_cast %304 : vector<1x8x384xf32> to vector<8x384xf32>
    %306 = vector.extract_strided_slice %305 {offsets = [0, 0], sizes = [8, 128], strides = [1, 1]} : vector<8x384xf32> to vector<8x128xf32>
    %307 = vector.extract_strided_slice %302 {offsets = [0, 0], sizes = [8, 128], strides = [1, 1]} : vector<8x384xf32> to vector<8x128xf32>
    %308 = arith.addf %306, %307 : vector<8x128xf32>
    %309 = arith.negf %308 : vector<8x128xf32>
    %310 = math.exp %309 : vector<8x128xf32>
    %cst_71 = arith.constant 1.000000e+00 : f32
    %311 = vector.broadcast %cst_71 : f32 to vector<8x128xf32>
    %312 = arith.addf %311, %310 : vector<8x128xf32>
    %313 = arith.divf %311, %312 : vector<8x128xf32>
    %314 = vector.extract_strided_slice %305 {offsets = [0, 128], sizes = [8, 128], strides = [1, 1]} : vector<8x384xf32> to vector<8x128xf32>
    %315 = vector.extract_strided_slice %302 {offsets = [0, 128], sizes = [8, 128], strides = [1, 1]} : vector<8x384xf32> to vector<8x128xf32>
    %316 = arith.addf %314, %315 : vector<8x128xf32>
    %317 = arith.negf %316 : vector<8x128xf32>
    %318 = math.exp %317 : vector<8x128xf32>
    %cst_72 = arith.constant 1.000000e+00 : f32
    %319 = vector.broadcast %cst_72 : f32 to vector<8x128xf32>
    %320 = arith.addf %319, %318 : vector<8x128xf32>
    %321 = arith.divf %319, %320 : vector<8x128xf32>
    %322 = vector.extract_strided_slice %305 {offsets = [0, 256], sizes = [8, 128], strides = [1, 1]} : vector<8x384xf32> to vector<8x128xf32>
    %323 = vector.extract_strided_slice %302 {offsets = [0, 256], sizes = [8, 128], strides = [1, 1]} : vector<8x384xf32> to vector<8x128xf32>
    %324 = arith.mulf %313, %323 : vector<8x128xf32>
    %325 = arith.addf %322, %324 : vector<8x128xf32>
    %326 = math.tanh %325 : vector<8x128xf32>
    %cst_73 = arith.constant 1.000000e+00 : f32
    %327 = vector.broadcast %cst_73 : f32 to vector<8x128xf32>
    %328 = arith.subf %327, %321 : vector<8x128xf32>
    %329 = arith.mulf %328, %326 : vector<8x128xf32>
    %330 = arith.mulf %321, %299 : vector<8x128xf32>
    %331 = arith.addf %329, %330 : vector<8x128xf32>
    %c10_i32 = arith.constant 10 : i32
    %c0_74 = arith.constant 0 : index
    %c0_75 = arith.constant 0 : index
    %332 = vector.load %arg5[%c0_74, %c0_75] : memref<8x128xf32, #tpu.memory_space<vmem>>, vector<8x128xf32>
    tpu.vector_store %arg5[%c0_74, %c0_75], %331 {strides = array<i32>} : memref<8x128xf32, #tpu.memory_space<vmem>>, vector<8x128xf32>,
    return
  }
}

module attributes {stable_mosaic.version = 11 : i64} {
  func.func @kernel(%arg0: i32, %arg1: memref<1x10x8x128xf32, #tpu.memory_space<vmem>>, %arg2: memref<8x128xf32, #tpu.memory_space<vmem>>, %arg3: memref<1x128x384xf32, #tpu.memory_space<vmem>>, %arg4: memref<1x128x384xf32, #tpu.memory_space<vmem>>, %arg5: memref<1x8x384xf32, #tpu.memory_space<vmem>>, %arg6: memref<1x10x8x128xf32, #tpu.memory_space<vmem>>, %arg7: memref<10x8x384xf32, #tpu.memory_space<vmem>>) attributes {dimension_semantics = [#tpu.dimension_semantics<parallel>], iteration_bounds = array<i64: 10>, scalar_prefetch = 0 : i64, scratch_operands = 1 : i64, tpu.core_type = #tpu.core_type<tc>, window_params = [{transform_indices = @transform_0, window_bounds = array<i64: 1, 10, 8, 128>}, {pipeline_mode = #tpu.pipeline_mode<synchronous>, transform_indices = @transform_1, window_bounds = array<i64: 8, 128>}, {transform_indices = @transform_2, window_bounds = array<i64: 1, 128, 384>}, {transform_indices = @transform_3, window_bounds = array<i64: 1, 128, 384>}, {transform_indices = @transform_4, window_bounds = array<i64: 1, 8, 384>}, {transform_indices = @transform_5, window_bounds = array<i64: 1, 10, 8, 128>}]} {
    %c0 = arith.constant 0 : index
    %c0_0 = arith.constant 0 : index
    %c0_1 = arith.constant 0 : index
    %c0_2 = arith.constant 0 : index
    %0 = vector.load %arg1[%c0, %c0_0, %c0_1, %c0_2] : memref<1x10x8x128xf32, #tpu.memory_space<vmem>>, vector<1x10x8x128xf32>
    %1 = vector.shape_cast %0 : vector<1x10x8x128xf32> to vector<10x8x128xf32>
    %2 = vector.shape_cast %1 : vector<10x8x128xf32> to vector<80x128xf32>
    %c0_3 = arith.constant 0 : index
    %c0_4 = arith.constant 0 : index
    %c0_5 = arith.constant 0 : index
    %3 = vector.load %arg3[%c0_3, %c0_4, %c0_5] : memref<1x128x384xf32, #tpu.memory_space<vmem>>, vector<1x128x384xf32>
    %4 = vector.shape_cast %3 : vector<1x128x384xf32> to vector<128x384xf32>
    %cst = arith.constant dense<0.000000e+00> : vector<80x384xf32>
    %5 = tpu.matmul %2, %4, %cst {dimension_numbers = #tpu.dot_dimension_numbers<[1], [0], [0], [1], [0, 0, 1, 1], [], []>} : vector<80x128xf32>, vector<128x384xf32>, vector<80x384xf32> -> vector<80x384xf32>
    %c0_6 = arith.constant 0 : index
    %c0_7 = arith.constant 0 : index
    %c0_8 = arith.constant 0 : index
    %6 = vector.load %arg5[%c0_6, %c0_7, %c0_8] : memref<1x8x384xf32, #tpu.memory_space<vmem>>, vector<1x1x384xf32>
    %7 = vector.shape_cast %6 : vector<1x1x384xf32> to vector<1x384xf32>
    %8 = vector.broadcast %7 : vector<1x384xf32> to vector<80x384xf32>
    %9 = arith.addf %5, %8 : vector<80x384xf32>
    %10 = vector.shape_cast %9 : vector<80x384xf32> to vector<10x8x384xf32>
    %c0_9 = arith.constant 0 : index
    %c0_10 = arith.constant 0 : index
    %c0_11 = arith.constant 0 : index
    %11 = vector.load %arg7[%c0_9, %c0_10, %c0_11] : memref<10x8x384xf32, #tpu.memory_space<vmem>>, vector<10x8x384xf32>
    tpu.vector_store %arg7[%c0_9, %c0_10, %c0_11], %10 {strides = array<i32>} : memref<10x8x384xf32, #tpu.memory_space<vmem>>, vector<10x8x384xf32>,
    %c0_12 = arith.constant 0 : index
    %c0_13 = arith.constant 0 : index
    %c0_14 = arith.constant 0 : index
    %12 = vector.load %arg4[%c0_12, %c0_13, %c0_14] : memref<1x128x384xf32, #tpu.memory_space<vmem>>, vector<1x128x384xf32>
    %13 = vector.shape_cast %12 : vector<1x128x384xf32> to vector<128x384xf32>
    %c0_15 = arith.constant 0 : index
    %c1 = arith.constant 1 : index
    %c0_16 = arith.constant 0 : index
    %14 = vector.load %arg5[%c0_15, %c1, %c0_16] : memref<1x8x384xf32, #tpu.memory_space<vmem>>, vector<1x1x384xf32>
    %15 = vector.shape_cast %14 : vector<1x1x384xf32> to vector<1x384xf32>
    %c0_17 = arith.constant 0 : index
    %c0_18 = arith.constant 0 : index
    %16 = vector.load %arg2[%c0_17, %c0_18] : memref<8x128xf32, #tpu.memory_space<vmem>>, vector<8x128xf32>
    %c0_i32 = arith.constant 0 : i32
    %cst_19 = arith.constant dense<0.000000e+00> : vector<8x384xf32>
    %17 = tpu.matmul %16, %13, %cst_19 {dimension_numbers = #tpu.dot_dimension_numbers<[1], [0], [0], [1], [0, 0, 1, 1], [], []>} : vector<8x128xf32>, vector<128x384xf32>, vector<8x384xf32> -> vector<8x384xf32>
    %18 = vector.broadcast %15 : vector<1x384xf32> to vector<8x384xf32>
    %19 = arith.addf %17, %18 : vector<8x384xf32>
    %20 = arith.index_cast %c0_i32 : i32 to index
    %c0_20 = arith.constant 0 : index
    %c0_21 = arith.constant 0 : index
    %21 = vector.load %arg7[%20, %c0_20, %c0_21] : memref<10x8x384xf32, #tpu.memory_space<vmem>>, vector<1x8x384xf32>
    %22 = vector.shape_cast %21 : vector<1x8x384xf32> to vector<8x384xf32>
    %23 = vector.extract_strided_slice %22 {offsets = [0, 0], sizes = [8, 128], strides = [1, 1]} : vector<8x384xf32> to vector<8x128xf32>
    %24 = vector.extract_strided_slice %19 {offsets = [0, 0], sizes = [8, 128], strides = [1, 1]} : vector<8x384xf32> to vector<8x128xf32>
    %25 = arith.addf %23, %24 : vector<8x128xf32>
    %26 = arith.negf %25 : vector<8x128xf32>
    %27 = math.exp %26 : vector<8x128xf32>
    %cst_22 = arith.constant 1.000000e+00 : f32
    %28 = vector.broadcast %cst_22 : f32 to vector<8x128xf32>
    %29 = arith.addf %28, %27 : vector<8x128xf32>
    %30 = arith.divf %28, %29 : vector<8x128xf32>
    %31 = vector.extract_strided_slice %22 {offsets = [0, 128], sizes = [8, 128], strides = [1, 1]} : vector<8x384xf32> to vector<8x128xf32>
    %32 = vector.extract_strided_slice %19 {offsets = [0, 128], sizes = [8, 128], strides = [1, 1]} : vector<8x384xf32> to vector<8x128xf32>
    %33 = arith.addf %31, %32 : vector<8x128xf32>
    %34 = arith.negf %33 : vector<8x128xf32>
    %35 = math.exp %34 : vector<8x128xf32>
    %cst_23 = arith.constant 1.000000e+00 : f32
    %36 = vector.broadcast %cst_23 : f32 to vector<8x128xf32>
    %37 = arith.addf %36, %35 : vector<8x128xf32>
    %38 = arith.divf %36, %37 : vector<8x128xf32>
    %39 = vector.extract_strided_slice %22 {offsets = [0, 256], sizes = [8, 128], strides = [1, 1]} : vector<8x384xf32> to vector<8x128xf32>
    %40 = vector.extract_strided_slice %19 {offsets = [0, 256], sizes = [8, 128], strides = [1, 1]} : vector<8x384xf32> to vector<8x128xf32>
    %41 = arith.mulf %30, %40 : vector<8x128xf32>
    %42 = arith.addf %39, %41 : vector<8x128xf32>
    %43 = math.tanh %42 : vector<8x128xf32>
    %cst_24 = arith.constant 1.000000e+00 : f32
    %44 = vector.broadcast %cst_24 : f32 to vector<8x128xf32>
    %45 = arith.subf %44, %38 : vector<8x128xf32>
    %46 = arith.mulf %45, %43 : vector<8x128xf32>
    %47 = arith.mulf %38, %16 : vector<8x128xf32>
    %48 = arith.addf %46, %47 : vector<8x128xf32>
    %c0_25 = arith.constant 0 : index
    %49 = arith.index_cast %c0_i32 : i32 to index
    %c0_26 = arith.constant 0 : index
    %c0_27 = arith.constant 0 : index
    %50 = vector.load %arg6[%c0_25, %49, %c0_26, %c0_27] : memref<1x10x8x128xf32, #tpu.memory_space<vmem>>, vector<1x1x8x128xf32>
    %51 = vector.shape_cast %50 : vector<1x1x8x128xf32> to vector<8x128xf32>
    %52 = vector.shape_cast %48 : vector<8x128xf32> to vector<1x1x8x128xf32>
    tpu.vector_store %arg6[%c0_25, %49, %c0_26, %c0_27], %52 {strides = array<i32>} : memref<1x10x8x128xf32, #tpu.memory_space<vmem>>, vector<1x1x8x128xf32>,
    %c1_i32 = arith.constant 1 : i32
    %cst_28 = arith.constant dense<0.000000e+00> : vector<8x384xf32>
    %53 = tpu.matmul %48, %13, %cst_28 {dimension_numbers = #tpu.dot_dimension_numbers<[1], [0], [0], [1], [0, 0, 1, 1], [], []>} : vector<8x128xf32>, vector<128x384xf32>, vector<8x384xf32> -> vector<8x384xf32>
    %54 = vector.broadcast %15 : vector<1x384xf32> to vector<8x384xf32>
    %55 = arith.addf %53, %54 : vector<8x384xf32>
    %56 = arith.index_cast %c1_i32 : i32 to index
    %c0_29 = arith.constant 0 : index
    %c0_30 = arith.constant 0 : index
    %57 = vector.load %arg7[%56, %c0_29, %c0_30] : memref<10x8x384xf32, #tpu.memory_space<vmem>>, vector<1x8x384xf32>
    %58 = vector.shape_cast %57 : vector<1x8x384xf32> to vector<8x384xf32>
    %59 = vector.extract_strided_slice %58 {offsets = [0, 0], sizes = [8, 128], strides = [1, 1]} : vector<8x384xf32> to vector<8x128xf32>
    %60 = vector.extract_strided_slice %55 {offsets = [0, 0], sizes = [8, 128], strides = [1, 1]} : vector<8x384xf32> to vector<8x128xf32>
    %61 = arith.addf %59, %60 : vector<8x128xf32>
    %62 = arith.negf %61 : vector<8x128xf32>
    %63 = math.exp %62 : vector<8x128xf32>
    %cst_31 = arith.constant 1.000000e+00 : f32
    %64 = vector.broadcast %cst_31 : f32 to vector<8x128xf32>
    %65 = arith.addf %64, %63 : vector<8x128xf32>
    %66 = arith.divf %64, %65 : vector<8x128xf32>
    %67 = vector.extract_strided_slice %58 {offsets = [0, 128], sizes = [8, 128], strides = [1, 1]} : vector<8x384xf32> to vector<8x128xf32>
    %68 = vector.extract_strided_slice %55 {offsets = [0, 128], sizes = [8, 128], strides = [1, 1]} : vector<8x384xf32> to vector<8x128xf32>
    %69 = arith.addf %67, %68 : vector<8x128xf32>
    %70 = arith.negf %69 : vector<8x128xf32>
    %71 = math.exp %70 : vector<8x128xf32>
    %cst_32 = arith.constant 1.000000e+00 : f32
    %72 = vector.broadcast %cst_32 : f32 to vector<8x128xf32>
    %73 = arith.addf %72, %71 : vector<8x128xf32>
    %74 = arith.divf %72, %73 : vector<8x128xf32>
    %75 = vector.extract_strided_slice %58 {offsets = [0, 256], sizes = [8, 128], strides = [1, 1]} : vector<8x384xf32> to vector<8x128xf32>
    %76 = vector.extract_strided_slice %55 {offsets = [0, 256], sizes = [8, 128], strides = [1, 1]} : vector<8x384xf32> to vector<8x128xf32>
    %77 = arith.mulf %66, %76 : vector<8x128xf32>
    %78 = arith.addf %75, %77 : vector<8x128xf32>
    %79 = math.tanh %78 : vector<8x128xf32>
    %cst_33 = arith.constant 1.000000e+00 : f32
    %80 = vector.broadcast %cst_33 : f32 to vector<8x128xf32>
    %81 = arith.subf %80, %74 : vector<8x128xf32>
    %82 = arith.mulf %81, %79 : vector<8x128xf32>
    %83 = arith.mulf %74, %48 : vector<8x128xf32>
    %84 = arith.addf %82, %83 : vector<8x128xf32>
    %c0_34 = arith.constant 0 : index
    %85 = arith.index_cast %c1_i32 : i32 to index
    %c0_35 = arith.constant 0 : index
    %c0_36 = arith.constant 0 : index
    %86 = vector.load %arg6[%c0_34, %85, %c0_35, %c0_36] : memref<1x10x8x128xf32, #tpu.memory_space<vmem>>, vector<1x1x8x128xf32>
    %87 = vector.shape_cast %86 : vector<1x1x8x128xf32> to vector<8x128xf32>
    %88 = vector.shape_cast %84 : vector<8x128xf32> to vector<1x1x8x128xf32>
    tpu.vector_store %arg6[%c0_34, %85, %c0_35, %c0_36], %88 {strides = array<i32>} : memref<1x10x8x128xf32, #tpu.memory_space<vmem>>, vector<1x1x8x128xf32>,
    %c2_i32 = arith.constant 2 : i32
    %cst_37 = arith.constant dense<0.000000e+00> : vector<8x384xf32>
    %89 = tpu.matmul %84, %13, %cst_37 {dimension_numbers = #tpu.dot_dimension_numbers<[1], [0], [0], [1], [0, 0, 1, 1], [], []>} : vector<8x128xf32>, vector<128x384xf32>, vector<8x384xf32> -> vector<8x384xf32>
    %90 = vector.broadcast %15 : vector<1x384xf32> to vector<8x384xf32>
    %91 = arith.addf %89, %90 : vector<8x384xf32>
    %92 = arith.index_cast %c2_i32 : i32 to index
    %c0_38 = arith.constant 0 : index
    %c0_39 = arith.constant 0 : index
    %93 = vector.load %arg7[%92, %c0_38, %c0_39] : memref<10x8x384xf32, #tpu.memory_space<vmem>>, vector<1x8x384xf32>
    %94 = vector.shape_cast %93 : vector<1x8x384xf32> to vector<8x384xf32>
    %95 = vector.extract_strided_slice %94 {offsets = [0, 0], sizes = [8, 128], strides = [1, 1]} : vector<8x384xf32> to vector<8x128xf32>
    %96 = vector.extract_strided_slice %91 {offsets = [0, 0], sizes = [8, 128], strides = [1, 1]} : vector<8x384xf32> to vector<8x128xf32>
    %97 = arith.addf %95, %96 : vector<8x128xf32>
    %98 = arith.negf %97 : vector<8x128xf32>
    %99 = math.exp %98 : vector<8x128xf32>
    %cst_40 = arith.constant 1.000000e+00 : f32
    %100 = vector.broadcast %cst_40 : f32 to vector<8x128xf32>
    %101 = arith.addf %100, %99 : vector<8x128xf32>
    %102 = arith.divf %100, %101 : vector<8x128xf32>
    %103 = vector.extract_strided_slice %94 {offsets = [0, 128], sizes = [8, 128], strides = [1, 1]} : vector<8x384xf32> to vector<8x128xf32>
    %104 = vector.extract_strided_slice %91 {offsets = [0, 128], sizes = [8, 128], strides = [1, 1]} : vector<8x384xf32> to vector<8x128xf32>
    %105 = arith.addf %103, %104 : vector<8x128xf32>
    %106 = arith.negf %105 : vector<8x128xf32>
    %107 = math.exp %106 : vector<8x128xf32>
    %cst_41 = arith.constant 1.000000e+00 : f32
    %108 = vector.broadcast %cst_41 : f32 to vector<8x128xf32>
    %109 = arith.addf %108, %107 : vector<8x128xf32>
    %110 = arith.divf %108, %109 : vector<8x128xf32>
    %111 = vector.extract_strided_slice %94 {offsets = [0, 256], sizes = [8, 128], strides = [1, 1]} : vector<8x384xf32> to vector<8x128xf32>
    %112 = vector.extract_strided_slice %91 {offsets = [0, 256], sizes = [8, 128], strides = [1, 1]} : vector<8x384xf32> to vector<8x128xf32>
    %113 = arith.mulf %102, %112 : vector<8x128xf32>
    %114 = arith.addf %111, %113 : vector<8x128xf32>
    %115 = math.tanh %114 : vector<8x128xf32>
    %cst_42 = arith.constant 1.000000e+00 : f32
    %116 = vector.broadcast %cst_42 : f32 to vector<8x128xf32>
    %117 = arith.subf %116, %110 : vector<8x128xf32>
    %118 = arith.mulf %117, %115 : vector<8x128xf32>
    %119 = arith.mulf %110, %84 : vector<8x128xf32>
    %120 = arith.addf %118, %119 : vector<8x128xf32>
    %c0_43 = arith.constant 0 : index
    %121 = arith.index_cast %c2_i32 : i32 to index
    %c0_44 = arith.constant 0 : index
    %c0_45 = arith.constant 0 : index
    %122 = vector.load %arg6[%c0_43, %121, %c0_44, %c0_45] : memref<1x10x8x128xf32, #tpu.memory_space<vmem>>, vector<1x1x8x128xf32>
    %123 = vector.shape_cast %122 : vector<1x1x8x128xf32> to vector<8x128xf32>
    %124 = vector.shape_cast %120 : vector<8x128xf32> to vector<1x1x8x128xf32>
    tpu.vector_store %arg6[%c0_43, %121, %c0_44, %c0_45], %124 {strides = array<i32>} : memref<1x10x8x128xf32, #tpu.memory_space<vmem>>, vector<1x1x8x128xf32>,
    %c3_i32 = arith.constant 3 : i32
    %cst_46 = arith.constant dense<0.000000e+00> : vector<8x384xf32>
    %125 = tpu.matmul %120, %13, %cst_46 {dimension_numbers = #tpu.dot_dimension_numbers<[1], [0], [0], [1], [0, 0, 1, 1], [], []>} : vector<8x128xf32>, vector<128x384xf32>, vector<8x384xf32> -> vector<8x384xf32>
    %126 = vector.broadcast %15 : vector<1x384xf32> to vector<8x384xf32>
    %127 = arith.addf %125, %126 : vector<8x384xf32>
    %128 = arith.index_cast %c3_i32 : i32 to index
    %c0_47 = arith.constant 0 : index
    %c0_48 = arith.constant 0 : index
    %129 = vector.load %arg7[%128, %c0_47, %c0_48] : memref<10x8x384xf32, #tpu.memory_space<vmem>>, vector<1x8x384xf32>
    %130 = vector.shape_cast %129 : vector<1x8x384xf32> to vector<8x384xf32>
    %131 = vector.extract_strided_slice %130 {offsets = [0, 0], sizes = [8, 128], strides = [1, 1]} : vector<8x384xf32> to vector<8x128xf32>
    %132 = vector.extract_strided_slice %127 {offsets = [0, 0], sizes = [8, 128], strides = [1, 1]} : vector<8x384xf32> to vector<8x128xf32>
    %133 = arith.addf %131, %132 : vector<8x128xf32>
    %134 = arith.negf %133 : vector<8x128xf32>
    %135 = math.exp %134 : vector<8x128xf32>
    %cst_49 = arith.constant 1.000000e+00 : f32
    %136 = vector.broadcast %cst_49 : f32 to vector<8x128xf32>
    %137 = arith.addf %136, %135 : vector<8x128xf32>
    %138 = arith.divf %136, %137 : vector<8x128xf32>
    %139 = vector.extract_strided_slice %130 {offsets = [0, 128], sizes = [8, 128], strides = [1, 1]} : vector<8x384xf32> to vector<8x128xf32>
    %140 = vector.extract_strided_slice %127 {offsets = [0, 128], sizes = [8, 128], strides = [1, 1]} : vector<8x384xf32> to vector<8x128xf32>
    %141 = arith.addf %139, %140 : vector<8x128xf32>
    %142 = arith.negf %141 : vector<8x128xf32>
    %143 = math.exp %142 : vector<8x128xf32>
    %cst_50 = arith.constant 1.000000e+00 : f32
    %144 = vector.broadcast %cst_50 : f32 to vector<8x128xf32>
    %145 = arith.addf %144, %143 : vector<8x128xf32>
    %146 = arith.divf %144, %145 : vector<8x128xf32>
    %147 = vector.extract_strided_slice %130 {offsets = [0, 256], sizes = [8, 128], strides = [1, 1]} : vector<8x384xf32> to vector<8x128xf32>
    %148 = vector.extract_strided_slice %127 {offsets = [0, 256], sizes = [8, 128], strides = [1, 1]} : vector<8x384xf32> to vector<8x128xf32>
    %149 = arith.mulf %138, %148 : vector<8x128xf32>
    %150 = arith.addf %147, %149 : vector<8x128xf32>
    %151 = math.tanh %150 : vector<8x128xf32>
    %cst_51 = arith.constant 1.000000e+00 : f32
    %152 = vector.broadcast %cst_51 : f32 to vector<8x128xf32>
    %153 = arith.subf %152, %146 : vector<8x128xf32>
    %154 = arith.mulf %153, %151 : vector<8x128xf32>
    %155 = arith.mulf %146, %120 : vector<8x128xf32>
    %156 = arith.addf %154, %155 : vector<8x128xf32>
    %c0_52 = arith.constant 0 : index
    %157 = arith.index_cast %c3_i32 : i32 to index
    %c0_53 = arith.constant 0 : index
    %c0_54 = arith.constant 0 : index
    %158 = vector.load %arg6[%c0_52, %157, %c0_53, %c0_54] : memref<1x10x8x128xf32, #tpu.memory_space<vmem>>, vector<1x1x8x128xf32>
    %159 = vector.shape_cast %158 : vector<1x1x8x128xf32> to vector<8x128xf32>
    %160 = vector.shape_cast %156 : vector<8x128xf32> to vector<1x1x8x128xf32>
    tpu.vector_store %arg6[%c0_52, %157, %c0_53, %c0_54], %160 {strides = array<i32>} : memref<1x10x8x128xf32, #tpu.memory_space<vmem>>, vector<1x1x8x128xf32>,
    %c4_i32 = arith.constant 4 : i32
    %cst_55 = arith.constant dense<0.000000e+00> : vector<8x384xf32>
    %161 = tpu.matmul %156, %13, %cst_55 {dimension_numbers = #tpu.dot_dimension_numbers<[1], [0], [0], [1], [0, 0, 1, 1], [], []>} : vector<8x128xf32>, vector<128x384xf32>, vector<8x384xf32> -> vector<8x384xf32>
    %162 = vector.broadcast %15 : vector<1x384xf32> to vector<8x384xf32>
    %163 = arith.addf %161, %162 : vector<8x384xf32>
    %164 = arith.index_cast %c4_i32 : i32 to index
    %c0_56 = arith.constant 0 : index
    %c0_57 = arith.constant 0 : index
    %165 = vector.load %arg7[%164, %c0_56, %c0_57] : memref<10x8x384xf32, #tpu.memory_space<vmem>>, vector<1x8x384xf32>
    %166 = vector.shape_cast %165 : vector<1x8x384xf32> to vector<8x384xf32>
    %167 = vector.extract_strided_slice %166 {offsets = [0, 0], sizes = [8, 128], strides = [1, 1]} : vector<8x384xf32> to vector<8x128xf32>
    %168 = vector.extract_strided_slice %163 {offsets = [0, 0], sizes = [8, 128], strides = [1, 1]} : vector<8x384xf32> to vector<8x128xf32>
    %169 = arith.addf %167, %168 : vector<8x128xf32>
    %170 = arith.negf %169 : vector<8x128xf32>
    %171 = math.exp %170 : vector<8x128xf32>
    %cst_58 = arith.constant 1.000000e+00 : f32
    %172 = vector.broadcast %cst_58 : f32 to vector<8x128xf32>
    %173 = arith.addf %172, %171 : vector<8x128xf32>
    %174 = arith.divf %172, %173 : vector<8x128xf32>
    %175 = vector.extract_strided_slice %166 {offsets = [0, 128], sizes = [8, 128], strides = [1, 1]} : vector<8x384xf32> to vector<8x128xf32>
    %176 = vector.extract_strided_slice %163 {offsets = [0, 128], sizes = [8, 128], strides = [1, 1]} : vector<8x384xf32> to vector<8x128xf32>
    %177 = arith.addf %175, %176 : vector<8x128xf32>
    %178 = arith.negf %177 : vector<8x128xf32>
    %179 = math.exp %178 : vector<8x128xf32>
    %cst_59 = arith.constant 1.000000e+00 : f32
    %180 = vector.broadcast %cst_59 : f32 to vector<8x128xf32>
    %181 = arith.addf %180, %179 : vector<8x128xf32>
    %182 = arith.divf %180, %181 : vector<8x128xf32>
    %183 = vector.extract_strided_slice %166 {offsets = [0, 256], sizes = [8, 128], strides = [1, 1]} : vector<8x384xf32> to vector<8x128xf32>
    %184 = vector.extract_strided_slice %163 {offsets = [0, 256], sizes = [8, 128], strides = [1, 1]} : vector<8x384xf32> to vector<8x128xf32>
    %185 = arith.mulf %174, %184 : vector<8x128xf32>
    %186 = arith.addf %183, %185 : vector<8x128xf32>
    %187 = math.tanh %186 : vector<8x128xf32>
    %cst_60 = arith.constant 1.000000e+00 : f32
    %188 = vector.broadcast %cst_60 : f32 to vector<8x128xf32>
    %189 = arith.subf %188, %182 : vector<8x128xf32>
    %190 = arith.mulf %189, %187 : vector<8x128xf32>
    %191 = arith.mulf %182, %156 : vector<8x128xf32>
    %192 = arith.addf %190, %191 : vector<8x128xf32>
    %c0_61 = arith.constant 0 : index
    %193 = arith.index_cast %c4_i32 : i32 to index
    %c0_62 = arith.constant 0 : index
    %c0_63 = arith.constant 0 : index
    %194 = vector.load %arg6[%c0_61, %193, %c0_62, %c0_63] : memref<1x10x8x128xf32, #tpu.memory_space<vmem>>, vector<1x1x8x128xf32>
    %195 = vector.shape_cast %194 : vector<1x1x8x128xf32> to vector<8x128xf32>
    %196 = vector.shape_cast %192 : vector<8x128xf32> to vector<1x1x8x128xf32>
    tpu.vector_store %arg6[%c0_61, %193, %c0_62, %c0_63], %196 {strides = array<i32>} : memref<1x10x8x128xf32, #tpu.memory_space<vmem>>, vector<1x1x8x128xf32>,
    %c5_i32 = arith.constant 5 : i32
    %cst_64 = arith.constant dense<0.000000e+00> : vector<8x384xf32>
    %197 = tpu.matmul %192, %13, %cst_64 {dimension_numbers = #tpu.dot_dimension_numbers<[1], [0], [0], [1], [0, 0, 1, 1], [], []>} : vector<8x128xf32>, vector<128x384xf32>, vector<8x384xf32> -> vector<8x384xf32>
    %198 = vector.broadcast %15 : vector<1x384xf32> to vector<8x384xf32>
    %199 = arith.addf %197, %198 : vector<8x384xf32>
    %200 = arith.index_cast %c5_i32 : i32 to index
    %c0_65 = arith.constant 0 : index
    %c0_66 = arith.constant 0 : index
    %201 = vector.load %arg7[%200, %c0_65, %c0_66] : memref<10x8x384xf32, #tpu.memory_space<vmem>>, vector<1x8x384xf32>
    %202 = vector.shape_cast %201 : vector<1x8x384xf32> to vector<8x384xf32>
    %203 = vector.extract_strided_slice %202 {offsets = [0, 0], sizes = [8, 128], strides = [1, 1]} : vector<8x384xf32> to vector<8x128xf32>
    %204 = vector.extract_strided_slice %199 {offsets = [0, 0], sizes = [8, 128], strides = [1, 1]} : vector<8x384xf32> to vector<8x128xf32>
    %205 = arith.addf %203, %204 : vector<8x128xf32>
    %206 = arith.negf %205 : vector<8x128xf32>
    %207 = math.exp %206 : vector<8x128xf32>
    %cst_67 = arith.constant 1.000000e+00 : f32
    %208 = vector.broadcast %cst_67 : f32 to vector<8x128xf32>
    %209 = arith.addf %208, %207 : vector<8x128xf32>
    %210 = arith.divf %208, %209 : vector<8x128xf32>
    %211 = vector.extract_strided_slice %202 {offsets = [0, 128], sizes = [8, 128], strides = [1, 1]} : vector<8x384xf32> to vector<8x128xf32>
    %212 = vector.extract_strided_slice %199 {offsets = [0, 128], sizes = [8, 128], strides = [1, 1]} : vector<8x384xf32> to vector<8x128xf32>
    %213 = arith.addf %211, %212 : vector<8x128xf32>
    %214 = arith.negf %213 : vector<8x128xf32>
    %215 = math.exp %214 : vector<8x128xf32>
    %cst_68 = arith.constant 1.000000e+00 : f32
    %216 = vector.broadcast %cst_68 : f32 to vector<8x128xf32>
    %217 = arith.addf %216, %215 : vector<8x128xf32>
    %218 = arith.divf %216, %217 : vector<8x128xf32>
    %219 = vector.extract_strided_slice %202 {offsets = [0, 256], sizes = [8, 128], strides = [1, 1]} : vector<8x384xf32> to vector<8x128xf32>
    %220 = vector.extract_strided_slice %199 {offsets = [0, 256], sizes = [8, 128], strides = [1, 1]} : vector<8x384xf32> to vector<8x128xf32>
    %221 = arith.mulf %210, %220 : vector<8x128xf32>
    %222 = arith.addf %219, %221 : vector<8x128xf32>
    %223 = math.tanh %222 : vector<8x128xf32>
    %cst_69 = arith.constant 1.000000e+00 : f32
    %224 = vector.broadcast %cst_69 : f32 to vector<8x128xf32>
    %225 = arith.subf %224, %218 : vector<8x128xf32>
    %226 = arith.mulf %225, %223 : vector<8x128xf32>
    %227 = arith.mulf %218, %192 : vector<8x128xf32>
    %228 = arith.addf %226, %227 : vector<8x128xf32>
    %c0_70 = arith.constant 0 : index
    %229 = arith.index_cast %c5_i32 : i32 to index
    %c0_71 = arith.constant 0 : index
    %c0_72 = arith.constant 0 : index
    %230 = vector.load %arg6[%c0_70, %229, %c0_71, %c0_72] : memref<1x10x8x128xf32, #tpu.memory_space<vmem>>, vector<1x1x8x128xf32>
    %231 = vector.shape_cast %230 : vector<1x1x8x128xf32> to vector<8x128xf32>
    %232 = vector.shape_cast %228 : vector<8x128xf32> to vector<1x1x8x128xf32>
    tpu.vector_store %arg6[%c0_70, %229, %c0_71, %c0_72], %232 {strides = array<i32>} : memref<1x10x8x128xf32, #tpu.memory_space<vmem>>, vector<1x1x8x128xf32>,
    %c6_i32 = arith.constant 6 : i32
    %cst_73 = arith.constant dense<0.000000e+00> : vector<8x384xf32>
    %233 = tpu.matmul %228, %13, %cst_73 {dimension_numbers = #tpu.dot_dimension_numbers<[1], [0], [0], [1], [0, 0, 1, 1], [], []>} : vector<8x128xf32>, vector<128x384xf32>, vector<8x384xf32> -> vector<8x384xf32>
    %234 = vector.broadcast %15 : vector<1x384xf32> to vector<8x384xf32>
    %235 = arith.addf %233, %234 : vector<8x384xf32>
    %236 = arith.index_cast %c6_i32 : i32 to index
    %c0_74 = arith.constant 0 : index
    %c0_75 = arith.constant 0 : index
    %237 = vector.load %arg7[%236, %c0_74, %c0_75] : memref<10x8x384xf32, #tpu.memory_space<vmem>>, vector<1x8x384xf32>
    %238 = vector.shape_cast %237 : vector<1x8x384xf32> to vector<8x384xf32>
    %239 = vector.extract_strided_slice %238 {offsets = [0, 0], sizes = [8, 128], strides = [1, 1]} : vector<8x384xf32> to vector<8x128xf32>
    %240 = vector.extract_strided_slice %235 {offsets = [0, 0], sizes = [8, 128], strides = [1, 1]} : vector<8x384xf32> to vector<8x128xf32>
    %241 = arith.addf %239, %240 : vector<8x128xf32>
    %242 = arith.negf %241 : vector<8x128xf32>
    %243 = math.exp %242 : vector<8x128xf32>
    %cst_76 = arith.constant 1.000000e+00 : f32
    %244 = vector.broadcast %cst_76 : f32 to vector<8x128xf32>
    %245 = arith.addf %244, %243 : vector<8x128xf32>
    %246 = arith.divf %244, %245 : vector<8x128xf32>
    %247 = vector.extract_strided_slice %238 {offsets = [0, 128], sizes = [8, 128], strides = [1, 1]} : vector<8x384xf32> to vector<8x128xf32>
    %248 = vector.extract_strided_slice %235 {offsets = [0, 128], sizes = [8, 128], strides = [1, 1]} : vector<8x384xf32> to vector<8x128xf32>
    %249 = arith.addf %247, %248 : vector<8x128xf32>
    %250 = arith.negf %249 : vector<8x128xf32>
    %251 = math.exp %250 : vector<8x128xf32>
    %cst_77 = arith.constant 1.000000e+00 : f32
    %252 = vector.broadcast %cst_77 : f32 to vector<8x128xf32>
    %253 = arith.addf %252, %251 : vector<8x128xf32>
    %254 = arith.divf %252, %253 : vector<8x128xf32>
    %255 = vector.extract_strided_slice %238 {offsets = [0, 256], sizes = [8, 128], strides = [1, 1]} : vector<8x384xf32> to vector<8x128xf32>
    %256 = vector.extract_strided_slice %235 {offsets = [0, 256], sizes = [8, 128], strides = [1, 1]} : vector<8x384xf32> to vector<8x128xf32>
    %257 = arith.mulf %246, %256 : vector<8x128xf32>
    %258 = arith.addf %255, %257 : vector<8x128xf32>
    %259 = math.tanh %258 : vector<8x128xf32>
    %cst_78 = arith.constant 1.000000e+00 : f32
    %260 = vector.broadcast %cst_78 : f32 to vector<8x128xf32>
    %261 = arith.subf %260, %254 : vector<8x128xf32>
    %262 = arith.mulf %261, %259 : vector<8x128xf32>
    %263 = arith.mulf %254, %228 : vector<8x128xf32>
    %264 = arith.addf %262, %263 : vector<8x128xf32>
    %c0_79 = arith.constant 0 : index
    %265 = arith.index_cast %c6_i32 : i32 to index
    %c0_80 = arith.constant 0 : index
    %c0_81 = arith.constant 0 : index
    %266 = vector.load %arg6[%c0_79, %265, %c0_80, %c0_81] : memref<1x10x8x128xf32, #tpu.memory_space<vmem>>, vector<1x1x8x128xf32>
    %267 = vector.shape_cast %266 : vector<1x1x8x128xf32> to vector<8x128xf32>
    %268 = vector.shape_cast %264 : vector<8x128xf32> to vector<1x1x8x128xf32>
    tpu.vector_store %arg6[%c0_79, %265, %c0_80, %c0_81], %268 {strides = array<i32>} : memref<1x10x8x128xf32, #tpu.memory_space<vmem>>, vector<1x1x8x128xf32>,
    %c7_i32 = arith.constant 7 : i32
    %cst_82 = arith.constant dense<0.000000e+00> : vector<8x384xf32>
    %269 = tpu.matmul %264, %13, %cst_82 {dimension_numbers = #tpu.dot_dimension_numbers<[1], [0], [0], [1], [0, 0, 1, 1], [], []>} : vector<8x128xf32>, vector<128x384xf32>, vector<8x384xf32> -> vector<8x384xf32>
    %270 = vector.broadcast %15 : vector<1x384xf32> to vector<8x384xf32>
    %271 = arith.addf %269, %270 : vector<8x384xf32>
    %272 = arith.index_cast %c7_i32 : i32 to index
    %c0_83 = arith.constant 0 : index
    %c0_84 = arith.constant 0 : index
    %273 = vector.load %arg7[%272, %c0_83, %c0_84] : memref<10x8x384xf32, #tpu.memory_space<vmem>>, vector<1x8x384xf32>
    %274 = vector.shape_cast %273 : vector<1x8x384xf32> to vector<8x384xf32>
    %275 = vector.extract_strided_slice %274 {offsets = [0, 0], sizes = [8, 128], strides = [1, 1]} : vector<8x384xf32> to vector<8x128xf32>
    %276 = vector.extract_strided_slice %271 {offsets = [0, 0], sizes = [8, 128], strides = [1, 1]} : vector<8x384xf32> to vector<8x128xf32>
    %277 = arith.addf %275, %276 : vector<8x128xf32>
    %278 = arith.negf %277 : vector<8x128xf32>
    %279 = math.exp %278 : vector<8x128xf32>
    %cst_85 = arith.constant 1.000000e+00 : f32
    %280 = vector.broadcast %cst_85 : f32 to vector<8x128xf32>
    %281 = arith.addf %280, %279 : vector<8x128xf32>
    %282 = arith.divf %280, %281 : vector<8x128xf32>
    %283 = vector.extract_strided_slice %274 {offsets = [0, 128], sizes = [8, 128], strides = [1, 1]} : vector<8x384xf32> to vector<8x128xf32>
    %284 = vector.extract_strided_slice %271 {offsets = [0, 128], sizes = [8, 128], strides = [1, 1]} : vector<8x384xf32> to vector<8x128xf32>
    %285 = arith.addf %283, %284 : vector<8x128xf32>
    %286 = arith.negf %285 : vector<8x128xf32>
    %287 = math.exp %286 : vector<8x128xf32>
    %cst_86 = arith.constant 1.000000e+00 : f32
    %288 = vector.broadcast %cst_86 : f32 to vector<8x128xf32>
    %289 = arith.addf %288, %287 : vector<8x128xf32>
    %290 = arith.divf %288, %289 : vector<8x128xf32>
    %291 = vector.extract_strided_slice %274 {offsets = [0, 256], sizes = [8, 128], strides = [1, 1]} : vector<8x384xf32> to vector<8x128xf32>
    %292 = vector.extract_strided_slice %271 {offsets = [0, 256], sizes = [8, 128], strides = [1, 1]} : vector<8x384xf32> to vector<8x128xf32>
    %293 = arith.mulf %282, %292 : vector<8x128xf32>
    %294 = arith.addf %291, %293 : vector<8x128xf32>
    %295 = math.tanh %294 : vector<8x128xf32>
    %cst_87 = arith.constant 1.000000e+00 : f32
    %296 = vector.broadcast %cst_87 : f32 to vector<8x128xf32>
    %297 = arith.subf %296, %290 : vector<8x128xf32>
    %298 = arith.mulf %297, %295 : vector<8x128xf32>
    %299 = arith.mulf %290, %264 : vector<8x128xf32>
    %300 = arith.addf %298, %299 : vector<8x128xf32>
    %c0_88 = arith.constant 0 : index
    %301 = arith.index_cast %c7_i32 : i32 to index
    %c0_89 = arith.constant 0 : index
    %c0_90 = arith.constant 0 : index
    %302 = vector.load %arg6[%c0_88, %301, %c0_89, %c0_90] : memref<1x10x8x128xf32, #tpu.memory_space<vmem>>, vector<1x1x8x128xf32>
    %303 = vector.shape_cast %302 : vector<1x1x8x128xf32> to vector<8x128xf32>
    %304 = vector.shape_cast %300 : vector<8x128xf32> to vector<1x1x8x128xf32>
    tpu.vector_store %arg6[%c0_88, %301, %c0_89, %c0_90], %304 {strides = array<i32>} : memref<1x10x8x128xf32, #tpu.memory_space<vmem>>, vector<1x1x8x128xf32>,
    %c8_i32 = arith.constant 8 : i32
    %cst_91 = arith.constant dense<0.000000e+00> : vector<8x384xf32>
    %305 = tpu.matmul %300, %13, %cst_91 {dimension_numbers = #tpu.dot_dimension_numbers<[1], [0], [0], [1], [0, 0, 1, 1], [], []>} : vector<8x128xf32>, vector<128x384xf32>, vector<8x384xf32> -> vector<8x384xf32>
    %306 = vector.broadcast %15 : vector<1x384xf32> to vector<8x384xf32>
    %307 = arith.addf %305, %306 : vector<8x384xf32>
    %308 = arith.index_cast %c8_i32 : i32 to index
    %c0_92 = arith.constant 0 : index
    %c0_93 = arith.constant 0 : index
    %309 = vector.load %arg7[%308, %c0_92, %c0_93] : memref<10x8x384xf32, #tpu.memory_space<vmem>>, vector<1x8x384xf32>
    %310 = vector.shape_cast %309 : vector<1x8x384xf32> to vector<8x384xf32>
    %311 = vector.extract_strided_slice %310 {offsets = [0, 0], sizes = [8, 128], strides = [1, 1]} : vector<8x384xf32> to vector<8x128xf32>
    %312 = vector.extract_strided_slice %307 {offsets = [0, 0], sizes = [8, 128], strides = [1, 1]} : vector<8x384xf32> to vector<8x128xf32>
    %313 = arith.addf %311, %312 : vector<8x128xf32>
    %314 = arith.negf %313 : vector<8x128xf32>
    %315 = math.exp %314 : vector<8x128xf32>
    %cst_94 = arith.constant 1.000000e+00 : f32
    %316 = vector.broadcast %cst_94 : f32 to vector<8x128xf32>
    %317 = arith.addf %316, %315 : vector<8x128xf32>
    %318 = arith.divf %316, %317 : vector<8x128xf32>
    %319 = vector.extract_strided_slice %310 {offsets = [0, 128], sizes = [8, 128], strides = [1, 1]} : vector<8x384xf32> to vector<8x128xf32>
    %320 = vector.extract_strided_slice %307 {offsets = [0, 128], sizes = [8, 128], strides = [1, 1]} : vector<8x384xf32> to vector<8x128xf32>
    %321 = arith.addf %319, %320 : vector<8x128xf32>
    %322 = arith.negf %321 : vector<8x128xf32>
    %323 = math.exp %322 : vector<8x128xf32>
    %cst_95 = arith.constant 1.000000e+00 : f32
    %324 = vector.broadcast %cst_95 : f32 to vector<8x128xf32>
    %325 = arith.addf %324, %323 : vector<8x128xf32>
    %326 = arith.divf %324, %325 : vector<8x128xf32>
    %327 = vector.extract_strided_slice %310 {offsets = [0, 256], sizes = [8, 128], strides = [1, 1]} : vector<8x384xf32> to vector<8x128xf32>
    %328 = vector.extract_strided_slice %307 {offsets = [0, 256], sizes = [8, 128], strides = [1, 1]} : vector<8x384xf32> to vector<8x128xf32>
    %329 = arith.mulf %318, %328 : vector<8x128xf32>
    %330 = arith.addf %327, %329 : vector<8x128xf32>
    %331 = math.tanh %330 : vector<8x128xf32>
    %cst_96 = arith.constant 1.000000e+00 : f32
    %332 = vector.broadcast %cst_96 : f32 to vector<8x128xf32>
    %333 = arith.subf %332, %326 : vector<8x128xf32>
    %334 = arith.mulf %333, %331 : vector<8x128xf32>
    %335 = arith.mulf %326, %300 : vector<8x128xf32>
    %336 = arith.addf %334, %335 : vector<8x128xf32>
    %c0_97 = arith.constant 0 : index
    %337 = arith.index_cast %c8_i32 : i32 to index
    %c0_98 = arith.constant 0 : index
    %c0_99 = arith.constant 0 : index
    %338 = vector.load %arg6[%c0_97, %337, %c0_98, %c0_99] : memref<1x10x8x128xf32, #tpu.memory_space<vmem>>, vector<1x1x8x128xf32>
    %339 = vector.shape_cast %338 : vector<1x1x8x128xf32> to vector<8x128xf32>
    %340 = vector.shape_cast %336 : vector<8x128xf32> to vector<1x1x8x128xf32>
    tpu.vector_store %arg6[%c0_97, %337, %c0_98, %c0_99], %340 {strides = array<i32>} : memref<1x10x8x128xf32, #tpu.memory_space<vmem>>, vector<1x1x8x128xf32>,
    %c9_i32 = arith.constant 9 : i32
    %cst_100 = arith.constant dense<0.000000e+00> : vector<8x384xf32>
    %341 = tpu.matmul %336, %13, %cst_100 {dimension_numbers = #tpu.dot_dimension_numbers<[1], [0], [0], [1], [0, 0, 1, 1], [], []>} : vector<8x128xf32>, vector<128x384xf32>, vector<8x384xf32> -> vector<8x384xf32>
    %342 = vector.broadcast %15 : vector<1x384xf32> to vector<8x384xf32>
    %343 = arith.addf %341, %342 : vector<8x384xf32>
    %344 = arith.index_cast %c9_i32 : i32 to index
    %c0_101 = arith.constant 0 : index
    %c0_102 = arith.constant 0 : index
    %345 = vector.load %arg7[%344, %c0_101, %c0_102] : memref<10x8x384xf32, #tpu.memory_space<vmem>>, vector<1x8x384xf32>
    %346 = vector.shape_cast %345 : vector<1x8x384xf32> to vector<8x384xf32>
    %347 = vector.extract_strided_slice %346 {offsets = [0, 0], sizes = [8, 128], strides = [1, 1]} : vector<8x384xf32> to vector<8x128xf32>
    %348 = vector.extract_strided_slice %343 {offsets = [0, 0], sizes = [8, 128], strides = [1, 1]} : vector<8x384xf32> to vector<8x128xf32>
    %349 = arith.addf %347, %348 : vector<8x128xf32>
    %350 = arith.negf %349 : vector<8x128xf32>
    %351 = math.exp %350 : vector<8x128xf32>
    %cst_103 = arith.constant 1.000000e+00 : f32
    %352 = vector.broadcast %cst_103 : f32 to vector<8x128xf32>
    %353 = arith.addf %352, %351 : vector<8x128xf32>
    %354 = arith.divf %352, %353 : vector<8x128xf32>
    %355 = vector.extract_strided_slice %346 {offsets = [0, 128], sizes = [8, 128], strides = [1, 1]} : vector<8x384xf32> to vector<8x128xf32>
    %356 = vector.extract_strided_slice %343 {offsets = [0, 128], sizes = [8, 128], strides = [1, 1]} : vector<8x384xf32> to vector<8x128xf32>
    %357 = arith.addf %355, %356 : vector<8x128xf32>
    %358 = arith.negf %357 : vector<8x128xf32>
    %359 = math.exp %358 : vector<8x128xf32>
    %cst_104 = arith.constant 1.000000e+00 : f32
    %360 = vector.broadcast %cst_104 : f32 to vector<8x128xf32>
    %361 = arith.addf %360, %359 : vector<8x128xf32>
    %362 = arith.divf %360, %361 : vector<8x128xf32>
    %363 = vector.extract_strided_slice %346 {offsets = [0, 256], sizes = [8, 128], strides = [1, 1]} : vector<8x384xf32> to vector<8x128xf32>
    %364 = vector.extract_strided_slice %343 {offsets = [0, 256], sizes = [8, 128], strides = [1, 1]} : vector<8x384xf32> to vector<8x128xf32>
    %365 = arith.mulf %354, %364 : vector<8x128xf32>
    %366 = arith.addf %363, %365 : vector<8x128xf32>
    %367 = math.tanh %366 : vector<8x128xf32>
    %cst_105 = arith.constant 1.000000e+00 : f32
    %368 = vector.broadcast %cst_105 : f32 to vector<8x128xf32>
    %369 = arith.subf %368, %362 : vector<8x128xf32>
    %370 = arith.mulf %369, %367 : vector<8x128xf32>
    %371 = arith.mulf %362, %336 : vector<8x128xf32>
    %372 = arith.addf %370, %371 : vector<8x128xf32>
    %c0_106 = arith.constant 0 : index
    %373 = arith.index_cast %c9_i32 : i32 to index
    %c0_107 = arith.constant 0 : index
    %c0_108 = arith.constant 0 : index
    %374 = vector.load %arg6[%c0_106, %373, %c0_107, %c0_108] : memref<1x10x8x128xf32, #tpu.memory_space<vmem>>, vector<1x1x8x128xf32>
    %375 = vector.shape_cast %374 : vector<1x1x8x128xf32> to vector<8x128xf32>
    %376 = vector.shape_cast %372 : vector<8x128xf32> to vector<1x1x8x128xf32>
    tpu.vector_store %arg6[%c0_106, %373, %c0_107, %c0_108], %376 {strides = array<i32>} : memref<1x10x8x128xf32, #tpu.memory_space<vmem>>, vector<1x1x8x128xf32>,
    %c10_i32 = arith.constant 10 : i32
    return
  }
  func.func @transform_0(%arg0: i32) -> (i32, i32, i32, i32) {
    %c0_i32 = arith.constant 0 : i32
    %c0_i32_0 = arith.constant 0 : i32
    %c0_i32_1 = arith.constant 0 : i32
    %c0_i32_2 = arith.constant 0 : i32
    return %arg0, %c0_i32, %c0_i32_0, %c0_i32_1 : i32, i32, i32, i32
  }
  func.func @transform_1(%arg0: i32) -> (i32, i32) {
    %c0_i32 = arith.constant 0 : i32
    %c0_i32_0 = arith.constant 0 : i32
    %c0_i32_1 = arith.constant 0 : i32
    return %c0_i32, %c0_i32_0 : i32, i32
  }
  func.func @transform_2(%arg0: i32) -> (i32, i32, i32) {
    %c0_i32 = arith.constant 0 : i32
    %c0_i32_0 = arith.constant 0 : i32
    %c0_i32_1 = arith.constant 0 : i32
    return %arg0, %c0_i32, %c0_i32_0 : i32, i32, i32
  }
  func.func @transform_3(%arg0: i32) -> (i32, i32, i32) {
    %c0_i32 = arith.constant 0 : i32
    %c0_i32_0 = arith.constant 0 : i32
    %c0_i32_1 = arith.constant 0 : i32
    return %arg0, %c0_i32, %c0_i32_0 : i32, i32, i32
  }
  func.func @transform_4(%arg0: i32) -> (i32, i32, i32) {
    %c0_i32 = arith.constant 0 : i32
    %c0_i32_0 = arith.constant 0 : i32
    %c0_i32_1 = arith.constant 0 : i32
    return %arg0, %c0_i32, %c0_i32_0 : i32, i32, i32
  }
  func.func @transform_5(%arg0: i32) -> (i32, i32, i32, i32) {
    %c0_i32 = arith.constant 0 : i32
    %c0_i32_0 = arith.constant 0 : i32
    %c0_i32_1 = arith.constant 0 : i32
    %c0_i32_2 = arith.constant 0 : i32
    return %arg0, %c0_i32, %c0_i32_0, %c0_i32_1 : i32, i32, i32, i32
  }
}

</mosaic_0001>

<bundles_post_ra>
// kernel: forward.2
= control target key start
LH: loop header
LB: loop body
LE: loop exit
PB: predicated region body
PF: predicated region fallthrough
CT: control target
= control target key end

     0   :  { %s2971_s3 = inlined_call_operand.vmem [shape: f32[128,384], index: 3, kind: input, shape index: {}]   ;;  %s2972_s2 = inlined_call_operand.vmem [shape: f32[128,384], index: 2, kind: input, shape index: {}]   ;;  %s2973_s1 = inlined_call_operand.vmem [shape: f32[8,128], index: 1, kind: input, shape index: {}]   ;;  %s2974_s0 = inlined_call_operand.vmem [shape: f32[10,8,128], index: 0, kind: input, shape index: {}]   ;;  %s2975_s4 = inlined_call_operand.vmem [shape: f32[8,384], index: 4, kind: input, shape index: {}]   ;;  %s2976_s5 = inlined_call_operand.vmem [shape: f32[8,128], index: 5, kind: output, shape index: {}]  }
   0x1   :  { %v1631_v0 = vld [vmem:[%s2971_s3 + $0x168] sm:$0xff]  ;;  %v1636_v1 = vld [vmem:[%s2971_s3 + $0x150] sm:$0xff]  ;;  %v1642_v2 = vld [vmem:[%s2971_s3 + $0x138] sm:$0xff] }
   0x2   :  { %315 = vmatpush.msra.mxu3 %v1631_v0  ;;  %v1648_v3 = vld [vmem:[%s2971_s3 + $0x120] sm:$0xff]  ;;  %v75_v4 = vld [vmem:[%s2972_s2 + $0x168] sm:$0xff]  ;;  %v72_v5 = vld [vmem:[%s2972_s2 + $0x150] sm:$0xff] }
   0x3   :  { %86 = vmatpush.msra.mxu0 %v75_v4  ;;  %v1660_v6 = vld [vmem:[%s2971_s3 + $0x108] sm:$0xff]  ;;  %v69_v7 = vld [vmem:[%s2972_s2 + $0x138] sm:$0xff]  ;;  %v1669_v8 = vld [vmem:[%s2971_s3 + $0xf0] sm:$0xff] }
   0x4   :  { %316 = vmatpush.msra.mxu3 %v1636_v1  ;;  %v66_v9 = vld [vmem:[%s2972_s2 + $0x120] sm:$0xff]  ;;  %v76_v10 = vld [vmem:[%s2972_s2 + $0x170] sm:$0xff]  ;;  %v73_v11 = vld [vmem:[%s2972_s2 + $0x158] sm:$0xff] }
   0x5   :  { %87 = vmatpush.msra.mxu0 %v72_v5  ;;  %v1684_v12 = vld [vmem:[%s2971_s3 + $0xd8] sm:$0xff]  ;;  %v63_v13 = vld [vmem:[%s2972_s2 + $0x108] sm:$0xff]  ;;  %133 = vmatpush.msra.mxu1 %v76_v10  ;;  %v70_v14 = vld [vmem:[%s2972_s2 + $0x140] sm:$0xff] }
   0x6   :  { %317 = vmatpush.msra.mxu3 %v1642_v2  ;;  %v1696_v15 = vld [vmem:[%s2971_s3 + $0xc0] sm:$0xff]  ;;  %v60_v16 = vld [vmem:[%s2972_s2 + $0xf0] sm:$0xff]  ;;  %v67_v17 = vld [vmem:[%s2972_s2 + $0x128] sm:$0xff] }
   0x7   :  { %88 = vmatpush.msra.mxu0 %v69_v7  ;;  %134 = vmatpush.msra.mxu1 %v73_v11  ;;  %v1708_v18 = vld [vmem:[%s2971_s3 + $0xa8] sm:$0xff]  ;;  %v57_v19 = vld [vmem:[%s2972_s2 + $0xd8] sm:$0xff]  ;;  %v64_v20 = vld [vmem:[%s2972_s2 + $0x110] sm:$0xff] }
   0x8   :  { %318 = vmatpush.msra.mxu3 %v1648_v3  ;;  %v1720_v21 = vld [vmem:[%s2971_s3 + $0x90] sm:$0xff]  ;;  %v54_v22 = vld [vmem:[%s2972_s2 + $0xc0] sm:$0xff]  ;;  %v61_v23 = vld [vmem:[%s2972_s2 + $0xf8] sm:$0xff] }
   0x9   :  { %89 = vmatpush.msra.mxu0 %v66_v9  ;;  %135 = vmatpush.msra.mxu1 %v70_v14  ;;  %v1732_v24 = vld [vmem:[%s2971_s3 + $0x78] sm:$0xff]  ;;  %v51_v25 = vld [vmem:[%s2972_s2 + $0xa8] sm:$0xff]  ;;  %v58_v26 = vld [vmem:[%s2972_s2 + $0xe0] sm:$0xff] }
   0xa   :  { %319 = vmatpush.msra.mxu3 %v1660_v6  ;;  %v1744_v27 = vld [vmem:[%s2971_s3 + $0x60] sm:$0xff]  ;;  %v48_v28 = vld [vmem:[%s2972_s2 + $0x90] sm:$0xff]  ;;  %v55_v29 = vld [vmem:[%s2972_s2 + $0xc8] sm:$0xff] }
   0xb   :  { %90 = vmatpush.msra.mxu0 %v63_v13  ;;  %136 = vmatpush.msra.mxu1 %v67_v17  ;;  %v1756_v30 = vld [vmem:[%s2971_s3 + $0x48] sm:$0xff]  ;;  %v45_v31 = vld [vmem:[%s2972_s2 + $0x78] sm:$0xff]  ;;  %v52_v32 = vld [vmem:[%s2972_s2 + $0xb0] sm:$0xff] }
   0xc   :  { %320 = vmatpush.msra.mxu3 %v1669_v8  ;;  %v1768_v33 = vld [vmem:[%s2971_s3 + $0x30] sm:$0xff]  ;;  %v42_v34 = vld [vmem:[%s2972_s2 + $0x60] sm:$0xff]  ;;  %v49_v35 = vld [vmem:[%s2972_s2 + $0x98] sm:$0xff] }
   0xd   :  { %91 = vmatpush.msra.mxu0 %v60_v16  ;;  %137 = vmatpush.msra.mxu1 %v64_v20  ;;  %3022 = vst [vmem:[#allocation3_spill] sm:$0xff] %v1768_v33  ;;  %v1780_v36 = vld [vmem:[%s2971_s3 + $0x18] sm:$0xff]  ;;  %v39_v37 = vld [vmem:[%s2972_s2 + $0x48] sm:$0xff]  ;;  %v46_v38 = vld [vmem:[%s2972_s2 + $0x80] sm:$0xff] }
   0xe   :  { %321 = vmatpush.msra.mxu3 %v1684_v12  ;;  %3023 = vst [vmem:[#allocation4_spill] sm:$0xff] %v1780_v36  ;;  %v1792_v39 = vld [vmem:[%s2971_s3] sm:$0xff]  ;;  %v36_v40 = vld [vmem:[%s2972_s2 + $0x30] sm:$0xff]  ;;  %v43_v42 = vld [vmem:[%s2972_s2 + $0x68] sm:$0xff] }
   0xf   :  { %92 = vmatpush.msra.mxu0 %v57_v19  ;;  %138 = vmatpush.msra.mxu1 %v61_v23  ;;  %3024 = vst [vmem:[#allocation5_spill] sm:$0xff] %v1792_v39  ;;  %v1801_v41 = vld [vmem:[%s2971_s3 + $0x170] sm:$0xff]  ;;  %v1809_v43 = vld [vmem:[%s2973_s1] sm:$0xff]  ;;  %v33_v44 = vld [vmem:[%s2972_s2 + $0x18] sm:$0xff] }
  0x10   :  { %322 = vmatpush.msra.mxu3 %v1696_v15  ;;  %v1818_v45 = vld [vmem:[%s2971_s3 + $0x158] sm:$0xff]  ;;  %v40_v46 = vld [vmem:[%s2972_s2 + $0x50] sm:$0xff]  ;;  %v30_v47 = vld [vmem:[%s2972_s2] sm:$0xff] }
  0x11   :  { %93 = vmatpush.msra.mxu0 %v54_v22  ;;  %139 = vmatpush.msra.mxu1 %v58_v26  ;;  %v77_v48 = vld [vmem:[%s2972_s2 + $0x178] sm:$0xff]  ;;  %v1833_v49 = vld [vmem:[%s2971_s3 + $0x140] sm:$0xff]  ;;  %v1851_v53 = vld [vmem:[%s2971_s3 + $0x128] sm:$0xff] }
  0x12   :  { %323 = vmatpush.msra.mxu3 %v1708_v18  ;;  %v1839_v50 = vld [vmem:[%s2974_s0] sm:$0xff]  ;;  %v37_v51 = vld [vmem:[%s2972_s2 + $0x38] sm:$0xff]  ;;  %180 = vmatpush.msra.mxu2 %v77_v48  ;;  %v71_v55 = vld [vmem:[%s2972_s2 + $0x148] sm:$0xff] }
  0x13   :  { %94 = vmatpush.msra.mxu0 %v51_v25  ;;  %140 = vmatpush.msra.mxu1 %v55_v29  ;;  %v74_v52 = vld [vmem:[%s2972_s2 + $0x160] sm:$0xff]  ;;  %v1864_v56 = vld [vmem:[%s2971_s3 + $0x110] sm:$0xff]  ;;  %v31_v57 = vld [vmem:[%s2972_s2 + $0x8] sm:$0xff] }
  0x14   :  { %324 = vmatpush.msra.mxu3 %v1720_v21  ;;  %v34_v54 = vld [vmem:[%s2972_s2 + $0x20] sm:$0xff]  ;;  %181 = vmatpush.msra.mxu2 %v74_v52  ;;  %v68_v58 = vld [vmem:[%s2972_s2 + $0x130] sm:$0xff]  ;;  %v1877_v59 = vld [vmem:[%s2971_s3 + $0xf8] sm:$0xff] }
  0x15   :  { %95 = vmatpush.msra.mxu0 %v48_v28  ;;  %141 = vmatpush.msra.mxu1 %v52_v32  ;;  %v65_v60 = vld [vmem:[%s2972_s2 + $0x118] sm:$0xff]  ;;  %v1887_v61 = vld [vmem:[%s2971_s3 + $0xe0] sm:$0xff]  ;;  %v1897_v63 = vld [vmem:[%s2971_s3 + $0xc8] sm:$0xff] }
  0x16   :  { %325 = vmatpush.msra.mxu3 %v1732_v24  ;;  %182 = vmatpush.msra.mxu2 %v71_v55  ;;  %v62_v62 = vld [vmem:[%s2972_s2 + $0x100] sm:$0xff]  ;;  %v59_v4 = vld [vmem:[%s2972_s2 + $0xe8] sm:$0xff]  ;;  %v1908_v5 = vld [vmem:[%s2971_s3 + $0xb0] sm:$0xff] }
  0x17   :  { %96 = vmatpush.msra.mxu0 %v45_v31  ;;  %142 = vmatpush.msra.mxu1 %v49_v35  ;;  %v56_v7 = vld [vmem:[%s2972_s2 + $0xd0] sm:$0xff]  ;;  %v1919_v9 = vld [vmem:[%s2971_s3 + $0x98] sm:$0xff]  ;;  %v1930_v11 = vld [vmem:[%s2971_s3 + $0x80] sm:$0xff] }
  0x18   :  { %326 = vmatpush.msra.mxu3 %v1744_v27  ;;  %183 = vmatpush.msra.mxu2 %v68_v58  ;;  %v53_v10 = vld [vmem:[%s2972_s2 + $0xb8] sm:$0xff]  ;;  %v50_v13 = vld [vmem:[%s2972_s2 + $0xa0] sm:$0xff]  ;;  %v1941_v14 = vld [vmem:[%s2971_s3 + $0x68] sm:$0xff] }
  0x19   :  { %97 = vmatpush.msra.mxu0 %v42_v34  ;;  %143 = vmatpush.msra.mxu1 %v46_v38  ;;  %v47_v16 = vld [vmem:[%s2972_s2 + $0x88] sm:$0xff]  ;;  %v1952_v17 = vld [vmem:[%s2971_s3 + $0x50] sm:$0xff]  ;;  %v1963_v20 = vld [vmem:[%s2971_s3 + $0x38] sm:$0xff] }
  0x1a   :  { %327 = vmatpush.msra.mxu3 %v1756_v30  ;;  %184 = vmatpush.msra.mxu2 %v65_v60  ;;  %v44_v19 = vld [vmem:[%s2972_s2 + $0x70] sm:$0xff]  ;;  %3025 = vst [vmem:[#allocation6_spill] sm:$0xff] %v1963_v20  ;;  %v41_v22 = vld [vmem:[%s2972_s2 + $0x58] sm:$0xff]  ;;  %v1974_v23 = vld [vmem:[%s2971_s3 + $0x20] sm:$0xff] }
  0x1b   :  { %98 = vmatpush.msra.mxu0 %v39_v37  ;;  %144 = vmatpush.msra.mxu1 %v43_v42  ;;  %3026 = vst [vmem:[#allocation7_spill] sm:$0xff] %v1974_v23  ;;  %v38_v25 = vld [vmem:[%s2972_s2 + $0x40] sm:$0xff]  ;;  %v1985_v26 = vld [vmem:[%s2971_s3 + $0x8] sm:$0xff]  ;;  %v1996_v29 = vld [vmem:[%s2971_s3 + $0x178] sm:$0xff] }
  0x1c   :  { %328 = vmatpush.msra.mxu3 %v1768_v33  ;;  %185 = vmatpush.msra.mxu2 %v62_v62  ;;  %3027 = vst [vmem:[#allocation8_spill] sm:$0xff] %v1985_v26  ;;  %v35_v28 = vld [vmem:[%s2972_s2 + $0x28] sm:$0xff]  ;;  %v2005_v31 = vld [vmem:[%s2971_s3 + $0x160] sm:$0xff]  ;;  %v32_v32 = vld [vmem:[%s2972_s2 + $0x10] sm:$0xff] }
  0x1d   :  { %99 = vmatpush.msra.mxu0 %v36_v40  ;;  %145 = vmatpush.msra.mxu1 %v40_v46  ;;  %v21_v34 = vld [vmem:[%s2974_s0 + $0x8] sm:$0xff]  ;;  %v2024_v37 = vld [vmem:[%s2971_s3 + $0x130] sm:$0xff]  ;;  %v2033_v38 = vld [vmem:[%s2971_s3 + $0x118] sm:$0xff] }
  0x1e   :  { %329 = vmatpush.msra.mxu3 %v1780_v36  ;;  %186 = vmatpush.msra.mxu2 %v59_v4  ;;  %v2017_v35 = vld [vmem:[%s2971_s3 + $0x148] sm:$0xff]  ;;  %v22_v40 = vld [vmem:[%s2974_s0 + $0x10] sm:$0xff]  ;;  %v2045_v42 = vld [vmem:[%s2971_s3 + $0x100] sm:$0xff] }
  0x1f   :  { %100 = vmatpush.msra.mxu0 %v33_v44  ;;  %146 = vmatpush.msra.mxu1 %v37_v51  ;;  %v2053_v44 = vld [vmem:[%s2971_s3 + $0xe8] sm:$0xff]  ;;  %v2060_v46 = vld [vmem:[%s2971_s3 + $0xd0] sm:$0xff]  ;;  %v2078_v48 = vld [vmem:[%s2971_s3 + $0xa0] sm:$0xff] }
  0x20   :  { %330 = vmatpush.msra.mxu3 %v1792_v39  ;;  %187 = vmatpush.msra.mxu2 %v56_v7  ;;  %v2095_v51 = vld [vmem:[%s2971_s3 + $0x70] sm:$0xff]  ;;  %v2104_v52 = vld [vmem:[%s2971_s3 + $0x58] sm:$0xff]  ;;  %v2122_v55 = vld [vmem:[%s2971_s3 + $0x28] sm:$0xff] }
  0x21   :  { %331 = vmatmul.f32.vlgmr.msra.gmra.mxu3 %v1809_v43  ;;  %101 = vmatpush.msra.mxu0 %v30_v47  ;;  %v2069_v47 = vld [vmem:[%s2971_s3 + $0xb8] sm:$0xff]  ;;  %3028 = vst [vmem:[#allocation9_spill] sm:$0xff] %v2122_v55  ;;  %v24_v60 = vld [vmem:[%s2974_s0 + $0x20] sm:$0xff] }
  0x22   :  { %335 = vmatpush.msrb.mxu3 %v1801_v41  ;;  %102 = vmatmul.f32.vlgmr.msra.gmra.mxu0 %v1839_v50  ;;  %v23_v58 = vld [vmem:[%s2974_s0 + $0x18] sm:$0xff]  ;;  %v78_v62 = vld [vmem:[%s2975_s4] ss:$8 sm:$0x7] }
  0x23   :  { %425 = vmatpush.msrb.mxu0 %v1631_v0  ;;  %147 = vmatpush.msra.mxu1 %v34_v54  ;;  %v2113_v54 = vld [vmem:[%s2971_s3 + $0x40] sm:$0xff]  ;;  %v2222_v7 = vperm.slane %v78_v62, 0 }
  0x24   :  { %336 = vmatpush.msrb.mxu3 %v1818_v45  ;;  %188 = vmatpush.msra.mxu2 %v53_v10  ;;  %v1429_v4 = vld [vmem:[%s2975_s4 + $0x1] ss:$8 sm:$0x7] }
  0x25   :  { %426 = vmatpush.msrb.mxu0 %v1636_v1  ;;  %148 = vmatpush.msra.mxu1 %v31_v57  ;;  %v2131_v57 = vld [vmem:[%s2971_s3 + $0x10] sm:$0xff]  ;;  %3030 = vst [vmem:[#allocation11_spill] sm:$0xff] %v2222_v7  ;;  %v2224_v10 = vperm.slane %v1429_v4, 0 }
  0x26   :  { %337 = vmatpush.msrb.mxu3 %v1833_v49  ;;  %149 = vmatmul.f32.vlgmr.msra.gmra.mxu1 %v1839_v50  ;;  %3029 = vst [vmem:[#allocation10_spill] sm:$0xff] %v2131_v57 }
  0x27   :  { %445 = vmatpush.msrb.mxu1 %v1801_v41  ;;  %427 = vmatpush.msrb.mxu0 %v1642_v2  ;;  %3031 = vst [vmem:[#allocation12_spill] sm:$0xff] %v2224_v10 }
  0x28   :  { %338 = vmatpush.msrb.mxu3 %v1851_v53  ;;  %189 = vmatpush.msra.mxu2 %v50_v13  ;;  %v25_v13 = vld [vmem:[%s2974_s0 + $0x28] sm:$0xff] }
  0x29   :  { %446 = vmatpush.msrb.mxu1 %v1818_v45  ;;  %428 = vmatpush.msrb.mxu0 %v1648_v3 }
  0x2a   :  { %339 = vmatpush.msrb.mxu3 %v1864_v56  ;;  %190 = vmatpush.msra.mxu2 %v47_v16 }
  0x2b   :  { %447 = vmatpush.msrb.mxu1 %v1833_v49  ;;  %429 = vmatpush.msrb.mxu0 %v1660_v6 }
  0x2c   :  { %340 = vmatpush.msrb.mxu3 %v1877_v59  ;;  %191 = vmatpush.msra.mxu2 %v44_v19 }
  0x2d   :  { %448 = vmatpush.msrb.mxu1 %v1851_v53  ;;  %430 = vmatpush.msrb.mxu0 %v1669_v8 }
  0x2e   :  { %341 = vmatpush.msrb.mxu3 %v1887_v61  ;;  %192 = vmatpush.msra.mxu2 %v41_v22 }
  0x2f   :  { %449 = vmatpush.msrb.mxu1 %v1864_v56  ;;  %431 = vmatpush.msrb.mxu0 %v1684_v12 }
  0x30   :  { %342 = vmatpush.msrb.mxu3 %v1897_v63  ;;  %193 = vmatpush.msra.mxu2 %v38_v25 }
  0x31   :  { %450 = vmatpush.msrb.mxu1 %v1877_v59  ;;  %432 = vmatpush.msrb.mxu0 %v1696_v15 }
  0x32   :  { %343 = vmatpush.msrb.mxu3 %v1908_v5  ;;  %194 = vmatpush.msra.mxu2 %v35_v28 }
  0x33   :  { %451 = vmatpush.msrb.mxu1 %v1887_v61  ;;  %433 = vmatpush.msrb.mxu0 %v1708_v18 }
  0x34   :  { %344 = vmatpush.msrb.mxu3 %v1919_v9  ;;  %105 = vmatmul.f32.gmra.mxu0 %v21_v34 }
  0x35   :  { %452 = vmatpush.msrb.mxu1 %v1897_v63  ;;  %434 = vmatpush.msrb.mxu0 %v1720_v21 }
  0x36   :  { %345 = vmatpush.msrb.mxu3 %v1930_v11  ;;  %195 = vmatpush.msra.mxu2 %v32_v32  ;;  %v26_v32 = vld [vmem:[%s2974_s0 + $0x30] sm:$0xff] }
  0x37   :  { %453 = vmatpush.msrb.mxu1 %v1908_v5  ;;  %435 = vmatpush.msrb.mxu0 %v1732_v24 }
  0x38   :  { %346 = vmatpush.msrb.mxu3 %v1941_v14  ;;  %152 = vmatmul.f32.gmra.mxu1 %v21_v34 }
  0x39   :  { %454 = vmatpush.msrb.mxu1 %v1919_v9  ;;  %436 = vmatpush.msrb.mxu0 %v1744_v27 }
  0x3a   :  { %347 = vmatpush.msrb.mxu3 %v1952_v17  ;;  %196 = vmatmul.f32.vlgmr.msra.gmra.mxu2 %v1839_v50  ;;  %v2087_v50 = vld [vmem:[%s2971_s3 + $0x88] sm:$0xff] }
  0x3b   :  { %465 = vmatpush.msrb.mxu2 %v1996_v29  ;;  %455 = vmatpush.msrb.mxu1 %v1930_v11 }
  0x3c   :  { %348 = vmatpush.msrb.mxu3 %v1963_v20  ;;  %437 = vmatpush.msrb.mxu0 %v1756_v30 }
  0x3d   :  { %466 = vmatpush.msrb.mxu2 %v2005_v31  ;;  %456 = vmatpush.msrb.mxu1 %v1941_v14 }
  0x3e   :  { %349 = vmatpush.msrb.mxu3 %v1974_v23  ;;  %438 = vmatpush.msrb.mxu0 %v1768_v33 }
  0x3f   :  { %467 = vmatpush.msrb.mxu2 %v2017_v35  ;;  %457 = vmatpush.msrb.mxu1 %v1952_v17 }
  0x40   :  { %350 = vmatpush.msrb.mxu3 %v1985_v26  ;;  %108 = vmatmul.f32.gmra.mxu0 %v22_v40 }
  0x41   :  { %351 = vmatmul.f32.vlgmr.msrb.gmra.mxu3 %v1809_v43  ;;  %155 = vmatmul.f32.gmra.mxu1 %v22_v40 }
  0x42   :  { %355 = vmatpush.msra.mxu3 %v1996_v29  ;;  %468 = vmatpush.msrb.mxu2 %v2024_v37 }
  0x43   :  { %199 = vmatmul.f32.gmra.mxu2 %v21_v34  ;;  %439 = vmatpush.msrb.mxu0 %v1780_v36 }
  0x44   :  { %356 = vmatpush.msra.mxu3 %v2005_v31  ;;  %469 = vmatpush.msrb.mxu2 %v2033_v38 }
  0x45   :  { %458 = vmatpush.msrb.mxu1 %v1963_v20  ;;  %440 = vmatpush.msrb.mxu0 %v1792_v39 }
  0x46   :  { %357 = vmatpush.msra.mxu3 %v2017_v35  ;;  %470 = vmatpush.msrb.mxu2 %v2045_v42 }
  0x47   :  { %459 = vmatpush.msrb.mxu1 %v1974_v23  ;;  %556 = vmatpush.msra.mxu0 %v1801_v41 }
  0x48   :  { %358 = vmatpush.msra.mxu3 %v2024_v37  ;;  %471 = vmatpush.msrb.mxu2 %v2053_v44 }
  0x49   :  { %460 = vmatpush.msrb.mxu1 %v1985_v26  ;;  %557 = vmatpush.msra.mxu0 %v1818_v45 }
  0x4a   :  { %359 = vmatpush.msra.mxu3 %v2033_v38  ;;  %472 = vmatpush.msrb.mxu2 %v2060_v46 }
  0x4b   :  { %576 = vmatpush.msra.mxu1 %v1996_v29  ;;  %202 = vmatmul.f32.gmra.mxu2 %v22_v40  ;;  %v27_v40 = vld [vmem:[%s2974_s0 + $0x38] sm:$0xff] }
  0x4c   :  { %360 = vmatpush.msra.mxu3 %v2045_v42  ;;  %473 = vmatpush.msrb.mxu2 %v2069_v47 }
  0x4d   :  { %577 = vmatpush.msra.mxu1 %v2005_v31  ;;  %558 = vmatpush.msra.mxu0 %v1833_v49 }
  0x4e   :  { %361 = vmatpush.msra.mxu3 %v2053_v44  ;;  %474 = vmatpush.msrb.mxu2 %v2078_v48 }
  0x4f   :  { %578 = vmatpush.msra.mxu1 %v2017_v35  ;;  %559 = vmatpush.msra.mxu0 %v1851_v53 }
  0x50   :  { %362 = vmatpush.msra.mxu3 %v2060_v46  ;;  %475 = vmatpush.msrb.mxu2 %v2087_v50 }
  0x51   :  { %579 = vmatpush.msra.mxu1 %v2024_v37  ;;  %560 = vmatpush.msra.mxu0 %v1864_v56 }
  0x52   :  { %363 = vmatpush.msra.mxu3 %v2069_v47  ;;  %476 = vmatpush.msrb.mxu2 %v2095_v51 }
  0x53   :  { %580 = vmatpush.msra.mxu1 %v2033_v38  ;;  %561 = vmatpush.msra.mxu0 %v1877_v59 }
  0x54   :  { %364 = vmatpush.msra.mxu3 %v2078_v48  ;;  %477 = vmatpush.msrb.mxu2 %v2104_v52 }
  0x55   :  { %581 = vmatpush.msra.mxu1 %v2045_v42  ;;  %562 = vmatpush.msra.mxu0 %v1887_v61 }
  0x56   :  { %365 = vmatpush.msra.mxu3 %v2087_v50  ;;  %478 = vmatpush.msrb.mxu2 %v2113_v54 }
  0x57   :  { %582 = vmatpush.msra.mxu1 %v2053_v44  ;;  %563 = vmatpush.msra.mxu0 %v1897_v63 }
  0x58   :  { %366 = vmatpush.msra.mxu3 %v2095_v51  ;;  %479 = vmatpush.msrb.mxu2 %v2122_v55 }
  0x59   :  { %583 = vmatpush.msra.mxu1 %v2060_v46  ;;  %564 = vmatpush.msra.mxu0 %v1908_v5 }
  0x5a   :  { %367 = vmatpush.msra.mxu3 %v2104_v52  ;;  %480 = vmatpush.msrb.mxu2 %v2131_v57 }
  0x5b   :  { %584 = vmatpush.msra.mxu1 %v2069_v47  ;;  %565 = vmatpush.msra.mxu0 %v1919_v9 }
  0x5c   :  { %368 = vmatpush.msra.mxu3 %v2113_v54  ;;  %647 = vmatpush.msra.mxu2 %v1631_v0 }
  0x5d   :  { %585 = vmatpush.msra.mxu1 %v2078_v48  ;;  %566 = vmatpush.msra.mxu0 %v1930_v11 }
  0x5e   :  { %369 = vmatpush.msra.mxu3 %v2122_v55  ;;  %648 = vmatpush.msra.mxu2 %v1636_v1 }
  0x5f   :  { %586 = vmatpush.msra.mxu1 %v2087_v50  ;;  %567 = vmatpush.msra.mxu0 %v1941_v14 }
  0x60   :  { %370 = vmatpush.msra.mxu3 %v2131_v57  ;;  %649 = vmatpush.msra.mxu2 %v1642_v2 }
  0x61   :  { %371 = vmatmul.f32.vlgmr.msra.gmra.mxu3 %v1809_v43  ;;  %587 = vmatpush.msra.mxu1 %v2095_v51 }
  0x62   :  { %536 = vmatpush.msrb.mxu3 %v1631_v0  ;;  %650 = vmatpush.msra.mxu2 %v1648_v3 }
  0x63   :  { %568 = vmatpush.msra.mxu0 %v1952_v17  ;;  %588 = vmatpush.msra.mxu1 %v2104_v52 }
  0x64   :  { %537 = vmatpush.msrb.mxu3 %v1636_v1  ;;  %651 = vmatpush.msra.mxu2 %v1660_v6 }
  0x65   :  { %569 = vmatpush.msra.mxu0 %v1963_v20  ;;  %589 = vmatpush.msra.mxu1 %v2113_v54 }
  0x66   :  { %538 = vmatpush.msrb.mxu3 %v1642_v2  ;;  %652 = vmatpush.msra.mxu2 %v1669_v8 }
  0x67   :  { %570 = vmatpush.msra.mxu0 %v1974_v23  ;;  %590 = vmatpush.msra.mxu1 %v2122_v55 }
  0x68   :  { %539 = vmatpush.msrb.mxu3 %v1648_v3  ;;  %653 = vmatpush.msra.mxu2 %v1684_v12 }
  0x69   :  { %571 = vmatpush.msra.mxu0 %v1985_v26  ;;  %591 = vmatpush.msra.mxu1 %v2131_v57  ;;  %v2251_v57 = vperm.slane %v78_v62, 2 }
  0x6a   :  { %540 = vmatpush.msrb.mxu3 %v1660_v6  ;;  %654 = vmatpush.msra.mxu2 %v1696_v15 }
  0x6b   :  { %111 = vmatmul.f32.gmra.mxu0 %v23_v58  ;;  %158 = vmatmul.f32.gmra.mxu1 %v23_v58 }
  0x6c   :  { %541 = vmatpush.msrb.mxu3 %v1669_v8  ;;  %655 = vmatpush.msra.mxu2 %v1708_v18 }
  0x6d   :  { %205 = vmatmul.f32.gmra.mxu2 %v23_v58  ;;  %v2237_v58 = vperm.slane %v78_v62, 1 }
  0x6e   :  { %542 = vmatpush.msrb.mxu3 %v1684_v12  ;;  %656 = vmatpush.msra.mxu2 %v1720_v21 }
  0x6f   :  { %3032 = vst [vmem:[#allocation13_spill] sm:$0xff] %v2237_v58 }
  0x70   :  { %543 = vmatpush.msrb.mxu3 %v1696_v15  ;;  %657 = vmatpush.msra.mxu2 %v1732_v24 }
  0x72   :  { %544 = vmatpush.msrb.mxu3 %v1708_v18  ;;  %658 = vmatpush.msra.mxu2 %v1744_v27 }
  0x73   :  { %114 = vmatmul.f32.gmra.mxu0 %v24_v60  ;;  %161 = vmatmul.f32.gmra.mxu1 %v24_v60 }
  0x74   :  { %545 = vmatpush.msrb.mxu3 %v1720_v21  ;;  %659 = vmatpush.msra.mxu2 %v1756_v30 }
  0x75   :  { %208 = vmatmul.f32.gmra.mxu2 %v24_v60 }
  0x76   :  { %546 = vmatpush.msrb.mxu3 %v1732_v24  ;;  %660 = vmatpush.msra.mxu2 %v1768_v33 }
  0x78   :  { %547 = vmatpush.msrb.mxu3 %v1744_v27  ;;  %661 = vmatpush.msra.mxu2 %v1780_v36 }
  0x7a   :  { %548 = vmatpush.msrb.mxu3 %v1756_v30  ;;  %662 = vmatpush.msra.mxu2 %v1792_v39 }
  0x7b   :  { %117 = vmatmul.f32.gmra.mxu0 %v25_v13  ;;  %164 = vmatmul.f32.gmra.mxu1 %v25_v13 }
  0x7c   :  { %549 = vmatpush.msrb.mxu3 %v1768_v33 }
  0x7d   :  { %211 = vmatmul.f32.gmra.mxu2 %v25_v13  ;;  %v2239_v13 = vperm.slane %v1429_v4, 1 }
  0x7e   :  { %550 = vmatpush.msrb.mxu3 %v1780_v36 }
  0x7f   :  { %3033 = vst [vmem:[#allocation14_spill] sm:$0xff] %v2239_v13 }
  0x80   :  { %551 = vmatpush.msrb.mxu3 %v1792_v39  ;;  %v2249_v39 = vperm.slane %v1429_v4, 2 }
  0x82   :  { %667 = vmatpush.msra.mxu3 %v1801_v41 }
  0x83   :  { %120 = vmatmul.f32.gmra.mxu0 %v26_v32  ;;  %167 = vmatmul.f32.gmra.mxu1 %v26_v32 }
  0x84   :  { %668 = vmatpush.msra.mxu3 %v1818_v45 }
  0x85   :  { %214 = vmatmul.f32.gmra.mxu2 %v26_v32 }
  0x86   :  { %669 = vmatpush.msra.mxu3 %v1833_v49 }
  0x88   :  { %670 = vmatpush.msra.mxu3 %v1851_v53 }
  0x8a   :  { %671 = vmatpush.msra.mxu3 %v1864_v56 }
  0x8b   :  { %123 = vmatmul.f32.gmra.mxu0 %v27_v40  ;;  %170 = vmatmul.f32.gmra.mxu1 %v27_v40 }
  0x8c   :  { %672 = vmatpush.msra.mxu3 %v1877_v59 }
  0x8d   :  { %217 = vmatmul.f32.gmra.mxu2 %v27_v40  ;;  %v29_v40 = vld [vmem:[%s2974_s0 + $0x48] sm:$0xff] }
  0x8e   :  { %673 = vmatpush.msra.mxu3 %v1887_v61 }
  0x90   :  { %674 = vmatpush.msra.mxu3 %v1897_v63 }
  0x92   :  { %675 = vmatpush.msra.mxu3 %v1908_v5 }
  0x94   :  { %676 = vmatpush.msra.mxu3 %v1919_v9 }
  0x96   :  { %677 = vmatpush.msra.mxu3 %v1930_v11 }
  0x98   :  { %678 = vmatpush.msra.mxu3 %v1941_v14 }
  0x9a   :  { %679 = vmatpush.msra.mxu3 %v1952_v17 }
  0x9c   :  { %680 = vmatpush.msra.mxu3 %v1963_v20 }
  0x9e   :  { %681 = vmatpush.msra.mxu3 %v1974_v23 }
  0x9f   :  { %v103_v16 = vpop.f32.mrf.mxu0 }
  0xa0   :  { %682 = vmatpush.msra.mxu3 %v1985_v26  ;;  %v104_v22 = vadd.f32 %v103_v16, %v2222_v7 }
  0xa3   :  { %v150_v60 = vpop.f32.mrf.mxu1 }
  0xa4   :  { %v332_v19 = vpop.f32.mrf.mxu3 }
  0xa5   :  { %v333_v25 = vadd.f32 %v332_v19, %v2224_v10  ;;  %v151_v19 = vadd.f32 %v150_v60, %v2237_v58 }
  0xa7   :  { %v378_v28 = vadd.f32 %v333_v25, %v104_v22 }
  0xa9   :  { %v1430_v34 = vmul.f32 -1.442695, %v378_v28  ;;  %v28_v28 = vld [vmem:[%s2974_s0 + $0x40] sm:$0xff] }
  0xaa   :  { %126 = vmatmul.f32.gmra.mxu0 %v28_v28  ;;  %173 = vmatmul.f32.gmra.mxu1 %v28_v28 }
  0xab   :  { %1450 = vpow2.f32 %v1430_v34  ;;  %220 = vmatmul.f32.gmra.mxu2 %v28_v28 }
  0xb1   :  { %v1451_v16 = vpop.eup %1450 }
  0xb2   :  { %v382_v32 = vadd.f32 1.0, %v1451_v16  ;;  %129 = vmatmul.f32.gmra.mxu0 %v29_v40  ;;  %176 = vmatmul.f32.gmra.mxu1 %v29_v40 }
  0xb3   :  { %223 = vmatmul.f32.gmra.mxu2 %v29_v40 }
  0xb4   :  { %1452 = vrcp.f32 %v382_v32  ;;  %vm388_vm0 = vweird.f32 %v382_v32 }
  0xba   :  { %v1453_v60 = vpop.eup %1452 }
  0xbb   :  { %v384_v58 = vmul.f32 %v1453_v60, %v382_v32  ;;  %vm389_vm1 = vweird.f32 %v1453_v60 }
  0xbc   :  { %vm390_vm2 = vmor %vm388_vm0, %vm389_vm1 }
  0xbd   :  { %v385_v16 = vsub.f32 1.0, %v384_v58  ;;  %v197_v23 = vpop.f32.mrf.mxu2 }
  0xc4   :  { %v352_v22 = vpop.f32.mrf.mxu3 }
  0xc5   :  { %v353_v25 = vadd.f32 %v352_v22, %v2239_v13 }
  0xc7   :  { %v398_v34 = vadd.f32 %v353_v25, %v151_v19  ;;  %v386_v19 = vmul.f32 %v1453_v60, %v385_v16  ;;  %v198_v16 = vadd.f32 %v197_v23, %v2251_v57 }
  0xc9   :  { %v1431_v10 = vmul.f32 -1.442695, %v398_v34  ;;  %v387_v28 = vadd.f32 %v1453_v60, %v386_v19  ;;  %v392_v34 = vand.u32 2147483647, %v382_v32 }
  0xcb   :  { %1454 = vpow2.f32 %v1431_v10  ;;  %v394_v10 = vand.u32 2147483648, %v382_v32  ;;  %v391_v36 = vsel %vm390_vm2, %v1453_v60, %v387_v28  ;;  %vm393_vm3 = vcmp.eq.f32.partialorder %v392_v34, 8.507059e+37 }
  0xcd   :  { %v395_v40 = vor.u32 1.1754944e-38, %v394_v10 }
  0xcf   :  { %v396_v20 = vsel %vm393_vm3, %v395_v40, %v391_v36  ;;  %v200_v36 = vpop.f32.mrf.mxu2 }
  0xd1   :  { %v1455_v22 = vpop.eup %1454 }
  0xd2   :  { %v402_v13 = vadd.f32 1.0, %v1455_v22 }
  0xd4   :  { %1456 = vrcp.f32 %v402_v13  ;;  %vm408_vm4 = vweird.f32 %v402_v13  ;;  %v414_v19 = vand.u32 2147483648, %v402_v13  ;;  %v412_v4 = vand.u32 2147483647, %v402_v13 }
  0xd6   :  { %v415_v10 = vor.u32 1.1754944e-38, %v414_v19  ;;  %vm413_vm7 = vcmp.eq.f32.partialorder %v412_v4, 8.507059e+37 }
  0xda   :  { %v1457_v7 = vpop.eup %1456 }
  0xdb   :  { %v404_v26 = vmul.f32 %v1457_v7, %v402_v13  ;;  %vm409_vm5 = vweird.f32 %v1457_v7 }
  0xdc   :  { %vm410_vm6 = vmor %vm408_vm4, %vm409_vm5 }
  0xdd   :  { %v405_v25 = vsub.f32 1.0, %v404_v26 }
  0xdf   :  { %v406_v22 = vmul.f32 %v1457_v7, %v405_v25 }
  0xe1   :  { %v407_v26 = vadd.f32 %v1457_v7, %v406_v22 }
  0xe3   :  { %v411_v62 = vsel %vm410_vm6, %v1457_v7, %v407_v26 }
  0xe4   :  { %v372_v58 = vpop.f32.mrf.mxu3  ;;  %v416_v60 = vsel %vm413_vm7, %v415_v10, %v411_v62 }
  0xe5   :  { %v373_v55 = vadd.f32 %v372_v58, %v2249_v39  ;;  %v421_v25 = vsub.f32 1.0, %v416_v60  ;;  %v423_v58 = vmul.f32 %v416_v60, %v1809_v43 }
  0xe7   :  { %v418_v32 = vmul.f32 %v396_v20, %v373_v55  ;;  %v2321_v55 = vpop.f32.mrf.mxu2 }
  0xe9   :  { %v419_v33 = vadd.f32 %v418_v32, %v198_v16 }
  0xeb   :  { %1458 = vtanh.f32 %v419_v33 }
  0xf0   :  { %v2327_v40 = vpop.f32.mrf.mxu2 }
  0xf1   :  { %v1459_v28 = vpop.eup %1458 }
  0xf2   :  { %v422_v34 = vmul.f32 %v1459_v28, %v421_v25 }
  0xf4   :  { %v2256_v23 = vadd.f32 %v423_v58, %v422_v34 }
  0xf6   :  { %441 = vmatmul.f32.vlgmr.msrb.gmra.mxu0 %v2256_v23  ;;  %461 = vmatmul.f32.vlgmr.msrb.gmra.mxu1 %v2256_v23 }
  0xf7   :  { %481 = vmatmul.f32.vlgmr.msrb.gmra.mxu2 %v2256_v23  ;;  %687 = vmatpush.msrb.mxu0 %v1996_v29 }
  0xf8   :  { %758 = vmatpush.msrb.mxu1 %v1631_v0  ;;  %778 = vmatpush.msrb.mxu2 %v1801_v41  ;;  %v3034_v0 = vld [vmem:[#allocation3_spill] sm:$0xff]  ;;  %v2333_v26 = vpop.f32.mrf.mxu2 }
  0xf9   :  { %688 = vmatpush.msrb.mxu0 %v2005_v31  ;;  %3051 = vst [vmem:[#allocation16_spill] sm:$0xff] %v2333_v26 }
  0xfa   :  { %759 = vmatpush.msrb.mxu1 %v1636_v1  ;;  %779 = vmatpush.msrb.mxu2 %v1818_v45  ;;  %v3035_v1 = vld [vmem:[#allocation6_spill] sm:$0xff] }
  0xfb   :  { %689 = vmatpush.msrb.mxu0 %v2017_v35 }
  0xfc   :  { %760 = vmatpush.msrb.mxu1 %v1642_v2  ;;  %780 = vmatpush.msrb.mxu2 %v1833_v49  ;;  %v3036_v2 = vld [vmem:[#allocation9_spill] sm:$0xff] }
  0xfd   :  { %690 = vmatpush.msrb.mxu0 %v2024_v37 }
  0xfe   :  { %761 = vmatpush.msrb.mxu1 %v1648_v3  ;;  %781 = vmatpush.msrb.mxu2 %v1851_v53  ;;  %v3037_v3 = vld [vmem:[#allocation4_spill] sm:$0xff] }
  0xff   :  { %691 = vmatpush.msrb.mxu0 %v2033_v38 }
 0x100   :  { %762 = vmatpush.msrb.mxu1 %v1660_v6  ;;  %782 = vmatpush.msrb.mxu2 %v1864_v56  ;;  %v3038_v6 = vld [vmem:[#allocation7_spill] sm:$0xff]  ;;  %v2339_v4 = vpop.f32.mrf.mxu2 }
 0x101   :  { %692 = vmatpush.msrb.mxu0 %v2045_v42  ;;  %3054 = vst [vmem:[#allocation19_spill] sm:$0xff] %v2339_v4  ;;  %v3064_v4 = vld [vmem:[#allocation14_spill] sm:$0xff] }
 0x102   :  { %763 = vmatpush.msrb.mxu1 %v1669_v8  ;;  %783 = vmatpush.msrb.mxu2 %v1877_v59  ;;  %v3039_v8 = vld [vmem:[#allocation10_spill] sm:$0xff] }
 0x103   :  { %693 = vmatpush.msrb.mxu0 %v2053_v44 }
 0x104   :  { %764 = vmatpush.msrb.mxu1 %v1684_v12  ;;  %784 = vmatpush.msrb.mxu2 %v1887_v61  ;;  %v3040_v12 = vld [vmem:[#allocation5_spill] sm:$0xff] }
 0x105   :  { %694 = vmatpush.msrb.mxu0 %v2060_v46  ;;  %3048 = vst [vmem:[#allocation5_spill] sm:$0xff] %v2327_v40 }
 0x106   :  { %765 = vmatpush.msrb.mxu1 %v1696_v15  ;;  %785 = vmatpush.msrb.mxu2 %v1897_v63  ;;  %v3041_v15 = vld [vmem:[#allocation8_spill] sm:$0xff] }
 0x107   :  { %695 = vmatpush.msrb.mxu0 %v2069_v47 }
 0x108   :  { %766 = vmatpush.msrb.mxu1 %v1708_v18  ;;  %786 = vmatpush.msrb.mxu2 %v1908_v5  ;;  %v106_v18 = vpop.f32.mrf.mxu0  ;;  %v2345_v60 = vpop.f32.mrf.mxu2 }
 0x109   :  { %696 = vmatpush.msrb.mxu0 %v2078_v48  ;;  %3057 = vst [vmem:[#allocation22_spill] sm:$0xff] %v2345_v60 }
 0x10a   :  { %767 = vmatpush.msrb.mxu1 %v1720_v21  ;;  %787 = vmatpush.msrb.mxu2 %v1919_v9  ;;  %v153_v21 = vpop.f32.mrf.mxu1 }
 0x10b   :  { %697 = vmatpush.msrb.mxu0 %v2087_v50 }
 0x10c   :  { %768 = vmatpush.msrb.mxu1 %v1732_v24  ;;  %788 = vmatpush.msrb.mxu2 %v1930_v11 }
 0x10d   :  { %698 = vmatpush.msrb.mxu0 %v2095_v51 }
 0x10e   :  { %769 = vmatpush.msrb.mxu1 %v1744_v27  ;;  %789 = vmatpush.msrb.mxu2 %v1941_v14 }
 0x10f   :  { %699 = vmatpush.msrb.mxu0 %v2104_v52 }
 0x110   :  { %770 = vmatpush.msrb.mxu1 %v1756_v30  ;;  %790 = vmatpush.msrb.mxu2 %v1952_v17  ;;  %v2309_v24 = vpop.f32.mrf.mxu0  ;;  %v2351_v34 = vpop.f32.mrf.mxu2 }
 0x111   :  { %700 = vmatpush.msrb.mxu0 %v2113_v54  ;;  %3060 = vst [vmem:[#allocation25_spill] sm:$0xff] %v2351_v34 }
 0x112   :  { %771 = vmatpush.msrb.mxu1 %v3034_v0  ;;  %791 = vmatpush.msrb.mxu2 %v3035_v1  ;;  %v2311_v27 = vpop.f32.mrf.mxu1 }
 0x113   :  { %701 = vmatpush.msrb.mxu0 %v3036_v2 }
 0x114   :  { %772 = vmatpush.msrb.mxu1 %v3037_v3  ;;  %792 = vmatpush.msrb.mxu2 %v3038_v6  ;;  %v3061_v3 = vld [vmem:[#allocation11_spill] sm:$0xff] }
 0x115   :  { %702 = vmatpush.msrb.mxu0 %v3039_v8 }
 0x116   :  { %773 = vmatpush.msrb.mxu1 %v3040_v12  ;;  %793 = vmatpush.msrb.mxu2 %v3041_v15  ;;  %v107_v12 = vadd.f32 %v106_v18, %v3061_v3 }
 0x118   :  { %v2313_v30 = vpop.f32.mrf.mxu0 }
 0x119   :  { %3042 = vst [vmem:[#allocation3_spill] sm:$0xff] %v2313_v30 }
 0x11a   :  { %v2315_v33 = vpop.f32.mrf.mxu1 }
 0x11b   :  { %3043 = vst [vmem:[#allocation6_spill] sm:$0xff] %v2315_v33 }
 0x120   :  { %v2317_v43 = vpop.f32.mrf.mxu0 }
 0x121   :  { %3044 = vst [vmem:[#allocation9_spill] sm:$0xff] %v2317_v43 }
 0x122   :  { %v2319_v20 = vpop.f32.mrf.mxu1 }
 0x123   :  { %3045 = vst [vmem:[#allocation4_spill] sm:$0xff] %v2319_v20 }
 0x128   :  { %v2323_v7 = vpop.f32.mrf.mxu0 }
 0x129   :  { %3046 = vst [vmem:[#allocation7_spill] sm:$0xff] %v2323_v7 }
 0x12a   :  { %v2325_v13 = vpop.f32.mrf.mxu1 }
 0x12b   :  { %3047 = vst [vmem:[#allocation10_spill] sm:$0xff] %v2325_v13 }
 0x130   :  { %v2329_v22 = vpop.f32.mrf.mxu0 }
 0x131   :  { %3049 = vst [vmem:[#allocation8_spill] sm:$0xff] %v2329_v22  ;;  %v3063_v22 = vld [vmem:[#allocation12_spill] sm:$0xff] }
 0x132   :  { %v2331_v16 = vpop.f32.mrf.mxu1 }
 0x133   :  { %3050 = vst [vmem:[#allocation15_spill] sm:$0xff] %v2331_v16 }
 0x138   :  { %v2335_v32 = vpop.f32.mrf.mxu0 }
 0x139   :  { %3052 = vst [vmem:[#allocation17_spill] sm:$0xff] %v2335_v32  ;;  %v3062_v32 = vld [vmem:[#allocation13_spill] sm:$0xff] }
 0x13a   :  { %v2337_v19 = vpop.f32.mrf.mxu1 }
 0x13b   :  { %3053 = vst [vmem:[#allocation18_spill] sm:$0xff] %v2337_v19  ;;  %v154_v19 = vadd.f32 %v153_v21, %v3062_v32 }
 0x140   :  { %v2341_v62 = vpop.f32.mrf.mxu0 }
 0x141   :  { %3055 = vst [vmem:[#allocation20_spill] sm:$0xff] %v2341_v62 }
 0x142   :  { %v2343_v10 = vpop.f32.mrf.mxu1 }
 0x143   :  { %3056 = vst [vmem:[#allocation21_spill] sm:$0xff] %v2343_v10 }
 0x148   :  { %v2347_v25 = vpop.f32.mrf.mxu0 }
 0x149   :  { %3058 = vst [vmem:[#allocation23_spill] sm:$0xff] %v2347_v25  ;;  %v2357_v25 = vpop.f32.mrf.mxu2 }
 0x14a   :  { %v2349_v28 = vpop.f32.mrf.mxu1  ;;  %3065 = vst [vmem:[#allocation26_spill] sm:$0xff] %v2357_v25 }
 0x14b   :  { %3059 = vst [vmem:[#allocation24_spill] sm:$0xff] %v2349_v28 }
 0x151   :  { %v2359_v18 = vpop.f32.mrf.mxu2 }
 0x152   :  { %3066 = vst [vmem:[#allocation27_spill] sm:$0xff] %v2359_v18 }
 0x173   :  { %v442_v58 = vpop.f32.mrf.mxu0  ;;  %v462_v0 = vpop.f32.mrf.mxu1 }
 0x174   :  { %v443_v16 = vadd.f32 %v442_v58, %v3063_v22  ;;  %v463_v62 = vadd.f32 %v462_v0, %v3064_v4 }
 0x176   :  { %v489_v13 = vadd.f32 %v443_v16, %v107_v12  ;;  %v509_v10 = vadd.f32 %v463_v62, %v154_v19 }
 0x178   :  { %v1432_v7 = vmul.f32 -1.442695, %v489_v13  ;;  %v1433_v60 = vmul.f32 -1.442695, %v509_v10 }
 0x17a   :  { %1460 = vpow2.f32 %v1432_v7  ;;  %v482_v10 = vpop.f32.mrf.mxu2 }
 0x17b   :  { %1462 = vpow2.f32 %v1433_v60 }
 0x180   :  { %v1461_v28 = vpop.eup %1460 }
 0x181   :  { %v1463_v34 = vpop.eup %1462  ;;  %v493_v26 = vadd.f32 1.0, %v1461_v28 }
 0x182   :  { %v513_v20 = vadd.f32 1.0, %v1463_v34  ;;  %v483_v34 = vadd.f32 %v482_v10, %v2249_v39 }
 0x183   :  { %1464 = vrcp.f32 %v493_v26  ;;  %v505_v13 = vand.u32 2147483648, %v493_v26  ;;  %v503_v7 = vand.u32 2147483647, %v493_v26  ;;  %vm499_vm9 = vweird.f32 %v493_v26 }
 0x184   :  { %1466 = vrcp.f32 %v513_v20  ;;  %v525_v33 = vand.u32 2147483648, %v513_v20  ;;  %vm519_vm13 = vweird.f32 %v513_v20 }
 0x185   :  { %v506_v28 = vor.u32 1.1754944e-38, %v505_v13  ;;  %vm504_vm11 = vcmp.eq.f32.partialorder %v503_v7, 8.507059e+37 }
 0x189   :  { %v1465_v21 = vpop.eup %1464 }
 0x18a   :  { %v1467_v58 = vpop.eup %1466  ;;  %v495_v43 = vmul.f32 %v1465_v21, %v493_v26  ;;  %vm500_vm8 = vweird.f32 %v1465_v21  ;;  %v526_v26 = vor.u32 1.1754944e-38, %v525_v33  ;;  %v2389_v33 = vld [vmem:[%s2971_s3 + $0x138] sm:$0xff] }
 0x18b   :  { %v515_v0 = vmul.f32 %v1467_v58, %v513_v20  ;;  %vm501_vm10 = vmor %vm499_vm9, %vm500_vm8  ;;  %vm520_vm12 = vweird.f32 %v1467_v58 }
 0x18c   :  { %v496_v16 = vsub.f32 1.0, %v495_v43  ;;  %v201_v43 = vadd.f32 %v200_v36, %v2251_v57  ;;  %vm521_vm14 = vmor %vm519_vm13, %vm520_vm12  ;;  %v157_v36 = vadd.f32 %v2311_v27, %v3062_v32 }
 0x18d   :  { %v516_v19 = vsub.f32 1.0, %v515_v0 }
 0x18e   :  { %v497_v62 = vmul.f32 %v1465_v21, %v496_v16  ;;  %v523_v16 = vand.u32 2147483647, %v513_v20 }
 0x18f   :  { %v517_v60 = vmul.f32 %v1467_v58, %v516_v19 }
 0x190   :  { %v498_v12 = vadd.f32 %v1465_v21, %v497_v62  ;;  %vm524_vm15 = vcmp.eq.f32.partialorder %v523_v16, 8.507059e+37 }
 0x191   :  { %v518_v40 = vadd.f32 %v1467_v58, %v517_v60 }
 0x192   :  { %v502_v25 = vsel %vm501_vm10, %v1465_v21, %v498_v12 }
 0x193   :  { %v507_v18 = vsel %vm504_vm11, %v506_v28, %v502_v25  ;;  %v522_v19 = vsel %vm521_vm14, %v1467_v58, %v518_v40  ;;  %v110_v58 = vadd.f32 %v2309_v24, %v3061_v3 }
 0x194   :  { %v529_v0 = vmul.f32 %v507_v18, %v483_v34  ;;  %v527_v13 = vsel %vm524_vm15, %v526_v26, %v522_v19 }
 0x195   :  { %v532_v62 = vsub.f32 1.0, %v527_v13  ;;  %v534_v25 = vmul.f32 %v527_v13, %v2256_v23  ;;  %v2381_v23 = vld [vmem:[%s2971_s3 + $0x150] sm:$0xff] }
 0x196   :  { %v530_v30 = vadd.f32 %v529_v0, %v201_v43 }
 0x198   :  { %1468 = vtanh.f32 %v530_v30  ;;  %v2373_v30 = vld [vmem:[%s2971_s3 + $0x168] sm:$0xff] }
 0x19e   :  { %v1469_v10 = vpop.eup %1468 }
 0x19f   :  { %v533_v21 = vmul.f32 %v1469_v10, %v532_v62 }
 0x1a1   :  { %v2364_v7 = vadd.f32 %v534_v25, %v533_v21 }
 0x1a3   :  { %552 = vmatmul.f32.vlgmr.msrb.gmra.mxu3 %v2364_v7  ;;  %572 = vmatmul.f32.vlgmr.msra.gmra.mxu0 %v2364_v7 }
 0x1a4   :  { %592 = vmatmul.f32.vlgmr.msra.gmra.mxu1 %v2364_v7  ;;  %798 = vmatpush.msrb.mxu3 %v1996_v29 }
 0x1a5   :  { %869 = vmatpush.msra.mxu0 %v2373_v30  ;;  %889 = vmatpush.msra.mxu1 %v1801_v41  ;;  %v2397_v41 = vld [vmem:[%s2971_s3 + $0x120] sm:$0xff] }
 0x1a6   :  { %799 = vmatpush.msrb.mxu3 %v2005_v31 }
 0x1a7   :  { %870 = vmatpush.msra.mxu0 %v2381_v23  ;;  %890 = vmatpush.msra.mxu1 %v1818_v45  ;;  %v2405_v45 = vld [vmem:[%s2971_s3 + $0x108] sm:$0xff] }
 0x1a8   :  { %800 = vmatpush.msrb.mxu3 %v2017_v35 }
 0x1a9   :  { %871 = vmatpush.msra.mxu0 %v2389_v33  ;;  %891 = vmatpush.msra.mxu1 %v1833_v49  ;;  %v2413_v49 = vld [vmem:[%s2971_s3 + $0xf0] sm:$0xff] }
 0x1aa   :  { %801 = vmatpush.msrb.mxu3 %v2024_v37 }
 0x1ab   :  { %872 = vmatpush.msra.mxu0 %v2397_v41  ;;  %892 = vmatpush.msra.mxu1 %v1851_v53  ;;  %v2421_v53 = vld [vmem:[%s2971_s3 + $0xd8] sm:$0xff] }
 0x1ac   :  { %802 = vmatpush.msrb.mxu3 %v2033_v38 }
 0x1ad   :  { %873 = vmatpush.msra.mxu0 %v2405_v45  ;;  %893 = vmatpush.msra.mxu1 %v1864_v56  ;;  %v2429_v56 = vld [vmem:[%s2971_s3 + $0xc0] sm:$0xff] }
 0x1ae   :  { %803 = vmatpush.msrb.mxu3 %v2045_v42 }
 0x1af   :  { %874 = vmatpush.msra.mxu0 %v2413_v49  ;;  %894 = vmatpush.msra.mxu1 %v1877_v59  ;;  %v2437_v59 = vld [vmem:[%s2971_s3 + $0xa8] sm:$0xff] }
 0x1b0   :  { %804 = vmatpush.msrb.mxu3 %v2053_v44 }
 0x1b1   :  { %875 = vmatpush.msra.mxu0 %v2421_v53  ;;  %895 = vmatpush.msra.mxu1 %v1887_v61  ;;  %v2445_v61 = vld [vmem:[%s2971_s3 + $0x90] sm:$0xff] }
 0x1b2   :  { %805 = vmatpush.msrb.mxu3 %v2060_v46 }
 0x1b3   :  { %876 = vmatpush.msra.mxu0 %v2429_v56  ;;  %896 = vmatpush.msra.mxu1 %v1897_v63  ;;  %v2453_v63 = vld [vmem:[%s2971_s3 + $0x78] sm:$0xff] }
 0x1b4   :  { %806 = vmatpush.msrb.mxu3 %v2069_v47 }
 0x1b5   :  { %877 = vmatpush.msra.mxu0 %v2437_v59  ;;  %897 = vmatpush.msra.mxu1 %v1908_v5  ;;  %v2461_v5 = vld [vmem:[%s2971_s3 + $0x60] sm:$0xff] }
 0x1b6   :  { %807 = vmatpush.msrb.mxu3 %v2078_v48 }
 0x1b7   :  { %878 = vmatpush.msra.mxu0 %v2445_v61  ;;  %898 = vmatpush.msra.mxu1 %v1919_v9  ;;  %v2469_v9 = vld [vmem:[%s2971_s3 + $0x48] sm:$0xff] }
 0x1b8   :  { %808 = vmatpush.msrb.mxu3 %v2087_v50 }
 0x1b9   :  { %879 = vmatpush.msra.mxu0 %v2453_v63  ;;  %899 = vmatpush.msra.mxu1 %v1930_v11  ;;  %v2477_v11 = vld [vmem:[%s2971_s3 + $0x30] sm:$0xff] }
 0x1ba   :  { %809 = vmatpush.msrb.mxu3 %v2095_v51  ;;  %3067 = vst [vmem:[#allocation28_spill] sm:$0xff] %v2477_v11 }
 0x1bb   :  { %880 = vmatpush.msra.mxu0 %v2461_v5  ;;  %900 = vmatpush.msra.mxu1 %v1941_v14  ;;  %v2485_v14 = vld [vmem:[%s2971_s3 + $0x18] sm:$0xff] }
 0x1bc   :  { %810 = vmatpush.msrb.mxu3 %v2104_v52  ;;  %3068 = vst [vmem:[#allocation29_spill] sm:$0xff] %v2485_v14 }
 0x1bd   :  { %881 = vmatpush.msra.mxu0 %v2469_v9  ;;  %901 = vmatpush.msra.mxu1 %v1952_v17  ;;  %v2493_v17 = vld [vmem:[%s2971_s3] sm:$0xff] }
 0x1be   :  { %811 = vmatpush.msrb.mxu3 %v2113_v54  ;;  %3069 = vst [vmem:[#allocation30_spill] sm:$0xff] %v2493_v17 }
 0x1bf   :  { %882 = vmatpush.msra.mxu0 %v2477_v11  ;;  %902 = vmatpush.msra.mxu1 %v3035_v1 }
 0x1c0   :  { %812 = vmatpush.msrb.mxu3 %v3036_v2 }
 0x1c1   :  { %883 = vmatpush.msra.mxu0 %v2485_v14  ;;  %903 = vmatpush.msra.mxu1 %v3038_v6 }
 0x1c2   :  { %813 = vmatpush.msrb.mxu3 %v3039_v8 }
 0x1c3   :  { %884 = vmatpush.msra.mxu0 %v2493_v17  ;;  %904 = vmatpush.msra.mxu1 %v3041_v15 }
 0x220   :  { %v573_v1 = vpop.f32.mrf.mxu0 }
 0x221   :  { %v574_v20 = vadd.f32 %v573_v1, %v3064_v4  ;;  %v593_v25 = vpop.f32.mrf.mxu1 }
 0x223   :  { %v620_v40 = vadd.f32 %v574_v20, %v157_v36 }
 0x225   :  { %v1435_v18 = vmul.f32 -1.442695, %v620_v40  ;;  %v594_v40 = vadd.f32 %v593_v25, %v2249_v39  ;;  %v3075_v25 = vld [vmem:[#allocation6_spill] sm:$0xff] }
 0x226   :  { %v553_v6 = vpop.f32.mrf.mxu3 }
 0x227   :  { %1470 = vpow2.f32 %v1435_v18  ;;  %v554_v60 = vadd.f32 %v553_v6, %v3063_v22 }
 0x229   :  { %v600_v12 = vadd.f32 %v554_v60, %v110_v58  ;;  %v204_v60 = vadd.f32 %v2321_v55, %v2251_v57  ;;  %v2517_v55 = vld [vmem:[%s2971_s3 + $0x170] sm:$0xff] }
 0x22b   :  { %v1434_v28 = vmul.f32 -1.442695, %v600_v12 }
 0x22d   :  { %v1471_v34 = vpop.eup %1470  ;;  %1472 = vpow2.f32 %v1434_v28 }
 0x22e   :  { %v624_v15 = vadd.f32 1.0, %v1471_v34 }
 0x230   :  { %1474 = vrcp.f32 %v624_v15  ;;  %v636_v12 = vand.u32 2147483648, %v624_v15  ;;  %vm630_vm5 = vweird.f32 %v624_v15  ;;  %v634_v34 = vand.u32 2147483647, %v624_v15 }
 0x232   :  { %vm635_vm7 = vcmp.eq.f32.partialorder %v634_v34, 8.507059e+37 }
 0x233   :  { %v1473_v43 = vpop.eup %1472 }
 0x234   :  { %v604_v0 = vadd.f32 1.0, %v1473_v43 }
 0x236   :  { %1476 = vrcp.f32 %v604_v0  ;;  %v1475_v27 = vpop.eup %1474  ;;  %v616_v10 = vand.u32 2147483648, %v604_v0  ;;  %v614_v21 = vand.u32 2147483647, %v604_v0  ;;  %vm610_vm1 = vweird.f32 %v604_v0 }
 0x237   :  { %v626_v16 = vmul.f32 %v1475_v27, %v624_v15  ;;  %vm631_vm4 = vweird.f32 %v1475_v27 }
 0x238   :  { %v617_v20 = vor.u32 1.1754944e-38, %v616_v10  ;;  %vm615_vm3 = vcmp.eq.f32.partialorder %v614_v21, 8.507059e+37  ;;  %vm632_vm6 = vmor %vm630_vm5, %vm631_vm4 }
 0x239   :  { %v627_v13 = vsub.f32 1.0, %v626_v16 }
 0x23b   :  { %v628_v1 = vmul.f32 %v1475_v27, %v627_v13 }
 0x23c   :  { %v1477_v19 = vpop.eup %1476 }
 0x23d   :  { %v606_v26 = vmul.f32 %v1477_v19, %v604_v0  ;;  %vm611_vm0 = vweird.f32 %v1477_v19  ;;  %v629_v58 = vadd.f32 %v1475_v27, %v628_v1  ;;  %v637_v0 = vor.u32 1.1754944e-38, %v636_v12 }
 0x23e   :  { %vm612_vm2 = vmor %vm610_vm1, %vm611_vm0  ;;  %v160_v1 = vadd.f32 %v3075_v25, %v3062_v32 }
 0x23f   :  { %v607_v62 = vsub.f32 1.0, %v606_v26  ;;  %v633_v16 = vsel %vm632_vm6, %v1475_v27, %v629_v58  ;;  %v3074_v27 = vld [vmem:[#allocation3_spill] sm:$0xff] }
 0x240   :  { %v638_v26 = vsel %vm635_vm7, %v637_v0, %v633_v16  ;;  %v113_v21 = vadd.f32 %v3074_v27, %v3061_v3 }
 0x241   :  { %v608_v24 = vmul.f32 %v1477_v19, %v607_v62  ;;  %v643_v13 = vsub.f32 1.0, %v638_v26  ;;  %v645_v10 = vmul.f32 %v638_v26, %v2364_v7  ;;  %v2525_v7 = vld [vmem:[%s2971_s3 + $0x158] sm:$0xff] }
 0x243   :  { %v609_v36 = vadd.f32 %v1477_v19, %v608_v24 }
 0x245   :  { %v613_v18 = vsel %vm612_vm2, %v1477_v19, %v609_v36 }
 0x246   :  { %v618_v6 = vsel %vm615_vm3, %v617_v20, %v613_v18 }
 0x247   :  { %v640_v28 = vmul.f32 %v618_v6, %v594_v40 }
 0x249   :  { %v641_v43 = vadd.f32 %v640_v28, %v204_v60 }
 0x24b   :  { %1478 = vtanh.f32 %v641_v43 }
 0x251   :  { %v1479_v19 = vpop.eup %1478 }
 0x252   :  { %v644_v62 = vmul.f32 %v1479_v19, %v643_v13 }
 0x254   :  { %v2507_v24 = vadd.f32 %v645_v10, %v644_v62 }
 0x256   :  { %663 = vmatmul.f32.vlgmr.msra.gmra.mxu2 %v2507_v24  ;;  %683 = vmatmul.f32.vlgmr.msra.gmra.mxu3 %v2507_v24 }
 0x257   :  { %703 = vmatmul.f32.vlgmr.msrb.gmra.mxu0 %v2507_v24  ;;  %909 = vmatpush.msra.mxu2 %v1996_v29  ;;  %v2533_v29 = vld [vmem:[%s2971_s3 + $0x140] sm:$0xff] }
 0x258   :  { %980 = vmatpush.msra.mxu3 %v2373_v30  ;;  %1000 = vmatpush.msrb.mxu0 %v2517_v55 }
 0x259   :  { %910 = vmatpush.msra.mxu2 %v2005_v31  ;;  %v2541_v31 = vld [vmem:[%s2971_s3 + $0x128] sm:$0xff] }
 0x25a   :  { %981 = vmatpush.msra.mxu3 %v2381_v23  ;;  %1001 = vmatpush.msrb.mxu0 %v2525_v7 }
 0x25b   :  { %911 = vmatpush.msra.mxu2 %v2017_v35  ;;  %v2549_v35 = vld [vmem:[%s2971_s3 + $0x110] sm:$0xff] }
 0x25c   :  { %982 = vmatpush.msra.mxu3 %v2389_v33  ;;  %1002 = vmatpush.msrb.mxu0 %v2533_v29 }
 0x25d   :  { %912 = vmatpush.msra.mxu2 %v2024_v37  ;;  %v2557_v37 = vld [vmem:[%s2971_s3 + $0xf8] sm:$0xff] }
 0x25e   :  { %983 = vmatpush.msra.mxu3 %v2397_v41  ;;  %1003 = vmatpush.msrb.mxu0 %v2541_v31 }
 0x25f   :  { %913 = vmatpush.msra.mxu2 %v2033_v38  ;;  %v2565_v38 = vld [vmem:[%s2971_s3 + $0xe0] sm:$0xff] }
 0x260   :  { %984 = vmatpush.msra.mxu3 %v2405_v45  ;;  %1004 = vmatpush.msrb.mxu0 %v2549_v35 }
 0x261   :  { %914 = vmatpush.msra.mxu2 %v2045_v42  ;;  %v2573_v42 = vld [vmem:[%s2971_s3 + $0xc8] sm:$0xff] }
 0x262   :  { %985 = vmatpush.msra.mxu3 %v2413_v49  ;;  %1005 = vmatpush.msrb.mxu0 %v2557_v37 }
 0x263   :  { %915 = vmatpush.msra.mxu2 %v2053_v44  ;;  %v2581_v44 = vld [vmem:[%s2971_s3 + $0xb0] sm:$0xff] }
 0x264   :  { %986 = vmatpush.msra.mxu3 %v2421_v53  ;;  %1006 = vmatpush.msrb.mxu0 %v2565_v38 }
 0x265   :  { %916 = vmatpush.msra.mxu2 %v2060_v46  ;;  %v2589_v46 = vld [vmem:[%s2971_s3 + $0x98] sm:$0xff] }
 0x266   :  { %987 = vmatpush.msra.mxu3 %v2429_v56  ;;  %1007 = vmatpush.msrb.mxu0 %v2573_v42 }
 0x267   :  { %917 = vmatpush.msra.mxu2 %v2069_v47  ;;  %v2597_v47 = vld [vmem:[%s2971_s3 + $0x80] sm:$0xff] }
 0x268   :  { %988 = vmatpush.msra.mxu3 %v2437_v59  ;;  %1008 = vmatpush.msrb.mxu0 %v2581_v44 }
 0x269   :  { %918 = vmatpush.msra.mxu2 %v2078_v48  ;;  %v2605_v48 = vld [vmem:[%s2971_s3 + $0x68] sm:$0xff] }
 0x26a   :  { %989 = vmatpush.msra.mxu3 %v2445_v61  ;;  %1009 = vmatpush.msrb.mxu0 %v2589_v46 }
 0x26b   :  { %919 = vmatpush.msra.mxu2 %v2087_v50  ;;  %v2613_v50 = vld [vmem:[%s2971_s3 + $0x50] sm:$0xff] }
 0x26c   :  { %990 = vmatpush.msra.mxu3 %v2453_v63  ;;  %1010 = vmatpush.msrb.mxu0 %v2597_v47  ;;  %3070 = vst [vmem:[#allocation31_spill] sm:$0xff] %v2613_v50 }
 0x26d   :  { %920 = vmatpush.msra.mxu2 %v2095_v51  ;;  %v2621_v51 = vld [vmem:[%s2971_s3 + $0x38] sm:$0xff] }
 0x26e   :  { %991 = vmatpush.msra.mxu3 %v2461_v5  ;;  %1011 = vmatpush.msrb.mxu0 %v2605_v48  ;;  %3071 = vst [vmem:[#allocation32_spill] sm:$0xff] %v2621_v51 }
 0x26f   :  { %921 = vmatpush.msra.mxu2 %v2104_v52  ;;  %v2629_v52 = vld [vmem:[%s2971_s3 + $0x20] sm:$0xff] }
 0x270   :  { %992 = vmatpush.msra.mxu3 %v2469_v9  ;;  %1012 = vmatpush.msrb.mxu0 %v2613_v50  ;;  %3072 = vst [vmem:[#allocation33_spill] sm:$0xff] %v2629_v52 }
 0x271   :  { %922 = vmatpush.msra.mxu2 %v2113_v54  ;;  %v2637_v54 = vld [vmem:[%s2971_s3 + $0x8] sm:$0xff] }
 0x272   :  { %993 = vmatpush.msra.mxu3 %v2477_v11  ;;  %1013 = vmatpush.msrb.mxu0 %v2621_v51  ;;  %3073 = vst [vmem:[#allocation34_spill] sm:$0xff] %v2637_v54 }
 0x273   :  { %923 = vmatpush.msra.mxu2 %v3036_v2 }
 0x274   :  { %994 = vmatpush.msra.mxu3 %v2485_v14  ;;  %1014 = vmatpush.msrb.mxu0 %v2629_v52 }
 0x275   :  { %924 = vmatpush.msra.mxu2 %v3039_v8 }
 0x276   :  { %995 = vmatpush.msra.mxu3 %v2493_v17  ;;  %1015 = vmatpush.msrb.mxu0 %v2637_v54 }
 0x2d9   :  { %v664_v2 = vpop.f32.mrf.mxu2  ;;  %v684_v15 = vpop.f32.mrf.mxu3 }
 0x2da   :  { %v665_v36 = vadd.f32 %v664_v2, %v3063_v22  ;;  %v685_v8 = vadd.f32 %v684_v15, %v3064_v4  ;;  %v704_v2 = vpop.f32.mrf.mxu0 }
 0x2db   :  { %v705_v25 = vadd.f32 %v704_v2, %v2249_v39  ;;  %v2690_v2 = vld [vmem:[%s2971_s3 + $0x118] sm:$0xff] }
 0x2dc   :  { %v711_v20 = vadd.f32 %v665_v36, %v113_v21  ;;  %v731_v40 = vadd.f32 %v685_v8, %v160_v1 }
 0x2de   :  { %v1436_v18 = vmul.f32 -1.442695, %v711_v20  ;;  %v1437_v6 = vmul.f32 -1.442695, %v731_v40  ;;  %v3076_v20 = vld [vmem:[#allocation5_spill] sm:$0xff] }
 0x2df   :  { %v207_v40 = vadd.f32 %v3076_v20, %v2251_v57  ;;  %v2754_v20 = vld [vmem:[%s2971_s3 + $0x58] sm:$0xff] }
 0x2e0   :  { %1480 = vpow2.f32 %v1436_v18 }
 0x2e1   :  { %1482 = vpow2.f32 %v1437_v6 }
 0x2e6   :  { %v1481_v58 = vpop.eup %1480 }
 0x2e7   :  { %v1483_v60 = vpop.eup %1482  ;;  %v715_v12 = vadd.f32 1.0, %v1481_v58 }
 0x2e8   :  { %v735_v28 = vadd.f32 1.0, %v1483_v60 }
 0x2e9   :  { %1484 = vrcp.f32 %v715_v12  ;;  %v727_v13 = vand.u32 2147483648, %v715_v12  ;;  %v725_v10 = vand.u32 2147483647, %v715_v12  ;;  %vm721_vm9 = vweird.f32 %v715_v12 }
 0x2ea   :  { %1486 = vrcp.f32 %v735_v28  ;;  %v747_v18 = vand.u32 2147483648, %v735_v28  ;;  %vm741_vm13 = vweird.f32 %v735_v28  ;;  %v745_v58 = vand.u32 2147483647, %v735_v28 }
 0x2eb   :  { %v728_v21 = vor.u32 1.1754944e-38, %v727_v13  ;;  %vm726_vm11 = vcmp.eq.f32.partialorder %v725_v10, 8.507059e+37  ;;  %v2682_v10 = vld [vmem:[%s2971_s3 + $0x130] sm:$0xff] }
 0x2ec   :  { %vm746_vm15 = vcmp.eq.f32.partialorder %v745_v58, 8.507059e+37 }
 0x2ef   :  { %v1485_v34 = vpop.eup %1484 }
 0x2f0   :  { %v1487_v43 = vpop.eup %1486  ;;  %v717_v16 = vmul.f32 %v1485_v34, %v715_v12  ;;  %vm722_vm8 = vweird.f32 %v1485_v34  ;;  %v748_v12 = vor.u32 1.1754944e-38, %v747_v18  ;;  %v2770_v18 = vld [vmem:[%s2971_s3 + $0x28] sm:$0xff] }
 0x2f1   :  { %v737_v0 = vmul.f32 %v1487_v43, %v735_v28  ;;  %vm723_vm10 = vmor %vm721_vm9, %vm722_vm8  ;;  %vm742_vm12 = vweird.f32 %v1487_v43  ;;  %v2658_v28 = vld [vmem:[%s2971_s3 + $0x178] sm:$0xff]  ;;  %3078 = vst [vmem:[#allocation6_spill] sm:$0xff] %v2770_v18 }
 0x2f2   :  { %v718_v26 = vsub.f32 1.0, %v717_v16  ;;  %vm743_vm14 = vmor %vm741_vm13, %vm742_vm12 }
 0x2f3   :  { %v738_v19 = vsub.f32 1.0, %v737_v0 }
 0x2f4   :  { %v719_v62 = vmul.f32 %v1485_v34, %v718_v26 }
 0x2f5   :  { %v739_v15 = vmul.f32 %v1487_v43, %v738_v19 }
 0x2f6   :  { %v720_v27 = vadd.f32 %v1485_v34, %v719_v62 }
 0x2f7   :  { %v740_v8 = vadd.f32 %v1487_v43, %v739_v15  ;;  %v2698_v15 = vld [vmem:[%s2971_s3 + $0x100] sm:$0xff] }
 0x2f8   :  { %v724_v1 = vsel %vm723_vm10, %v1485_v34, %v720_v27  ;;  %v2706_v27 = vld [vmem:[%s2971_s3 + $0xe8] sm:$0xff] }
 0x2f9   :  { %v729_v36 = vsel %vm726_vm11, %v728_v21, %v724_v1  ;;  %v744_v16 = vsel %vm743_vm14, %v1487_v43, %v740_v8  ;;  %v2674_v43 = vld [vmem:[%s2971_s3 + $0x148] sm:$0xff]  ;;  %v2714_v21 = vld [vmem:[%s2971_s3 + $0xd0] sm:$0xff]  ;;  %v2730_v1 = vld [vmem:[%s2971_s3 + $0xa0] sm:$0xff] }
 0x2fa   :  { %v751_v6 = vmul.f32 %v729_v36, %v705_v25  ;;  %v749_v0 = vsel %vm746_vm15, %v748_v12, %v744_v16  ;;  %v2722_v25 = vld [vmem:[%s2971_s3 + $0xb8] sm:$0xff]  ;;  %v2738_v36 = vld [vmem:[%s2971_s3 + $0x88] sm:$0xff]  ;;  %v2746_v8 = vld [vmem:[%s2971_s3 + $0x70] sm:$0xff] }
 0x2fb   :  { %v754_v26 = vsub.f32 1.0, %v749_v0  ;;  %v756_v19 = vmul.f32 %v749_v0, %v2507_v24  ;;  %v2666_v24 = vld [vmem:[%s2971_s3 + $0x160] sm:$0xff] }
 0x2fc   :  { %v752_v60 = vadd.f32 %v751_v6, %v207_v40  ;;  %v2762_v40 = vld [vmem:[%s2971_s3 + $0x40] sm:$0xff]  ;;  %v2778_v6 = vld [vmem:[%s2971_s3 + $0x10] sm:$0xff] }
 0x2fd   :  { %3077 = vst [vmem:[#allocation3_spill] sm:$0xff] %v2762_v40 }
 0x2fe   :  { %1488 = vtanh.f32 %v752_v60  ;;  %3079 = vst [vmem:[#allocation5_spill] sm:$0xff] %v2778_v6  ;;  %v3080_v60 = vld [vmem:[#allocation9_spill] sm:$0xff] }
 0x2ff   :  { %v116_v16 = vadd.f32 %v3080_v60, %v3061_v3 }
 0x304   :  { %v1489_v34 = vpop.eup %1488 }
 0x305   :  { %v755_v13 = vmul.f32 %v1489_v34, %v754_v26 }
 0x307   :  { %v2650_v62 = vadd.f32 %v756_v19, %v755_v13  ;;  %v3081_v13 = vld [vmem:[#allocation4_spill] sm:$0xff] }
 0x308   :  { %v163_v19 = vadd.f32 %v3081_v13, %v3062_v32 }
 0x309   :  { %774 = vmatmul.f32.vlgmr.msrb.gmra.mxu1 %v2650_v62  ;;  %794 = vmatmul.f32.vlgmr.msrb.gmra.mxu2 %v2650_v62 }
 0x30a   :  { %814 = vmatmul.f32.vlgmr.msrb.gmra.mxu3 %v2650_v62  ;;  %1020 = vmatpush.msrb.mxu1 %v2658_v28 }
 0x30b   :  { %1091 = vmatpush.msrb.mxu2 %v2373_v30  ;;  %1111 = vmatpush.msrb.mxu3 %v2517_v55 }
 0x30c   :  { %1021 = vmatpush.msrb.mxu1 %v2666_v24 }
 0x30d   :  { %1092 = vmatpush.msrb.mxu2 %v2381_v23  ;;  %1112 = vmatpush.msrb.mxu3 %v2525_v7 }
 0x30e   :  { %1022 = vmatpush.msrb.mxu1 %v2674_v43 }
 0x30f   :  { %1093 = vmatpush.msrb.mxu2 %v2389_v33  ;;  %1113 = vmatpush.msrb.mxu3 %v2533_v29 }
 0x310   :  { %1023 = vmatpush.msrb.mxu1 %v2682_v10 }
 0x311   :  { %1094 = vmatpush.msrb.mxu2 %v2397_v41  ;;  %1114 = vmatpush.msrb.mxu3 %v2541_v31 }
 0x312   :  { %1024 = vmatpush.msrb.mxu1 %v2690_v2 }
 0x313   :  { %1095 = vmatpush.msrb.mxu2 %v2405_v45  ;;  %1115 = vmatpush.msrb.mxu3 %v2549_v35 }
 0x314   :  { %1025 = vmatpush.msrb.mxu1 %v2698_v15 }
 0x315   :  { %1096 = vmatpush.msrb.mxu2 %v2413_v49  ;;  %1116 = vmatpush.msrb.mxu3 %v2557_v37 }
 0x316   :  { %1026 = vmatpush.msrb.mxu1 %v2706_v27 }
 0x317   :  { %1097 = vmatpush.msrb.mxu2 %v2421_v53  ;;  %1117 = vmatpush.msrb.mxu3 %v2565_v38 }
 0x318   :  { %1027 = vmatpush.msrb.mxu1 %v2714_v21 }
 0x319   :  { %1098 = vmatpush.msrb.mxu2 %v2429_v56  ;;  %1118 = vmatpush.msrb.mxu3 %v2573_v42 }
 0x31a   :  { %1028 = vmatpush.msrb.mxu1 %v2722_v25 }
 0x31b   :  { %1099 = vmatpush.msrb.mxu2 %v2437_v59  ;;  %1119 = vmatpush.msrb.mxu3 %v2581_v44 }
 0x31c   :  { %1029 = vmatpush.msrb.mxu1 %v2730_v1 }
 0x31d   :  { %1100 = vmatpush.msrb.mxu2 %v2445_v61  ;;  %1120 = vmatpush.msrb.mxu3 %v2589_v46 }
 0x31e   :  { %1030 = vmatpush.msrb.mxu1 %v2738_v36 }
 0x31f   :  { %1101 = vmatpush.msrb.mxu2 %v2453_v63  ;;  %1121 = vmatpush.msrb.mxu3 %v2597_v47 }
 0x320   :  { %1031 = vmatpush.msrb.mxu1 %v2746_v8 }
 0x321   :  { %1102 = vmatpush.msrb.mxu2 %v2461_v5  ;;  %1122 = vmatpush.msrb.mxu3 %v2605_v48 }
 0x322   :  { %1032 = vmatpush.msrb.mxu1 %v2754_v20 }
 0x323   :  { %1103 = vmatpush.msrb.mxu2 %v2469_v9  ;;  %1123 = vmatpush.msrb.mxu3 %v2613_v50 }
 0x324   :  { %1033 = vmatpush.msrb.mxu1 %v2762_v40 }
 0x325   :  { %1104 = vmatpush.msrb.mxu2 %v2477_v11  ;;  %1124 = vmatpush.msrb.mxu3 %v2621_v51 }
 0x326   :  { %1034 = vmatpush.msrb.mxu1 %v2770_v18 }
 0x327   :  { %1105 = vmatpush.msrb.mxu2 %v2485_v14  ;;  %1125 = vmatpush.msrb.mxu3 %v2629_v52 }
 0x328   :  { %1035 = vmatpush.msrb.mxu1 %v2778_v6 }
 0x329   :  { %1106 = vmatpush.msrb.mxu2 %v2493_v17  ;;  %1126 = vmatpush.msrb.mxu3 %v2637_v54 }
 0x386   :  { %v775_v58 = vpop.f32.mrf.mxu1 }
 0x387   :  { %v776_v12 = vadd.f32 %v775_v58, %v3063_v22 }
 0x389   :  { %v822_v0 = vadd.f32 %v776_v12, %v116_v16 }
 0x38b   :  { %v1438_v26 = vmul.f32 -1.442695, %v822_v0 }
 0x38c   :  { %v795_v34 = vpop.f32.mrf.mxu2 }
 0x38d   :  { %1490 = vpow2.f32 %v1438_v26  ;;  %v796_v52 = vadd.f32 %v795_v34, %v3064_v4  ;;  %v815_v26 = vpop.f32.mrf.mxu3 }
 0x38f   :  { %v842_v6 = vadd.f32 %v796_v52, %v163_v19 }
 0x391   :  { %v1439_v14 = vmul.f32 -1.442695, %v842_v6 }
 0x393   :  { %v1491_v17 = vpop.eup %1490  ;;  %1492 = vpow2.f32 %v1439_v14 }
 0x394   :  { %v826_v54 = vadd.f32 1.0, %v1491_v17  ;;  %v816_v17 = vadd.f32 %v815_v26, %v2249_v39 }
 0x396   :  { %1494 = vrcp.f32 %v826_v54  ;;  %v838_v12 = vand.u32 2147483648, %v826_v54  ;;  %v836_v22 = vand.u32 2147483647, %v826_v54  ;;  %vm832_vm1 = vweird.f32 %v826_v54 }
 0x398   :  { %v839_v52 = vor.u32 1.1754944e-38, %v838_v12  ;;  %vm837_vm3 = vcmp.eq.f32.partialorder %v836_v22, 8.507059e+37 }
 0x399   :  { %v1493_v18 = vpop.eup %1492 }
 0x39a   :  { %v846_v51 = vadd.f32 1.0, %v1493_v18  ;;  %v3082_v18 = vld [vmem:[#allocation16_spill] sm:$0xff] }
 0x39b   :  { %v210_v19 = vadd.f32 %v3082_v18, %v2251_v57  ;;  %v3093_v18 = vld [vmem:[#allocation11_spill] sm:$0xff] }
 0x39c   :  { %v1495_v60 = vpop.eup %1494  ;;  %1496 = vrcp.f32 %v846_v51  ;;  %v858_v3 = vand.u32 2147483648, %v846_v51  ;;  %v856_v11 = vand.u32 2147483647, %v846_v51  ;;  %vm852_vm5 = vweird.f32 %v846_v51 }
 0x39d   :  { %v828_v58 = vmul.f32 %v1495_v60, %v826_v54  ;;  %vm833_vm0 = vweird.f32 %v1495_v60 }
 0x39e   :  { %vm834_vm2 = vmor %vm832_vm1, %vm833_vm0  ;;  %vm857_vm7 = vcmp.eq.f32.partialorder %v856_v11, 8.507059e+37  ;;  %v3085_v11 = vld [vmem:[#allocation28_spill] sm:$0xff] }
 0x39f   :  { %v829_v16 = vsub.f32 1.0, %v828_v58 }
 0x3a1   :  { %v830_v0 = vmul.f32 %v1495_v60, %v829_v16 }
 0x3a2   :  { %v1497_v13 = vpop.eup %1496 }
 0x3a3   :  { %v848_v32 = vmul.f32 %v1497_v13, %v846_v51  ;;  %v831_v34 = vadd.f32 %v1495_v60, %v830_v0  ;;  %vm853_vm4 = vweird.f32 %v1497_v13  ;;  %v3087_v51 = vld [vmem:[#allocation6_spill] sm:$0xff] }
 0x3a4   :  { %vm854_vm6 = vmor %vm852_vm5, %vm853_vm4 }
 0x3a5   :  { %v849_v14 = vsub.f32 1.0, %v848_v32  ;;  %v835_v6 = vsel %vm834_vm2, %v1495_v60, %v831_v34  ;;  %v859_v32 = vor.u32 1.1754944e-38, %v858_v3  ;;  %v3084_v3 = vld [vmem:[#allocation3_spill] sm:$0xff] }
 0x3a6   :  { %v840_v58 = vsel %vm837_vm3, %v839_v52, %v835_v6  ;;  %v3091_v52 = vld [vmem:[#allocation30_spill] sm:$0xff] }
 0x3a7   :  { %v862_v4 = vmul.f32 %v840_v58, %v816_v17  ;;  %v850_v16 = vmul.f32 %v1497_v13, %v849_v14  ;;  %v3092_v14 = vld [vmem:[#allocation34_spill] sm:$0xff] }
 0x3a9   :  { %v863_v40 = vadd.f32 %v862_v4, %v210_v19  ;;  %v851_v50 = vadd.f32 %v1497_v13, %v850_v16  ;;  %v3083_v4 = vld [vmem:[#allocation31_spill] sm:$0xff]  ;;  %v3095_v16 = vld [vmem:[#allocation13_spill] sm:$0xff] }
 0x3aa   :  { %v3094_v19 = vld [vmem:[#allocation7_spill] sm:$0xff] }
 0x3ab   :  { %1498 = vtanh.f32 %v863_v40  ;;  %v855_v54 = vsel %vm854_vm6, %v1497_v13, %v851_v50  ;;  %v3086_v50 = vld [vmem:[#allocation32_spill] sm:$0xff]  ;;  %v3089_v40 = vld [vmem:[#allocation33_spill] sm:$0xff]  ;;  %v119_v58 = vadd.f32 %v3094_v19, %v3093_v18 }
 0x3ac   :  { %v860_v12 = vsel %vm857_vm7, %v859_v32, %v855_v54  ;;  %v3090_v13 = vld [vmem:[#allocation5_spill] sm:$0xff]  ;;  %v3096_v54 = vld [vmem:[#allocation10_spill] sm:$0xff] }
 0x3ad   :  { %v865_v60 = vsub.f32 1.0, %v860_v12  ;;  %v867_v26 = vmul.f32 %v860_v12, %v2650_v62  ;;  %v3088_v62 = vld [vmem:[#allocation29_spill] sm:$0xff]  ;;  %v166_v32 = vadd.f32 %v3096_v54, %v3095_v16  ;;  %v3097_v12 = vld [vmem:[#allocation12_spill] sm:$0xff] }
 0x3b1   :  { %v1499_v22 = vpop.eup %1498 }
 0x3b2   :  { %v866_v0 = vmul.f32 %v1499_v22, %v865_v60  ;;  %v3098_v22 = vld [vmem:[#allocation14_spill] sm:$0xff] }
 0x3b4   :  { %v2793_v34 = vadd.f32 %v867_v26, %v866_v0 }
 0x3b6   :  { %885 = vmatmul.f32.vlgmr.msra.gmra.mxu0 %v2793_v34  ;;  %905 = vmatmul.f32.vlgmr.msra.gmra.mxu1 %v2793_v34 }
 0x3b7   :  { %925 = vmatmul.f32.vlgmr.msra.gmra.mxu2 %v2793_v34  ;;  %1131 = vmatpush.msra.mxu0 %v2658_v28 }
 0x3b8   :  { %1202 = vmatpush.msra.mxu1 %v2373_v30  ;;  %1222 = vmatpush.msra.mxu2 %v2517_v55 }
 0x3b9   :  { %1132 = vmatpush.msra.mxu0 %v2666_v24 }
 0x3ba   :  { %1203 = vmatpush.msra.mxu1 %v2381_v23  ;;  %1223 = vmatpush.msra.mxu2 %v2525_v7 }
 0x3bb   :  { %1133 = vmatpush.msra.mxu0 %v2674_v43 }
 0x3bc   :  { %1204 = vmatpush.msra.mxu1 %v2389_v33  ;;  %1224 = vmatpush.msra.mxu2 %v2533_v29 }
 0x3bd   :  { %1134 = vmatpush.msra.mxu0 %v2682_v10 }
 0x3be   :  { %1205 = vmatpush.msra.mxu1 %v2397_v41  ;;  %1225 = vmatpush.msra.mxu2 %v2541_v31 }
 0x3bf   :  { %1135 = vmatpush.msra.mxu0 %v2690_v2 }
 0x3c0   :  { %1206 = vmatpush.msra.mxu1 %v2405_v45  ;;  %1226 = vmatpush.msra.mxu2 %v2549_v35 }
 0x3c1   :  { %1136 = vmatpush.msra.mxu0 %v2698_v15 }
 0x3c2   :  { %1207 = vmatpush.msra.mxu1 %v2413_v49  ;;  %1227 = vmatpush.msra.mxu2 %v2557_v37 }
 0x3c3   :  { %1137 = vmatpush.msra.mxu0 %v2706_v27 }
 0x3c4   :  { %1208 = vmatpush.msra.mxu1 %v2421_v53  ;;  %1228 = vmatpush.msra.mxu2 %v2565_v38 }
 0x3c5   :  { %1138 = vmatpush.msra.mxu0 %v2714_v21 }
 0x3c6   :  { %1209 = vmatpush.msra.mxu1 %v2429_v56  ;;  %1229 = vmatpush.msra.mxu2 %v2573_v42 }
 0x3c7   :  { %1139 = vmatpush.msra.mxu0 %v2722_v25 }
 0x3c8   :  { %1210 = vmatpush.msra.mxu1 %v2437_v59  ;;  %1230 = vmatpush.msra.mxu2 %v2581_v44 }
 0x3c9   :  { %1140 = vmatpush.msra.mxu0 %v2730_v1 }
 0x3ca   :  { %1211 = vmatpush.msra.mxu1 %v2445_v61  ;;  %1231 = vmatpush.msra.mxu2 %v2589_v46 }
 0x3cb   :  { %1141 = vmatpush.msra.mxu0 %v2738_v36 }
 0x3cc   :  { %1212 = vmatpush.msra.mxu1 %v2453_v63  ;;  %1232 = vmatpush.msra.mxu2 %v2597_v47 }
 0x3cd   :  { %1142 = vmatpush.msra.mxu0 %v2746_v8 }
 0x3ce   :  { %1213 = vmatpush.msra.mxu1 %v2461_v5  ;;  %1233 = vmatpush.msra.mxu2 %v2605_v48 }
 0x3cf   :  { %1143 = vmatpush.msra.mxu0 %v2754_v20 }
 0x3d0   :  { %1214 = vmatpush.msra.mxu1 %v2469_v9  ;;  %1234 = vmatpush.msra.mxu2 %v3083_v4 }
 0x3d1   :  { %1144 = vmatpush.msra.mxu0 %v3084_v3 }
 0x3d2   :  { %1215 = vmatpush.msra.mxu1 %v3085_v11  ;;  %1235 = vmatpush.msra.mxu2 %v3086_v50 }
 0x3d3   :  { %1145 = vmatpush.msra.mxu0 %v3087_v51 }
 0x3d4   :  { %1216 = vmatpush.msra.mxu1 %v3088_v62  ;;  %1236 = vmatpush.msra.mxu2 %v3089_v40 }
 0x3d5   :  { %1146 = vmatpush.msra.mxu0 %v3090_v13 }
 0x3d6   :  { %1217 = vmatpush.msra.mxu1 %v3091_v52  ;;  %1237 = vmatpush.msra.mxu2 %v3092_v14 }
 0x433   :  { %v886_v17 = vpop.f32.mrf.mxu0  ;;  %v906_v6 = vpop.f32.mrf.mxu1 }
 0x434   :  { %v887_v60 = vadd.f32 %v886_v17, %v3097_v12  ;;  %v907_v0 = vadd.f32 %v906_v6, %v3098_v22 }
 0x436   :  { %v933_v26 = vadd.f32 %v887_v60, %v119_v58  ;;  %v953_v40 = vadd.f32 %v907_v0, %v166_v32 }
 0x438   :  { %v1440_v62 = vmul.f32 -1.442695, %v933_v26  ;;  %v1441_v13 = vmul.f32 -1.442695, %v953_v40 }
 0x43a   :  { %1500 = vpow2.f32 %v1440_v62  ;;  %v926_v32 = vpop.f32.mrf.mxu2 }
 0x43b   :  { %1502 = vpow2.f32 %v1441_v13 }
 0x440   :  { %v1501_v52 = vpop.eup %1500 }
 0x441   :  { %v1503_v14 = vpop.eup %1502  ;;  %v937_v51 = vadd.f32 1.0, %v1501_v52  ;;  %v927_v52 = vadd.f32 %v926_v32, %v2249_v39 }
 0x442   :  { %v957_v50 = vadd.f32 1.0, %v1503_v14 }
 0x443   :  { %1504 = vrcp.f32 %v937_v51  ;;  %v949_v12 = vand.u32 2147483648, %v937_v51  ;;  %v947_v58 = vand.u32 2147483647, %v937_v51  ;;  %vm943_vm9 = vweird.f32 %v937_v51 }
 0x444   :  { %1506 = vrcp.f32 %v957_v50  ;;  %vm963_vm13 = vweird.f32 %v957_v50  ;;  %v967_v22 = vand.u32 2147483647, %v957_v50 }
 0x445   :  { %v950_v13 = vor.u32 1.1754944e-38, %v949_v12  ;;  %vm948_vm11 = vcmp.eq.f32.partialorder %v947_v58, 8.507059e+37 }
 0x446   :  { %vm968_vm15 = vcmp.eq.f32.partialorder %v967_v22, 8.507059e+37 }
 0x449   :  { %v1505_v19 = vpop.eup %1504 }
 0x44a   :  { %v1507_v18 = vpop.eup %1506  ;;  %v939_v11 = vmul.f32 %v1505_v19, %v937_v51  ;;  %vm944_vm8 = vweird.f32 %v1505_v19 }
 0x44b   :  { %v959_v54 = vmul.f32 %v1507_v18, %v957_v50  ;;  %vm945_vm10 = vmor %vm943_vm9, %vm944_vm8  ;;  %vm964_vm12 = vweird.f32 %v1507_v18 }
 0x44c   :  { %v940_v16 = vsub.f32 1.0, %v939_v11  ;;  %v3099_v11 = vld [vmem:[#allocation19_spill] sm:$0xff]  ;;  %vm965_vm14 = vmor %vm963_vm13, %vm964_vm12 }
 0x44d   :  { %v960_v17 = vsub.f32 1.0, %v959_v54  ;;  %v213_v26 = vadd.f32 %v3099_v11, %v2251_v57 }
 0x44e   :  { %v941_v6 = vmul.f32 %v1505_v19, %v940_v16  ;;  %v969_v16 = vand.u32 2147483648, %v957_v50 }
 0x44f   :  { %v961_v40 = vmul.f32 %v1507_v18, %v960_v17 }
 0x450   :  { %v942_v62 = vadd.f32 %v1505_v19, %v941_v6  ;;  %v970_v51 = vor.u32 1.1754944e-38, %v969_v16 }
 0x451   :  { %v962_v0 = vadd.f32 %v1507_v18, %v961_v40 }
 0x452   :  { %v946_v14 = vsel %vm945_vm10, %v1505_v19, %v942_v62 }
 0x453   :  { %v951_v60 = vsel %vm948_vm11, %v950_v13, %v946_v14  ;;  %v966_v17 = vsel %vm965_vm14, %v1507_v18, %v962_v0 }
 0x454   :  { %v973_v54 = vmul.f32 %v951_v60, %v927_v52  ;;  %v971_v12 = vsel %vm968_vm15, %v970_v51, %v966_v17 }
 0x455   :  { %v976_v6 = vsub.f32 1.0, %v971_v12  ;;  %v978_v32 = vmul.f32 %v971_v12, %v2793_v34 }
 0x456   :  { %v974_v3 = vadd.f32 %v973_v54, %v213_v26 }
 0x458   :  { %1508 = vtanh.f32 %v974_v3 }
 0x45e   :  { %v1509_v19 = vpop.eup %1508 }
 0x45f   :  { %v977_v58 = vmul.f32 %v1509_v19, %v976_v6 }
 0x461   :  { %v2856_v40 = vadd.f32 %v978_v32, %v977_v58  ;;  %v3115_v58 = vld [vmem:[#allocation22_spill] sm:$0xff] }
 0x462   :  { %v216_v32 = vadd.f32 %v3115_v58, %v2251_v57 }
 0x463   :  { %996 = vmatmul.f32.vlgmr.msra.gmra.mxu3 %v2856_v40  ;;  %1016 = vmatmul.f32.vlgmr.msrb.gmra.mxu0 %v2856_v40 }
 0x464   :  { %1036 = vmatmul.f32.vlgmr.msrb.gmra.mxu1 %v2856_v40  ;;  %1242 = vmatpush.msra.mxu3 %v2658_v28 }
 0x465   :  { %1313 = vmatpush.msrb.mxu0 %v2373_v30  ;;  %1333 = vmatpush.msrb.mxu1 %v2517_v55  ;;  %v3100_v30 = vld [vmem:[#allocation3_spill] sm:$0xff]  ;;  %v3111_v55 = vld [vmem:[#allocation14_spill] sm:$0xff] }
 0x466   :  { %1243 = vmatpush.msra.mxu3 %v2666_v24 }
 0x467   :  { %1314 = vmatpush.msrb.mxu0 %v2381_v23  ;;  %1334 = vmatpush.msrb.mxu1 %v2525_v7  ;;  %v3101_v23 = vld [vmem:[#allocation28_spill] sm:$0xff] }
 0x468   :  { %1244 = vmatpush.msra.mxu3 %v2674_v43 }
 0x469   :  { %1315 = vmatpush.msrb.mxu0 %v2389_v33  ;;  %1335 = vmatpush.msrb.mxu1 %v2533_v29  ;;  %v3102_v33 = vld [vmem:[#allocation32_spill] sm:$0xff] }
 0x46a   :  { %1245 = vmatpush.msra.mxu3 %v2682_v10 }
 0x46b   :  { %1316 = vmatpush.msrb.mxu0 %v2397_v41  ;;  %1336 = vmatpush.msrb.mxu1 %v2541_v31  ;;  %v3103_v41 = vld [vmem:[#allocation6_spill] sm:$0xff] }
 0x46c   :  { %1246 = vmatpush.msra.mxu3 %v2690_v2 }
 0x46d   :  { %1317 = vmatpush.msrb.mxu0 %v2405_v45  ;;  %1337 = vmatpush.msrb.mxu1 %v2549_v35  ;;  %v3104_v45 = vld [vmem:[#allocation29_spill] sm:$0xff] }
 0x46e   :  { %1247 = vmatpush.msra.mxu3 %v2698_v15 }
 0x46f   :  { %1318 = vmatpush.msrb.mxu0 %v2413_v49  ;;  %1338 = vmatpush.msrb.mxu1 %v2557_v37  ;;  %v3105_v49 = vld [vmem:[#allocation33_spill] sm:$0xff]  ;;  %v3112_v37 = vld [vmem:[#allocation11_spill] sm:$0xff] }
 0x470   :  { %1248 = vmatpush.msra.mxu3 %v2706_v27 }
 0x471   :  { %1319 = vmatpush.msrb.mxu0 %v2421_v53  ;;  %1339 = vmatpush.msrb.mxu1 %v2565_v38  ;;  %v3106_v53 = vld [vmem:[#allocation5_spill] sm:$0xff]  ;;  %v3113_v38 = vld [vmem:[#allocation8_spill] sm:$0xff] }
 0x472   :  { %1249 = vmatpush.msra.mxu3 %v2714_v21 }
 0x473   :  { %1320 = vmatpush.msrb.mxu0 %v2429_v56  ;;  %1340 = vmatpush.msrb.mxu1 %v2573_v42  ;;  %v3107_v56 = vld [vmem:[#allocation30_spill] sm:$0xff]  ;;  %v122_v42 = vadd.f32 %v3113_v38, %v3112_v37 }
 0x474   :  { %1250 = vmatpush.msra.mxu3 %v2722_v25 }
 0x475   :  { %1321 = vmatpush.msrb.mxu0 %v2437_v59  ;;  %1341 = vmatpush.msrb.mxu1 %v2581_v44  ;;  %v3108_v59 = vld [vmem:[#allocation34_spill] sm:$0xff]  ;;  %v3114_v44 = vld [vmem:[#allocation12_spill] sm:$0xff] }
 0x476   :  { %1251 = vmatpush.msra.mxu3 %v2730_v1 }
 0x477   :  { %1322 = vmatpush.msrb.mxu0 %v2445_v61  ;;  %1342 = vmatpush.msrb.mxu1 %v2589_v46 }
 0x478   :  { %1252 = vmatpush.msra.mxu3 %v2738_v36 }
 0x479   :  { %1323 = vmatpush.msrb.mxu0 %v2453_v63  ;;  %1343 = vmatpush.msrb.mxu1 %v2597_v47  ;;  %v3109_v63 = vld [vmem:[#allocation13_spill] sm:$0xff] }
 0x47a   :  { %1253 = vmatpush.msra.mxu3 %v2746_v8 }
 0x47b   :  { %1324 = vmatpush.msrb.mxu0 %v2461_v5  ;;  %1344 = vmatpush.msrb.mxu1 %v2605_v48  ;;  %v3110_v5 = vld [vmem:[#allocation15_spill] sm:$0xff] }
 0x47c   :  { %1254 = vmatpush.msra.mxu3 %v2754_v20 }
 0x47d   :  { %1325 = vmatpush.msrb.mxu0 %v2469_v9  ;;  %1345 = vmatpush.msrb.mxu1 %v3083_v4  ;;  %v169_v9 = vadd.f32 %v3110_v5, %v3109_v63 }
 0x47e   :  { %1255 = vmatpush.msra.mxu3 %v3100_v30 }
 0x47f   :  { %1326 = vmatpush.msrb.mxu0 %v3101_v23  ;;  %1346 = vmatpush.msrb.mxu1 %v3102_v33 }
 0x480   :  { %1256 = vmatpush.msra.mxu3 %v3103_v41 }
 0x481   :  { %1327 = vmatpush.msrb.mxu0 %v3104_v45  ;;  %1347 = vmatpush.msrb.mxu1 %v3105_v49 }
 0x482   :  { %1257 = vmatpush.msra.mxu3 %v3106_v53 }
 0x483   :  { %1328 = vmatpush.msrb.mxu0 %v3107_v56  ;;  %1348 = vmatpush.msrb.mxu1 %v3108_v59 }
 0x4e0   :  { %v1017_v61 = vpop.f32.mrf.mxu0 }
 0x4e1   :  { %v1018_v7 = vadd.f32 %v1017_v61, %v3111_v55  ;;  %v1037_v26 = vpop.f32.mrf.mxu1 }
 0x4e2   :  { %v1038_v51 = vadd.f32 %v1037_v26, %v2249_v39 }
 0x4e3   :  { %v1064_v29 = vadd.f32 %v1018_v7, %v169_v9 }
 0x4e5   :  { %v1443_v31 = vmul.f32 -1.442695, %v1064_v29 }
 0x4e6   :  { %v997_v35 = vpop.f32.mrf.mxu3 }
 0x4e7   :  { %1510 = vpow2.f32 %v1443_v31  ;;  %v998_v46 = vadd.f32 %v997_v35, %v3114_v44 }
 0x4e9   :  { %v1044_v47 = vadd.f32 %v998_v46, %v122_v42 }
 0x4eb   :  { %v1442_v48 = vmul.f32 -1.442695, %v1044_v47 }
 0x4ed   :  { %v1511_v34 = vpop.eup %1510  ;;  %1512 = vpow2.f32 %v1442_v48 }
 0x4ee   :  { %v1068_v4 = vadd.f32 1.0, %v1511_v34 }
 0x4f0   :  { %1514 = vrcp.f32 %v1068_v4  ;;  %v1080_v23 = vand.u32 2147483648, %v1068_v4  ;;  %vm1074_vm5 = vweird.f32 %v1068_v4  ;;  %v1078_v45 = vand.u32 2147483647, %v1068_v4 }
 0x4f2   :  { %v1081_v59 = vor.u32 1.1754944e-38, %v1080_v23  ;;  %vm1079_vm7 = vcmp.eq.f32.partialorder %v1078_v45, 8.507059e+37  ;;  %v3119_v45 = vld [vmem:[#allocation20_spill] sm:$0xff] }
 0x4f3   :  { %v1513_v3 = vpop.eup %1512 }
 0x4f4   :  { %v1048_v50 = vadd.f32 1.0, %v1513_v3 }
 0x4f6   :  { %1516 = vrcp.f32 %v1048_v50  ;;  %v1515_v18 = vpop.eup %1514  ;;  %v1060_v60 = vand.u32 2147483648, %v1048_v50  ;;  %v1058_v11 = vand.u32 2147483647, %v1048_v50  ;;  %vm1054_vm1 = vweird.f32 %v1048_v50 }
 0x4f7   :  { %v1070_v22 = vmul.f32 %v1515_v18, %v1068_v4  ;;  %vm1075_vm4 = vweird.f32 %v1515_v18 }
 0x4f8   :  { %v1061_v17 = vor.u32 1.1754944e-38, %v1060_v60  ;;  %vm1059_vm3 = vcmp.eq.f32.partialorder %v1058_v11, 8.507059e+37  ;;  %vm1076_vm6 = vmor %vm1074_vm5, %vm1075_vm4  ;;  %v3118_v60 = vld [vmem:[#allocation25_spill] sm:$0xff] }
 0x4f9   :  { %v1071_v52 = vsub.f32 1.0, %v1070_v22 }
 0x4fb   :  { %v1072_v54 = vmul.f32 %v1515_v18, %v1071_v52 }
 0x4fc   :  { %v1517_v62 = vpop.eup %1516 }
 0x4fd   :  { %v1050_v13 = vmul.f32 %v1517_v62, %v1048_v50  ;;  %vm1055_vm0 = vweird.f32 %v1517_v62  ;;  %v1073_v19 = vadd.f32 %v1515_v18, %v1072_v54 }
 0x4fe   :  { %vm1056_vm2 = vmor %vm1054_vm1, %vm1055_vm0 }
 0x4ff   :  { %v1051_v14 = vsub.f32 1.0, %v1050_v13  ;;  %v1077_v56 = vsel %vm1076_vm6, %v1515_v18, %v1073_v19 }
 0x500   :  { %v1082_v61 = vsel %vm1079_vm7, %v1081_v59, %v1077_v56 }
 0x501   :  { %v1052_v0 = vmul.f32 %v1517_v62, %v1051_v14  ;;  %v1087_v5 = vsub.f32 1.0, %v1082_v61  ;;  %v1089_v29 = vmul.f32 %v1082_v61, %v2856_v40 }
 0x503   :  { %v1053_v16 = vadd.f32 %v1517_v62, %v1052_v0  ;;  %v219_v0 = vadd.f32 %v3118_v60, %v2251_v57 }
 0x505   :  { %v1057_v12 = vsel %vm1056_vm2, %v1517_v62, %v1053_v16 }
 0x506   :  { %v1062_v6 = vsel %vm1059_vm3, %v1061_v17, %v1057_v12 }
 0x507   :  { %v1084_v33 = vmul.f32 %v1062_v6, %v1038_v51 }
 0x509   :  { %v1085_v49 = vadd.f32 %v1084_v33, %v216_v32 }
 0x50b   :  { %1518 = vtanh.f32 %v1085_v49  ;;  %v128_v49 = vadd.f32 %v3119_v45, %v3112_v37 }
 0x511   :  { %v1519_v9 = vpop.eup %1518 }
 0x512   :  { %v1088_v7 = vmul.f32 %v1519_v9, %v1087_v5  ;;  %v3120_v9 = vld [vmem:[#allocation21_spill] sm:$0xff] }
 0x514   :  { %v2919_v31 = vadd.f32 %v1089_v29, %v1088_v7  ;;  %v175_v7 = vadd.f32 %v3120_v9, %v3109_v63 }
 0x516   :  { %1107 = vmatmul.f32.vlgmr.msrb.gmra.mxu2 %v2919_v31  ;;  %1127 = vmatmul.f32.vlgmr.msrb.gmra.mxu3 %v2919_v31 }
 0x517   :  { %1147 = vmatmul.f32.vlgmr.msra.gmra.mxu0 %v2919_v31  ;;  %1353 = vmatpush.msrb.mxu2 %v2658_v28 }
 0x519   :  { %1354 = vmatpush.msrb.mxu2 %v2666_v24 }
 0x51b   :  { %1355 = vmatpush.msrb.mxu2 %v2674_v43  ;;  %v3116_v43 = vld [vmem:[#allocation17_spill] sm:$0xff] }
 0x51d   :  { %1356 = vmatpush.msrb.mxu2 %v2682_v10  ;;  %v125_v10 = vadd.f32 %v3116_v43, %v3112_v37 }
 0x51f   :  { %1357 = vmatpush.msrb.mxu2 %v2690_v2  ;;  %v3117_v2 = vld [vmem:[#allocation18_spill] sm:$0xff] }
 0x521   :  { %1358 = vmatpush.msrb.mxu2 %v2698_v15  ;;  %v172_v15 = vadd.f32 %v3117_v2, %v3109_v63 }
 0x523   :  { %1359 = vmatpush.msrb.mxu2 %v2706_v27 }
 0x525   :  { %1360 = vmatpush.msrb.mxu2 %v2714_v21 }
 0x527   :  { %1361 = vmatpush.msrb.mxu2 %v2722_v25 }
 0x529   :  { %1362 = vmatpush.msrb.mxu2 %v2730_v1 }
 0x52b   :  { %1363 = vmatpush.msrb.mxu2 %v2738_v36 }
 0x52d   :  { %1364 = vmatpush.msrb.mxu2 %v2746_v8 }
 0x52f   :  { %1365 = vmatpush.msrb.mxu2 %v2754_v20 }
 0x531   :  { %1366 = vmatpush.msrb.mxu2 %v3100_v30 }
 0x533   :  { %1367 = vmatpush.msrb.mxu2 %v3103_v41 }
 0x535   :  { %1368 = vmatpush.msrb.mxu2 %v3106_v53 }
 0x594   :  { %v1148_v3 = vpop.f32.mrf.mxu0 }
 0x595   :  { %v1149_v62 = vadd.f32 %v1148_v3, %v2249_v39 }
 0x599   :  { %v1108_v28 = vpop.f32.mrf.mxu2  ;;  %v1128_v24 = vpop.f32.mrf.mxu3 }
 0x59a   :  { %v1109_v27 = vadd.f32 %v1108_v28, %v3114_v44  ;;  %v1129_v21 = vadd.f32 %v1128_v24, %v3111_v55 }
 0x59c   :  { %v1155_v25 = vadd.f32 %v1109_v27, %v125_v10  ;;  %v1175_v1 = vadd.f32 %v1129_v21, %v172_v15 }
 0x59e   :  { %v1444_v36 = vmul.f32 -1.442695, %v1155_v25  ;;  %v1445_v8 = vmul.f32 -1.442695, %v1175_v1 }
 0x5a0   :  { %1520 = vpow2.f32 %v1444_v36 }
 0x5a1   :  { %1522 = vpow2.f32 %v1445_v8 }
 0x5a6   :  { %v1521_v20 = vpop.eup %1520 }
 0x5a7   :  { %v1523_v40 = vpop.eup %1522  ;;  %v1159_v30 = vadd.f32 1.0, %v1521_v20 }
 0x5a8   :  { %v1179_v41 = vadd.f32 1.0, %v1523_v40 }
 0x5a9   :  { %1524 = vrcp.f32 %v1159_v30  ;;  %v1171_v47 = vand.u32 2147483648, %v1159_v30  ;;  %v1169_v4 = vand.u32 2147483647, %v1159_v30  ;;  %vm1165_vm9 = vweird.f32 %v1159_v30 }
 0x5aa   :  { %1526 = vrcp.f32 %v1179_v41  ;;  %v1191_v11 = vand.u32 2147483648, %v1179_v41  ;;  %vm1185_vm13 = vweird.f32 %v1179_v41  ;;  %v1189_v54 = vand.u32 2147483647, %v1179_v41 }
 0x5ab   :  { %v1172_v22 = vor.u32 1.1754944e-38, %v1171_v47  ;;  %vm1170_vm11 = vcmp.eq.f32.partialorder %v1169_v4, 8.507059e+37 }
 0x5ac   :  { %v1192_v51 = vor.u32 1.1754944e-38, %v1191_v11  ;;  %vm1190_vm15 = vcmp.eq.f32.partialorder %v1189_v54, 8.507059e+37 }
 0x5af   :  { %v1525_v53 = vpop.eup %1524 }
 0x5b0   :  { %v1527_v35 = vpop.eup %1526  ;;  %v1161_v38 = vmul.f32 %v1525_v53, %v1159_v30  ;;  %vm1166_vm8 = vweird.f32 %v1525_v53 }
 0x5b1   :  { %v1181_v42 = vmul.f32 %v1527_v35, %v1179_v41  ;;  %vm1167_vm10 = vmor %vm1165_vm9, %vm1166_vm8  ;;  %vm1186_vm12 = vweird.f32 %v1527_v35 }
 0x5b2   :  { %v1162_v46 = vsub.f32 1.0, %v1161_v38  ;;  %vm1187_vm14 = vmor %vm1185_vm13, %vm1186_vm12 }
 0x5b3   :  { %v1182_v48 = vsub.f32 1.0, %v1181_v42  ;;  %v3121_v42 = vld [vmem:[#allocation26_spill] sm:$0xff] }
 0x5b4   :  { %v1163_v34 = vmul.f32 %v1525_v53, %v1162_v46  ;;  %v222_v46 = vadd.f32 %v3121_v42, %v2251_v57 }
 0x5b5   :  { %v1183_v50 = vmul.f32 %v1527_v35, %v1182_v48 }
 0x5b6   :  { %v1164_v18 = vadd.f32 %v1525_v53, %v1163_v34 }
 0x5b7   :  { %v1184_v14 = vadd.f32 %v1527_v35, %v1183_v50 }
 0x5b8   :  { %v1168_v13 = vsel %vm1167_vm10, %v1525_v53, %v1164_v18 }
 0x5b9   :  { %v1173_v52 = vsel %vm1170_vm11, %v1172_v22, %v1168_v13  ;;  %v1188_v17 = vsel %vm1187_vm14, %v1527_v35, %v1184_v14 }
 0x5ba   :  { %v1195_v26 = vmul.f32 %v1173_v52, %v1149_v62  ;;  %v1193_v12 = vsel %vm1190_vm15, %v1192_v51, %v1188_v17  ;;  %v3123_v51 = vld [vmem:[#allocation24_spill] sm:$0xff] }
 0x5bb   :  { %v1198_v6 = vsub.f32 1.0, %v1193_v12  ;;  %v1200_v32 = vmul.f32 %v1193_v12, %v2919_v31  ;;  %v178_v12 = vadd.f32 %v3123_v51, %v3109_v63 }
 0x5bc   :  { %v1196_v16 = vadd.f32 %v1195_v26, %v219_v0 }
 0x5be   :  { %1528 = vtanh.f32 %v1196_v16  ;;  %v3122_v16 = vld [vmem:[#allocation23_spill] sm:$0xff] }
 0x5bf   :  { %v131_v17 = vadd.f32 %v3122_v16, %v3112_v37 }
 0x5c4   :  { %v1529_v19 = vpop.eup %1528 }
 0x5c5   :  { %v1199_v58 = vmul.f32 %v1529_v19, %v1198_v6 }
 0x5c7   :  { %v1201_v23 = vadd.f32 %v1200_v32, %v1199_v58 }
 0x5c9   :  { %1218 = vmatmul.f32.vlgmr.msra.gmra.mxu1 %v1201_v23  ;;  %1238 = vmatmul.f32.vlgmr.msra.gmra.mxu2 %v1201_v23 }
 0x5ca   :  { %1258 = vmatmul.f32.vlgmr.msra.gmra.mxu3 %v1201_v23 }
 0x646   :  { %v1219_v33 = vpop.f32.mrf.mxu1 }
 0x647   :  { %v1220_v56 = vadd.f32 %v1219_v33, %v3114_v44 }
 0x649   :  { %v1266_v59 = vadd.f32 %v1220_v56, %v128_v49 }
 0x64b   :  { %v1446_v61 = vmul.f32 -1.442695, %v1266_v59 }
 0x64c   :  { %v1239_v5 = vpop.f32.mrf.mxu2 }
 0x64d   :  { %1530 = vpow2.f32 %v1446_v61  ;;  %v1240_v29 = vadd.f32 %v1239_v5, %v3111_v55  ;;  %v1259_v20 = vpop.f32.mrf.mxu3 }
 0x64e   :  { %v1260_v35 = vadd.f32 %v1259_v20, %v2249_v39 }
 0x64f   :  { %v1286_v31 = vadd.f32 %v1240_v29, %v175_v7 }
 0x651   :  { %v1447_v28 = vmul.f32 -1.442695, %v1286_v31 }
 0x653   :  { %v1531_v24 = vpop.eup %1530  ;;  %1532 = vpow2.f32 %v1447_v28 }
 0x654   :  { %v1270_v43 = vadd.f32 1.0, %v1531_v24 }
 0x656   :  { %1534 = vrcp.f32 %v1270_v43  ;;  %v1282_v25 = vand.u32 2147483648, %v1270_v43  ;;  %v1280_v36 = vand.u32 2147483647, %v1270_v43  ;;  %vm1276_vm1 = vweird.f32 %v1270_v43 }
 0x658   :  { %v1283_v41 = vor.u32 1.1754944e-38, %v1282_v25  ;;  %vm1281_vm3 = vcmp.eq.f32.partialorder %v1280_v36, 8.507059e+37 }
 0x659   :  { %v1533_v10 = vpop.eup %1532 }
 0x65a   :  { %v1290_v2 = vadd.f32 1.0, %v1533_v10 }
 0x65c   :  { %v1535_v15 = vpop.eup %1534  ;;  %1536 = vrcp.f32 %v1290_v2  ;;  %v1302_v4 = vand.u32 2147483648, %v1290_v2  ;;  %v1300_v3 = vand.u32 2147483647, %v1290_v2  ;;  %vm1296_vm5 = vweird.f32 %v1290_v2 }
 0x65d   :  { %v1272_v27 = vmul.f32 %v1535_v15, %v1270_v43  ;;  %vm1277_vm0 = vweird.f32 %v1535_v15 }
 0x65e   :  { %vm1278_vm2 = vmor %vm1276_vm1, %vm1277_vm0  ;;  %v1303_v62 = vor.u32 1.1754944e-38, %v1302_v4  ;;  %vm1301_vm7 = vcmp.eq.f32.partialorder %v1300_v3, 8.507059e+37 }
 0x65f   :  { %v1273_v21 = vsub.f32 1.0, %v1272_v27 }
 0x661   :  { %v1274_v1 = vmul.f32 %v1535_v15, %v1273_v21  ;;  %v3124_v21 = vld [vmem:[#allocation27_spill] sm:$0xff] }
 0x662   :  { %v1537_v8 = vpop.eup %1536  ;;  %v225_v25 = vadd.f32 %v3124_v21, %v2251_v57 }
 0x663   :  { %v1292_v40 = vmul.f32 %v1537_v8, %v1290_v2  ;;  %v1275_v30 = vadd.f32 %v1535_v15, %v1274_v1  ;;  %vm1297_vm4 = vweird.f32 %v1537_v8 }
 0x664   :  { %vm1298_vm6 = vmor %vm1296_vm5, %vm1297_vm4 }
 0x665   :  { %v1293_v53 = vsub.f32 1.0, %v1292_v40  ;;  %v1279_v38 = vsel %vm1278_vm2, %v1535_v15, %v1275_v30 }
 0x666   :  { %v1284_v47 = vsel %vm1281_vm3, %v1283_v41, %v1279_v38 }
 0x667   :  { %v1306_v48 = vmul.f32 %v1284_v47, %v1260_v35  ;;  %v1294_v34 = vmul.f32 %v1537_v8, %v1293_v53 }
 0x669   :  { %v1307_v50 = vadd.f32 %v1306_v48, %v222_v46  ;;  %v1295_v18 = vadd.f32 %v1537_v8, %v1294_v34 }
 0x66b   :  { %1538 = vtanh.f32 %v1307_v50  ;;  %v1299_v22 = vsel %vm1298_vm6, %v1537_v8, %v1295_v18 }
 0x66c   :  { %v1304_v13 = vsel %vm1301_vm7, %v1303_v62, %v1299_v22 }
 0x66d   :  { %v1309_v52 = vsub.f32 1.0, %v1304_v13  ;;  %v1311_v0 = vmul.f32 %v1304_v13, %v1201_v23 }
 0x671   :  { %v1539_v14 = vpop.eup %1538 }
 0x672   :  { %v1310_v60 = vmul.f32 %v1539_v14, %v1309_v52 }
 0x674   :  { %v1312_v11 = vadd.f32 %v1311_v0, %v1310_v60 }
 0x676   :  { %1329 = vmatmul.f32.vlgmr.msrb.gmra.mxu0 %v1312_v11  ;;  %1349 = vmatmul.f32.vlgmr.msrb.gmra.mxu1 %v1312_v11 }
 0x677   :  { %1369 = vmatmul.f32.vlgmr.msrb.gmra.mxu2 %v1312_v11 }
 0x6f3   :  { %v1330_v26 = vpop.f32.mrf.mxu0  ;;  %v1350_v54 = vpop.f32.mrf.mxu1 }
 0x6f4   :  { %v1331_v6 = vadd.f32 %v1330_v26, %v3114_v44  ;;  %v1351_v19 = vadd.f32 %v1350_v54, %v3111_v55 }
 0x6f6   :  { %v1377_v58 = vadd.f32 %v1331_v6, %v131_v17  ;;  %v1397_v32 = vadd.f32 %v1351_v19, %v178_v12 }
 0x6f8   :  { %v1448_v33 = vmul.f32 -1.442695, %v1377_v58  ;;  %v1449_v23 = vmul.f32 -1.442695, %v1397_v32 }
 0x6fa   :  { %1540 = vpow2.f32 %v1448_v33  ;;  %v1370_v28 = vpop.f32.mrf.mxu2 }
 0x6fb   :  { %1542 = vpow2.f32 %v1449_v23  ;;  %v1371_v10 = vadd.f32 %v1370_v28, %v2249_v39 }
 0x700   :  { %v1541_v45 = vpop.eup %1540 }
 0x701   :  { %v1543_v49 = vpop.eup %1542  ;;  %v1381_v56 = vadd.f32 1.0, %v1541_v45 }
 0x702   :  { %v1401_v59 = vadd.f32 1.0, %v1543_v49 }
 0x703   :  { %1544 = vrcp.f32 %v1381_v56  ;;  %v1393_v7 = vand.u32 2147483648, %v1381_v56  ;;  %v1391_v29 = vand.u32 2147483647, %v1381_v56  ;;  %vm1387_vm9 = vweird.f32 %v1381_v56 }
 0x704   :  { %1546 = vrcp.f32 %v1401_v59  ;;  %v1413_v1 = vand.u32 2147483648, %v1401_v59  ;;  %vm1407_vm13 = vweird.f32 %v1401_v59  ;;  %v1411_v8 = vand.u32 2147483647, %v1401_v59 }
 0x705   :  { %v1394_v43 = vor.u32 1.1754944e-38, %v1393_v7  ;;  %vm1392_vm11 = vcmp.eq.f32.partialorder %v1391_v29, 8.507059e+37 }
 0x706   :  { %v1414_v30 = vor.u32 1.1754944e-38, %v1413_v1  ;;  %vm1412_vm15 = vcmp.eq.f32.partialorder %v1411_v8, 8.507059e+37 }
 0x709   :  { %v1545_v37 = vpop.eup %1544 }
 0x70a   :  { %v1547_v61 = vpop.eup %1546  ;;  %v1383_v5 = vmul.f32 %v1545_v37, %v1381_v56  ;;  %vm1388_vm8 = vweird.f32 %v1545_v37 }
 0x70b   :  { %v1403_v63 = vmul.f32 %v1547_v61, %v1401_v59  ;;  %vm1389_vm10 = vmor %vm1387_vm9, %vm1388_vm8  ;;  %vm1408_vm12 = vweird.f32 %v1547_v61 }
 0x70c   :  { %v1384_v9 = vsub.f32 1.0, %v1383_v5  ;;  %vm1409_vm14 = vmor %vm1407_vm13, %vm1408_vm12 }
 0x70d   :  { %v1404_v44 = vsub.f32 1.0, %v1403_v63 }
 0x70e   :  { %v1385_v55 = vmul.f32 %v1545_v37, %v1384_v9 }
 0x70f   :  { %v1405_v31 = vmul.f32 %v1547_v61, %v1404_v44 }
 0x710   :  { %v1386_v24 = vadd.f32 %v1545_v37, %v1385_v55 }
 0x711   :  { %v1406_v27 = vadd.f32 %v1547_v61, %v1405_v31 }
 0x712   :  { %v1390_v2 = vsel %vm1389_vm10, %v1545_v37, %v1386_v24 }
 0x713   :  { %v1395_v15 = vsel %vm1392_vm11, %v1394_v43, %v1390_v2  ;;  %v1410_v40 = vsel %vm1409_vm14, %v1547_v61, %v1406_v27 }
 0x714   :  { %v1417_v36 = vmul.f32 %v1395_v15, %v1371_v10  ;;  %v1415_v41 = vsel %vm1412_vm15, %v1414_v30, %v1410_v40 }
 0x715   :  { %v1420_v39 = vsub.f32 1.0, %v1415_v41  ;;  %v1422_v38 = vmul.f32 %v1415_v41, %v1312_v11 }
 0x716   :  { %v1418_v20 = vadd.f32 %v1417_v36, %v225_v25 }
 0x718   :  { %1548 = vtanh.f32 %v1418_v20 }
 0x71e   :  { %v1549_v53 = vpop.eup %1548 }
 0x71f   :  { %v1421_v35 = vmul.f32 %v1549_v53, %v1420_v39 }
 0x721   :  { %v1423_v42 = vadd.f32 %v1422_v38, %v1421_v35 }
 0x723   :  { %1424 = vst [vmem:[%s2976_s5] sm:$0xff] %v1423_v42 }

// kernel: forward.3
= control target key start
LH: loop header
LB: loop body
LE: loop exit
PB: predicated region body
PF: predicated region fallthrough
CT: control target
= control target key end

     0   :  { %s2038_s18 = smov 0   ;;  %s3124_s0 = inlined_call_operand.vmem [shape: f32[10,10,8,128], index: 0, kind: input, shape index: {}]   ;;  %s3125_s1 = inlined_call_operand.vmem [shape: f32[8,128], index: 1, kind: input, shape index: {}]   ;;  %s3126_s2 = inlined_call_operand.vmem [shape: f32[10,128,384], index: 2, kind: input, shape index: {}]   ;;  %s3127_s3 = inlined_call_operand.vmem [shape: f32[10,128,384], index: 3, kind: input, shape index: {}]   ;;  %s3128_s4 = inlined_call_operand.vmem [shape: f32[10,8,384], index: 4, kind: input, shape index: {}]   ;;  %s3129_s5 = inlined_call_operand.vmem [shape: f32[10,10,8,128], index: 5, kind: output, shape index: {}]  }
   0x1 LB: > { %s1799_s19 = sadd.s32 4294967295, %s2006_s18   ;;  %p1803_p0 = scmp.ge.s32.totalorder %s2006_s18, 1  ;;  %s2006_s18 = sphi %s2038_s18, %s15_s18  }
   0x2   : > { %p217_p1 = scmp.lt.s32.totalorder %s2006_s18, 11 }
   0x4   : > { %p218_p2 = pnand %p1803_p0, %p217_p1 }
   0x6   : > { %221 = sbr.rel (%p218_p2) target bundleno = 1844 (0x734), region = 40 }
   0xb   : > { %p260_p3 = scmp.lt.s32.totalorder %s1799_s19, 9  ;;  %v2155_v43 = vld [vmem:[%s3125_s1] sm:$0xff] }
   0xd   : > { %s3265_s19 = smov (!%p260_p3, %s1799_s19), 9 }
   0xe   : > { %s1842_s20 = smul.u32 384, %s3265_s19 }
   0xf   : > { %s1841_s27 = smul.u32 80, %s3265_s19 }
  0x10   : > { %s2052_s23 = scalar_lea.vmem %s3127_s3, %s1842_s20  ;;  %s2064_s26 = scalar_lea.vmem %s3126_s2, %s1842_s20 }
  0x11   : > { %v2055_v0 = vld [vmem:[%s2052_s23 + $0x168] sm:$0xff]  ;;  %v2058_v1 = vld [vmem:[%s2052_s23 + $0x150] sm:$0xff]  ;;  %v2067_v2 = vld [vmem:[%s2052_s23 + $0x138] sm:$0xff]  ;;  %s2163_s7 = scalar_lea.vmem %s3124_s0, %s1841_s27  ;;  %s1843_s8 = smul.u32 24, %s3265_s19 }
  0x12   : > { %580 = vmatpush.msra.mxu3 %v2055_v0  ;;  %v2071_v3 = vld [vmem:[%s2052_s23 + $0x120] sm:$0xff]  ;;  %v340_v4 = vld [vmem:[%s2064_s26 + $0x168] sm:$0xff]  ;;  %v337_v5 = vld [vmem:[%s2064_s26 + $0x150] sm:$0xff]  ;;  %s2486_s14 = scalar_lea.vmem %s3129_s5, %s1841_s27 }
  0x13   : > { %351 = vmatpush.msra.mxu0 %v340_v4  ;;  %v2077_v6 = vld [vmem:[%s2052_s23 + $0x108] sm:$0xff]  ;;  %v334_v7 = vld [vmem:[%s2064_s26 + $0x138] sm:$0xff]  ;;  %v2082_v8 = vld [vmem:[%s2052_s23 + $0xf0] sm:$0xff]  ;;  %s279_s11 = scalar_lea.vmem %s3128_s4, %s1843_s8 }
  0x14   : > { %581 = vmatpush.msra.mxu3 %v2058_v1  ;;  %v331_v9 = vld [vmem:[%s2064_s26 + $0x120] sm:$0xff]  ;;  %v341_v10 = vld [vmem:[%s2064_s26 + $0x170] sm:$0xff]  ;;  %v338_v11 = vld [vmem:[%s2064_s26 + $0x158] sm:$0xff] }
  0x15   : > { %352 = vmatpush.msra.mxu0 %v337_v5  ;;  %v2089_v12 = vld [vmem:[%s2052_s23 + $0xd8] sm:$0xff]  ;;  %v328_v13 = vld [vmem:[%s2064_s26 + $0x108] sm:$0xff]  ;;  %398 = vmatpush.msra.mxu1 %v341_v10  ;;  %v335_v14 = vld [vmem:[%s2064_s26 + $0x140] sm:$0xff] }
  0x16   : > { %582 = vmatpush.msra.mxu3 %v2067_v2  ;;  %v2095_v15 = vld [vmem:[%s2052_s23 + $0xc0] sm:$0xff]  ;;  %v325_v16 = vld [vmem:[%s2064_s26 + $0xf0] sm:$0xff]  ;;  %v332_v17 = vld [vmem:[%s2064_s26 + $0x128] sm:$0xff] }
  0x17   : > { %353 = vmatpush.msra.mxu0 %v334_v7  ;;  %399 = vmatpush.msra.mxu1 %v338_v11  ;;  %v2101_v18 = vld [vmem:[%s2052_s23 + $0xa8] sm:$0xff]  ;;  %v322_v19 = vld [vmem:[%s2064_s26 + $0xd8] sm:$0xff]  ;;  %v329_v20 = vld [vmem:[%s2064_s26 + $0x110] sm:$0xff] }
  0x18   : > { %583 = vmatpush.msra.mxu3 %v2071_v3  ;;  %v2107_v21 = vld [vmem:[%s2052_s23 + $0x90] sm:$0xff]  ;;  %v319_v22 = vld [vmem:[%s2064_s26 + $0xc0] sm:$0xff]  ;;  %v326_v23 = vld [vmem:[%s2064_s26 + $0xf8] sm:$0xff] }
  0x19   : > { %354 = vmatpush.msra.mxu0 %v331_v9  ;;  %400 = vmatpush.msra.mxu1 %v335_v14  ;;  %v2113_v24 = vld [vmem:[%s2052_s23 + $0x78] sm:$0xff]  ;;  %v316_v25 = vld [vmem:[%s2064_s26 + $0xa8] sm:$0xff]  ;;  %v323_v26 = vld [vmem:[%s2064_s26 + $0xe0] sm:$0xff] }
  0x1a   : > { %584 = vmatpush.msra.mxu3 %v2077_v6  ;;  %v2119_v27 = vld [vmem:[%s2052_s23 + $0x60] sm:$0xff]  ;;  %v313_v28 = vld [vmem:[%s2064_s26 + $0x90] sm:$0xff]  ;;  %v320_v29 = vld [vmem:[%s2064_s26 + $0xc8] sm:$0xff] }
  0x1b   : > { %355 = vmatpush.msra.mxu0 %v328_v13  ;;  %401 = vmatpush.msra.mxu1 %v332_v17  ;;  %v2125_v30 = vld [vmem:[%s2052_s23 + $0x48] sm:$0xff]  ;;  %v310_v31 = vld [vmem:[%s2064_s26 + $0x78] sm:$0xff]  ;;  %v317_v32 = vld [vmem:[%s2064_s26 + $0xb0] sm:$0xff] }
  0x1c   : > { %585 = vmatpush.msra.mxu3 %v2082_v8  ;;  %v2131_v33 = vld [vmem:[%s2052_s23 + $0x30] sm:$0xff]  ;;  %v307_v34 = vld [vmem:[%s2064_s26 + $0x60] sm:$0xff]  ;;  %v314_v35 = vld [vmem:[%s2064_s26 + $0x98] sm:$0xff] }
  0x1d   : > { %356 = vmatpush.msra.mxu0 %v325_v16  ;;  %402 = vmatpush.msra.mxu1 %v329_v20  ;;  %v2137_v36 = vld [vmem:[%s2052_s23 + $0x18] sm:$0xff]  ;;  %v304_v37 = vld [vmem:[%s2064_s26 + $0x48] sm:$0xff]  ;;  %v311_v38 = vld [vmem:[%s2064_s26 + $0x80] sm:$0xff] }
  0x1e   : > { %586 = vmatpush.msra.mxu3 %v2089_v12  ;;  %3170 = vst [vmem:[#allocation3_spill] sm:$0xff] %v2137_v36  ;;  %v2144_v39 = vld [vmem:[%s2052_s23] sm:$0xff]  ;;  %v301_v40 = vld [vmem:[%s2064_s26 + $0x30] sm:$0xff]  ;;  %v308_v42 = vld [vmem:[%s2064_s26 + $0x68] sm:$0xff] }
  0x1f   : > { %357 = vmatpush.msra.mxu0 %v322_v19  ;;  %403 = vmatpush.msra.mxu1 %v326_v23  ;;  %3171 = vst [vmem:[#allocation4_spill] sm:$0xff] %v2144_v39  ;;  %v2149_v41 = vld [vmem:[%s2052_s23 + $0x170] sm:$0xff]  ;;  %v298_v44 = vld [vmem:[%s2064_s26 + $0x18] sm:$0xff]  ;;  %v295_v47 = vld [vmem:[%s2064_s26] sm:$0xff] }
  0x20   : > { %587 = vmatpush.msra.mxu3 %v2095_v15  ;;  %v2167_v45 = vld [vmem:[%s2052_s23 + $0x158] sm:$0xff]  ;;  %v305_v46 = vld [vmem:[%s2064_s26 + $0x50] sm:$0xff]  ;;  %v2174_v49 = vld [vmem:[%s2052_s23 + $0x140] sm:$0xff] }
  0x21   : > { %358 = vmatpush.msra.mxu0 %v319_v22  ;;  %404 = vmatpush.msra.mxu1 %v323_v26  ;;  %v342_v48 = vld [vmem:[%s2064_s26 + $0x178] sm:$0xff]  ;;  %v2178_v50 = vld [vmem:[%s2163_s7] sm:$0xff]  ;;  %v2184_v53 = vld [vmem:[%s2052_s23 + $0x128] sm:$0xff] }
  0x22   : > { %588 = vmatpush.msra.mxu3 %v2101_v18  ;;  %v302_v51 = vld [vmem:[%s2064_s26 + $0x38] sm:$0xff]  ;;  %v339_v52 = vld [vmem:[%s2064_s26 + $0x160] sm:$0xff]  ;;  %445 = vmatpush.msra.mxu2 %v342_v48  ;;  %v336_v55 = vld [vmem:[%s2064_s26 + $0x148] sm:$0xff] }
  0x23   : > { %359 = vmatpush.msra.mxu0 %v316_v25  ;;  %405 = vmatpush.msra.mxu1 %v320_v29  ;;  %v299_v54 = vld [vmem:[%s2064_s26 + $0x20] sm:$0xff]  ;;  %v2191_v56 = vld [vmem:[%s2052_s23 + $0x110] sm:$0xff]  ;;  %v296_v57 = vld [vmem:[%s2064_s26 + $0x8] sm:$0xff] }
  0x24   : > { %589 = vmatpush.msra.mxu3 %v2107_v21  ;;  %446 = vmatpush.msra.mxu2 %v339_v52  ;;  %v333_v58 = vld [vmem:[%s2064_s26 + $0x130] sm:$0xff]  ;;  %v2198_v59 = vld [vmem:[%s2052_s23 + $0xf8] sm:$0xff]  ;;  %v2204_v61 = vld [vmem:[%s2052_s23 + $0xe0] sm:$0xff] }
  0x25   : > { %360 = vmatpush.msra.mxu0 %v313_v28  ;;  %406 = vmatpush.msra.mxu1 %v317_v32  ;;  %v330_v60 = vld [vmem:[%s2064_s26 + $0x118] sm:$0xff]  ;;  %v327_v62 = vld [vmem:[%s2064_s26 + $0x100] sm:$0xff]  ;;  %v2210_v63 = vld [vmem:[%s2052_s23 + $0xc8] sm:$0xff] }
  0x26   : > { %590 = vmatpush.msra.mxu3 %v2113_v24  ;;  %447 = vmatpush.msra.mxu2 %v336_v55  ;;  %v324_v4 = vld [vmem:[%s2064_s26 + $0xe8] sm:$0xff]  ;;  %v2217_v5 = vld [vmem:[%s2052_s23 + $0xb0] sm:$0xff]  ;;  %v2224_v9 = vld [vmem:[%s2052_s23 + $0x98] sm:$0xff] }
  0x27   : > { %361 = vmatpush.msra.mxu0 %v310_v31  ;;  %407 = vmatpush.msra.mxu1 %v314_v35  ;;  %v321_v7 = vld [vmem:[%s2064_s26 + $0xd0] sm:$0xff]  ;;  %v318_v10 = vld [vmem:[%s2064_s26 + $0xb8] sm:$0xff]  ;;  %v2231_v11 = vld [vmem:[%s2052_s23 + $0x80] sm:$0xff] }
  0x28   : > { %591 = vmatpush.msra.mxu3 %v2119_v27  ;;  %448 = vmatpush.msra.mxu2 %v333_v58  ;;  %v315_v13 = vld [vmem:[%s2064_s26 + $0xa0] sm:$0xff]  ;;  %v2238_v14 = vld [vmem:[%s2052_s23 + $0x68] sm:$0xff]  ;;  %v2245_v17 = vld [vmem:[%s2052_s23 + $0x50] sm:$0xff] }
  0x29   : > { %362 = vmatpush.msra.mxu0 %v307_v34  ;;  %408 = vmatpush.msra.mxu1 %v311_v38  ;;  %v312_v16 = vld [vmem:[%s2064_s26 + $0x88] sm:$0xff]  ;;  %v309_v19 = vld [vmem:[%s2064_s26 + $0x70] sm:$0xff]  ;;  %v2252_v20 = vld [vmem:[%s2052_s23 + $0x38] sm:$0xff] }
  0x2a   : > { %592 = vmatpush.msra.mxu3 %v2125_v30  ;;  %449 = vmatpush.msra.mxu2 %v330_v60  ;;  %3172 = vst [vmem:[#allocation5_spill] sm:$0xff] %v2252_v20  ;;  %v306_v22 = vld [vmem:[%s2064_s26 + $0x58] sm:$0xff]  ;;  %v2259_v23 = vld [vmem:[%s2052_s23 + $0x20] sm:$0xff]  ;;  %v2266_v26 = vld [vmem:[%s2052_s23 + $0x8] sm:$0xff] }
  0x2b   : > { %363 = vmatpush.msra.mxu0 %v304_v37  ;;  %409 = vmatpush.msra.mxu1 %v308_v42  ;;  %3173 = vst [vmem:[#allocation6_spill] sm:$0xff] %v2259_v23  ;;  %v303_v25 = vld [vmem:[%s2064_s26 + $0x40] sm:$0xff]  ;;  %v300_v28 = vld [vmem:[%s2064_s26 + $0x28] sm:$0xff]  ;;  %v2273_v29 = vld [vmem:[%s2052_s23 + $0x178] sm:$0xff] }
  0x2c   : > { %593 = vmatpush.msra.mxu3 %v2131_v33  ;;  %450 = vmatpush.msra.mxu2 %v327_v62  ;;  %3174 = vst [vmem:[#allocation7_spill] sm:$0xff] %v2266_v26  ;;  %v2280_v31 = vld [vmem:[%s2052_s23 + $0x160] sm:$0xff]  ;;  %v297_v32 = vld [vmem:[%s2064_s26 + $0x10] sm:$0xff]  ;;  %v286_v34 = vld [vmem:[%s2163_s7 + $0x8] sm:$0xff] }
  0x2d   : > { %364 = vmatpush.msra.mxu0 %v301_v40  ;;  %410 = vmatpush.msra.mxu1 %v305_v46  ;;  %v2286_v35 = vld [vmem:[%s2052_s23 + $0x148] sm:$0xff]  ;;  %v2291_v37 = vld [vmem:[%s2052_s23 + $0x130] sm:$0xff]  ;;  %v2298_v38 = vld [vmem:[%s2052_s23 + $0x118] sm:$0xff] }
  0x2e   : > { %594 = vmatpush.msra.mxu3 %v2137_v36  ;;  %451 = vmatpush.msra.mxu2 %v324_v4  ;;  %v287_v40 = vld [vmem:[%s2163_s7 + $0x10] sm:$0xff]  ;;  %v2306_v42 = vld [vmem:[%s2052_s23 + $0x100] sm:$0xff]  ;;  %v2351_v52 = vld [vmem:[%s2052_s23 + $0x58] sm:$0xff] }
  0x2f   : > { %365 = vmatpush.msra.mxu0 %v298_v44  ;;  %411 = vmatpush.msra.mxu1 %v302_v51  ;;  %v2312_v44 = vld [vmem:[%s2052_s23 + $0xe8] sm:$0xff]  ;;  %v2317_v46 = vld [vmem:[%s2052_s23 + $0xd0] sm:$0xff]  ;;  %v2331_v48 = vld [vmem:[%s2052_s23 + $0xa0] sm:$0xff] }
  0x30   : > { %595 = vmatpush.msra.mxu3 %v2144_v39  ;;  %452 = vmatpush.msra.mxu2 %v321_v7  ;;  %v2344_v51 = vld [vmem:[%s2052_s23 + $0x70] sm:$0xff]  ;;  %v2365_v55 = vld [vmem:[%s2052_s23 + $0x28] sm:$0xff]  ;;  %v288_v58 = vld [vmem:[%s2163_s7 + $0x18] sm:$0xff] }
  0x31   : > { %596 = vmatmul.f32.vlgmr.msra.gmra.mxu3 %v2155_v43  ;;  %366 = vmatpush.msra.mxu0 %v295_v47  ;;  %v2324_v47 = vld [vmem:[%s2052_s23 + $0xb8] sm:$0xff]  ;;  %3175 = vst [vmem:[#allocation8_spill] sm:$0xff] %v2365_v55  ;;  %v289_v60 = vld [vmem:[%s2163_s7 + $0x20] sm:$0xff] }
  0x32   : > { %600 = vmatpush.msrb.mxu3 %v2149_v41  ;;  %367 = vmatmul.f32.vlgmr.msra.gmra.mxu0 %v2178_v50  ;;  %v343_v62 = vld [vmem:[%s279_s11] ss:$8 sm:$0x7]  ;;  %v1809_v4 = vld [vmem:[%s279_s11 + $0x1] ss:$8 sm:$0x7] }
  0x33   : > { %691 = vmatpush.msrb.mxu0 %v2055_v0  ;;  %412 = vmatpush.msra.mxu1 %v299_v54  ;;  %v2358_v54 = vld [vmem:[%s2052_s23 + $0x40] sm:$0xff]  ;;  %v2457_v7 = vperm.slane %v343_v62, 0 }
  0x34   : > { %601 = vmatpush.msrb.mxu3 %v2167_v45  ;;  %453 = vmatpush.msra.mxu2 %v318_v10  ;;  %v2459_v10 = vperm.slane %v1809_v4, 0 }
  0x35   : > { %692 = vmatpush.msrb.mxu0 %v2058_v1  ;;  %413 = vmatpush.msra.mxu1 %v296_v57  ;;  %v2372_v57 = vld [vmem:[%s2052_s23 + $0x10] sm:$0xff]  ;;  %3177 = vst [vmem:[#allocation10_spill] sm:$0xff] %v2457_v7 }
  0x36   : > { %602 = vmatpush.msrb.mxu3 %v2174_v49  ;;  %414 = vmatmul.f32.vlgmr.msra.gmra.mxu1 %v2178_v50  ;;  %3176 = vst [vmem:[#allocation9_spill] sm:$0xff] %v2372_v57 }
  0x37   : > { %711 = vmatpush.msrb.mxu1 %v2149_v41  ;;  %693 = vmatpush.msrb.mxu0 %v2067_v2  ;;  %3178 = vst [vmem:[#allocation11_spill] sm:$0xff] %v2459_v10 }
  0x38   : > { %603 = vmatpush.msrb.mxu3 %v2184_v53  ;;  %454 = vmatpush.msra.mxu2 %v315_v13  ;;  %v290_v13 = vld [vmem:[%s2163_s7 + $0x28] sm:$0xff] }
  0x39   : > { %712 = vmatpush.msrb.mxu1 %v2167_v45  ;;  %694 = vmatpush.msrb.mxu0 %v2071_v3 }
  0x3a   : > { %604 = vmatpush.msrb.mxu3 %v2191_v56  ;;  %455 = vmatpush.msra.mxu2 %v312_v16 }
  0x3b   : > { %713 = vmatpush.msrb.mxu1 %v2174_v49  ;;  %695 = vmatpush.msrb.mxu0 %v2077_v6 }
  0x3c   : > { %605 = vmatpush.msrb.mxu3 %v2198_v59  ;;  %456 = vmatpush.msra.mxu2 %v309_v19 }
  0x3d   : > { %714 = vmatpush.msrb.mxu1 %v2184_v53  ;;  %696 = vmatpush.msrb.mxu0 %v2082_v8 }
  0x3e   : > { %606 = vmatpush.msrb.mxu3 %v2204_v61  ;;  %457 = vmatpush.msra.mxu2 %v306_v22 }
  0x3f   : > { %715 = vmatpush.msrb.mxu1 %v2191_v56  ;;  %697 = vmatpush.msrb.mxu0 %v2089_v12 }
  0x40   : > { %607 = vmatpush.msrb.mxu3 %v2210_v63  ;;  %458 = vmatpush.msra.mxu2 %v303_v25 }
  0x41   : > { %716 = vmatpush.msrb.mxu1 %v2198_v59  ;;  %698 = vmatpush.msrb.mxu0 %v2095_v15 }
  0x42   : > { %608 = vmatpush.msrb.mxu3 %v2217_v5  ;;  %459 = vmatpush.msra.mxu2 %v300_v28 }
  0x43   : > { %717 = vmatpush.msrb.mxu1 %v2204_v61  ;;  %699 = vmatpush.msrb.mxu0 %v2101_v18 }
  0x44   : > { %609 = vmatpush.msrb.mxu3 %v2224_v9  ;;  %370 = vmatmul.f32.gmra.mxu0 %v286_v34 }
  0x45   : > { %718 = vmatpush.msrb.mxu1 %v2210_v63  ;;  %700 = vmatpush.msrb.mxu0 %v2107_v21 }
  0x46   : > { %610 = vmatpush.msrb.mxu3 %v2231_v11  ;;  %460 = vmatpush.msra.mxu2 %v297_v32  ;;  %v291_v32 = vld [vmem:[%s2163_s7 + $0x30] sm:$0xff] }
  0x47   : > { %719 = vmatpush.msrb.mxu1 %v2217_v5  ;;  %701 = vmatpush.msrb.mxu0 %v2113_v24 }
  0x48   : > { %611 = vmatpush.msrb.mxu3 %v2238_v14  ;;  %417 = vmatmul.f32.gmra.mxu1 %v286_v34 }
  0x49   : > { %720 = vmatpush.msrb.mxu1 %v2224_v9  ;;  %702 = vmatpush.msrb.mxu0 %v2119_v27 }
  0x4a   : > { %612 = vmatpush.msrb.mxu3 %v2245_v17  ;;  %461 = vmatmul.f32.vlgmr.msra.gmra.mxu2 %v2178_v50  ;;  %v2338_v50 = vld [vmem:[%s2052_s23 + $0x88] sm:$0xff] }
  0x4b   : > { %731 = vmatpush.msrb.mxu2 %v2273_v29  ;;  %721 = vmatpush.msrb.mxu1 %v2231_v11 }
  0x4c   : > { %613 = vmatpush.msrb.mxu3 %v2252_v20  ;;  %703 = vmatpush.msrb.mxu0 %v2125_v30 }
  0x4d   : > { %732 = vmatpush.msrb.mxu2 %v2280_v31  ;;  %722 = vmatpush.msrb.mxu1 %v2238_v14 }
  0x4e   : > { %614 = vmatpush.msrb.mxu3 %v2259_v23  ;;  %704 = vmatpush.msrb.mxu0 %v2131_v33 }
  0x4f   : > { %733 = vmatpush.msrb.mxu2 %v2286_v35  ;;  %723 = vmatpush.msrb.mxu1 %v2245_v17 }
  0x50   : > { %615 = vmatpush.msrb.mxu3 %v2266_v26  ;;  %373 = vmatmul.f32.gmra.mxu0 %v287_v40 }
  0x51   : > { %616 = vmatmul.f32.vlgmr.msrb.gmra.mxu3 %v2155_v43  ;;  %420 = vmatmul.f32.gmra.mxu1 %v287_v40 }
  0x52   : > { %620 = vmatpush.msra.mxu3 %v2273_v29  ;;  %734 = vmatpush.msrb.mxu2 %v2291_v37 }
  0x53   : > { %464 = vmatmul.f32.gmra.mxu2 %v286_v34  ;;  %705 = vmatpush.msrb.mxu0 %v2137_v36 }
  0x54   : > { %621 = vmatpush.msra.mxu3 %v2280_v31  ;;  %735 = vmatpush.msrb.mxu2 %v2298_v38 }
  0x55   : > { %724 = vmatpush.msrb.mxu1 %v2252_v20  ;;  %706 = vmatpush.msrb.mxu0 %v2144_v39 }
  0x56   : > { %622 = vmatpush.msra.mxu3 %v2286_v35  ;;  %736 = vmatpush.msrb.mxu2 %v2306_v42 }
  0x57   : > { %725 = vmatpush.msrb.mxu1 %v2259_v23  ;;  %824 = vmatpush.msra.mxu0 %v2149_v41 }
  0x58   : > { %623 = vmatpush.msra.mxu3 %v2291_v37  ;;  %737 = vmatpush.msrb.mxu2 %v2312_v44 }
  0x59   : > { %726 = vmatpush.msrb.mxu1 %v2266_v26  ;;  %825 = vmatpush.msra.mxu0 %v2167_v45 }
  0x5a   : > { %624 = vmatpush.msra.mxu3 %v2298_v38  ;;  %738 = vmatpush.msrb.mxu2 %v2317_v46 }
  0x5b   : > { %844 = vmatpush.msra.mxu1 %v2273_v29  ;;  %467 = vmatmul.f32.gmra.mxu2 %v287_v40  ;;  %v292_v40 = vld [vmem:[%s2163_s7 + $0x38] sm:$0xff] }
  0x5c   : > { %625 = vmatpush.msra.mxu3 %v2306_v42  ;;  %739 = vmatpush.msrb.mxu2 %v2324_v47 }
  0x5d   : > { %845 = vmatpush.msra.mxu1 %v2280_v31  ;;  %826 = vmatpush.msra.mxu0 %v2174_v49 }
  0x5e   : > { %626 = vmatpush.msra.mxu3 %v2312_v44  ;;  %740 = vmatpush.msrb.mxu2 %v2331_v48 }
  0x5f   : > { %846 = vmatpush.msra.mxu1 %v2286_v35  ;;  %827 = vmatpush.msra.mxu0 %v2184_v53 }
  0x60   : > { %627 = vmatpush.msra.mxu3 %v2317_v46  ;;  %741 = vmatpush.msrb.mxu2 %v2338_v50 }
  0x61   : > { %847 = vmatpush.msra.mxu1 %v2291_v37  ;;  %828 = vmatpush.msra.mxu0 %v2191_v56 }
  0x62   : > { %628 = vmatpush.msra.mxu3 %v2324_v47  ;;  %742 = vmatpush.msrb.mxu2 %v2344_v51 }
  0x63   : > { %848 = vmatpush.msra.mxu1 %v2298_v38  ;;  %829 = vmatpush.msra.mxu0 %v2198_v59 }
  0x64   : > { %629 = vmatpush.msra.mxu3 %v2331_v48  ;;  %743 = vmatpush.msrb.mxu2 %v2351_v52 }
  0x65   : > { %849 = vmatpush.msra.mxu1 %v2306_v42  ;;  %830 = vmatpush.msra.mxu0 %v2204_v61 }
  0x66   : > { %630 = vmatpush.msra.mxu3 %v2338_v50  ;;  %744 = vmatpush.msrb.mxu2 %v2358_v54 }
  0x67   : > { %850 = vmatpush.msra.mxu1 %v2312_v44  ;;  %831 = vmatpush.msra.mxu0 %v2210_v63 }
  0x68   : > { %631 = vmatpush.msra.mxu3 %v2344_v51  ;;  %745 = vmatpush.msrb.mxu2 %v2365_v55 }
  0x69   : > { %851 = vmatpush.msra.mxu1 %v2317_v46  ;;  %832 = vmatpush.msra.mxu0 %v2217_v5 }
  0x6a   : > { %632 = vmatpush.msra.mxu3 %v2351_v52  ;;  %746 = vmatpush.msrb.mxu2 %v2372_v57 }
  0x6b   : > { %852 = vmatpush.msra.mxu1 %v2324_v47  ;;  %833 = vmatpush.msra.mxu0 %v2224_v9 }
  0x6c   : > { %633 = vmatpush.msra.mxu3 %v2358_v54  ;;  %917 = vmatpush.msra.mxu2 %v2055_v0 }
  0x6d   : > { %853 = vmatpush.msra.mxu1 %v2331_v48  ;;  %834 = vmatpush.msra.mxu0 %v2231_v11 }
  0x6e   : > { %634 = vmatpush.msra.mxu3 %v2365_v55  ;;  %918 = vmatpush.msra.mxu2 %v2058_v1 }
  0x6f   : > { %854 = vmatpush.msra.mxu1 %v2338_v50  ;;  %835 = vmatpush.msra.mxu0 %v2238_v14 }
  0x70   : > { %635 = vmatpush.msra.mxu3 %v2372_v57  ;;  %919 = vmatpush.msra.mxu2 %v2067_v2 }
  0x71   : > { %636 = vmatmul.f32.vlgmr.msra.gmra.mxu3 %v2155_v43  ;;  %855 = vmatpush.msra.mxu1 %v2344_v51 }
  0x72   : > { %804 = vmatpush.msrb.mxu3 %v2055_v0  ;;  %920 = vmatpush.msra.mxu2 %v2071_v3 }
  0x73   : > { %836 = vmatpush.msra.mxu0 %v2245_v17  ;;  %856 = vmatpush.msra.mxu1 %v2351_v52 }
  0x74   : > { %805 = vmatpush.msrb.mxu3 %v2058_v1  ;;  %921 = vmatpush.msra.mxu2 %v2077_v6 }
  0x75   : > { %837 = vmatpush.msra.mxu0 %v2252_v20  ;;  %857 = vmatpush.msra.mxu1 %v2358_v54 }
  0x76   : > { %806 = vmatpush.msrb.mxu3 %v2067_v2  ;;  %922 = vmatpush.msra.mxu2 %v2082_v8 }
  0x77   : > { %838 = vmatpush.msra.mxu0 %v2259_v23  ;;  %858 = vmatpush.msra.mxu1 %v2365_v55 }
  0x78   : > { %807 = vmatpush.msrb.mxu3 %v2071_v3  ;;  %923 = vmatpush.msra.mxu2 %v2089_v12 }
  0x79   : > { %839 = vmatpush.msra.mxu0 %v2266_v26  ;;  %859 = vmatpush.msra.mxu1 %v2372_v57  ;;  %v2476_v57 = vperm.slane %v343_v62, 2 }
  0x7a   : > { %808 = vmatpush.msrb.mxu3 %v2077_v6  ;;  %924 = vmatpush.msra.mxu2 %v2095_v15 }
  0x7b   : > { %376 = vmatmul.f32.gmra.mxu0 %v288_v58  ;;  %423 = vmatmul.f32.gmra.mxu1 %v288_v58 }
  0x7c   : > { %809 = vmatpush.msrb.mxu3 %v2082_v8  ;;  %925 = vmatpush.msra.mxu2 %v2101_v18 }
  0x7d   : > { %470 = vmatmul.f32.gmra.mxu2 %v288_v58  ;;  %v2466_v58 = vperm.slane %v343_v62, 1 }
  0x7e   : > { %810 = vmatpush.msrb.mxu3 %v2089_v12  ;;  %926 = vmatpush.msra.mxu2 %v2107_v21 }
  0x7f   : > { %3179 = vst [vmem:[#allocation12_spill] sm:$0xff] %v2466_v58 }
  0x80   : > { %811 = vmatpush.msrb.mxu3 %v2095_v15  ;;  %927 = vmatpush.msra.mxu2 %v2113_v24 }
  0x82   : > { %812 = vmatpush.msrb.mxu3 %v2101_v18  ;;  %928 = vmatpush.msra.mxu2 %v2119_v27 }
  0x83   : > { %379 = vmatmul.f32.gmra.mxu0 %v289_v60  ;;  %426 = vmatmul.f32.gmra.mxu1 %v289_v60 }
  0x84   : > { %813 = vmatpush.msrb.mxu3 %v2107_v21  ;;  %929 = vmatpush.msra.mxu2 %v2125_v30 }
  0x85   : > { %473 = vmatmul.f32.gmra.mxu2 %v289_v60 }
  0x86   : > { %814 = vmatpush.msrb.mxu3 %v2113_v24  ;;  %930 = vmatpush.msra.mxu2 %v2131_v33 }
  0x88   : > { %815 = vmatpush.msrb.mxu3 %v2119_v27  ;;  %931 = vmatpush.msra.mxu2 %v2137_v36 }
  0x8a   : > { %816 = vmatpush.msrb.mxu3 %v2125_v30  ;;  %932 = vmatpush.msra.mxu2 %v2144_v39 }
  0x8b   : > { %382 = vmatmul.f32.gmra.mxu0 %v290_v13  ;;  %429 = vmatmul.f32.gmra.mxu1 %v290_v13 }
  0x8c   : > { %817 = vmatpush.msrb.mxu3 %v2131_v33 }
  0x8d   : > { %476 = vmatmul.f32.gmra.mxu2 %v290_v13  ;;  %v2468_v13 = vperm.slane %v1809_v4, 1 }
  0x8e   : > { %818 = vmatpush.msrb.mxu3 %v2137_v36 }
  0x8f   : > { %3180 = vst [vmem:[#allocation13_spill] sm:$0xff] %v2468_v13 }
  0x90   : > { %819 = vmatpush.msrb.mxu3 %v2144_v39 }
  0x92   : > { %937 = vmatpush.msra.mxu3 %v2149_v41 }
  0x93   : > { %385 = vmatmul.f32.gmra.mxu0 %v291_v32  ;;  %432 = vmatmul.f32.gmra.mxu1 %v291_v32 }
  0x94   : > { %938 = vmatpush.msra.mxu3 %v2167_v45 }
  0x95   : > { %479 = vmatmul.f32.gmra.mxu2 %v291_v32 }
  0x96   : > { %939 = vmatpush.msra.mxu3 %v2174_v49 }
  0x98   : > { %940 = vmatpush.msra.mxu3 %v2184_v53 }
  0x9a   : > { %941 = vmatpush.msra.mxu3 %v2191_v56 }
  0x9b   : > { %388 = vmatmul.f32.gmra.mxu0 %v292_v40  ;;  %435 = vmatmul.f32.gmra.mxu1 %v292_v40 }
  0x9c   : > { %942 = vmatpush.msra.mxu3 %v2198_v59 }
  0x9d   : > { %482 = vmatmul.f32.gmra.mxu2 %v292_v40  ;;  %v294_v40 = vld [vmem:[%s2163_s7 + $0x48] sm:$0xff] }
  0x9e   : > { %943 = vmatpush.msra.mxu3 %v2204_v61 }
  0xa0   : > { %944 = vmatpush.msra.mxu3 %v2210_v63 }
  0xa2   : > { %945 = vmatpush.msra.mxu3 %v2217_v5 }
  0xa4   : > { %946 = vmatpush.msra.mxu3 %v2224_v9 }
  0xa6   : > { %947 = vmatpush.msra.mxu3 %v2231_v11 }
  0xa8   : > { %948 = vmatpush.msra.mxu3 %v2238_v14 }
  0xaa   : > { %949 = vmatpush.msra.mxu3 %v2245_v17 }
  0xac   : > { %950 = vmatpush.msra.mxu3 %v2252_v20 }
  0xae   : > { %951 = vmatpush.msra.mxu3 %v2259_v23 }
  0xaf   : > { %v368_v16 = vpop.f32.mrf.mxu0 }
  0xb0   : > { %952 = vmatpush.msra.mxu3 %v2266_v26  ;;  %v369_v22 = vadd.f32 %v368_v16, %v2457_v7 }
  0xb3   : > { %v415_v60 = vpop.f32.mrf.mxu1 }
  0xb4   : > { %v597_v19 = vpop.f32.mrf.mxu3 }
  0xb5   : > { %v598_v25 = vadd.f32 %v597_v19, %v2459_v10  ;;  %v416_v19 = vadd.f32 %v415_v60, %v2466_v58  ;;  %v293_v10 = vld [vmem:[%s2163_s7 + $0x40] sm:$0xff] }
  0xb6   : > { %391 = vmatmul.f32.gmra.mxu0 %v293_v10  ;;  %438 = vmatmul.f32.gmra.mxu1 %v293_v10 }
  0xb7   : > { %v643_v28 = vadd.f32 %v598_v25, %v369_v22  ;;  %485 = vmatmul.f32.gmra.mxu2 %v293_v10 }
  0xb9   : > { %v1810_v34 = vmul.f32 -1.442695, %v643_v28 }
  0xbb   : > { %1852 = vpow2.f32 %v1810_v34 }
  0xbe   : > { %394 = vmatmul.f32.gmra.mxu0 %v294_v40  ;;  %441 = vmatmul.f32.gmra.mxu1 %v294_v40 }
  0xbf   : > { %488 = vmatmul.f32.gmra.mxu2 %v294_v40 }
  0xc1   : > { %v1853_v16 = vpop.eup %1852 }
  0xc2   : > { %v647_v32 = vadd.f32 1.0, %v1853_v16 }
  0xc4   : > { %1854 = vrcp.f32 %v647_v32  ;;  %vm653_vm0 = vweird.f32 %v647_v32  ;;  %v659_v10 = vand.u32 2147483648, %v647_v32 }
  0xc6   : > { %v660_v23 = vor.u32 1.1754944e-38, %v659_v10 }
  0xca   : > { %v1855_v7 = vpop.eup %1854 }
  0xcb   : > { %v649_v60 = vmul.f32 %v1855_v7, %v647_v32  ;;  %vm654_vm1 = vweird.f32 %v1855_v7 }
  0xcc   : > { %vm655_vm2 = vmor %vm653_vm0, %vm654_vm1 }
  0xcd   : > { %v650_v58 = vsub.f32 1.0, %v649_v60 }
  0xcf   : > { %v651_v16 = vmul.f32 %v1855_v7, %v650_v58 }
  0xd4   : > { %v617_v22 = vpop.f32.mrf.mxu3 }
  0xd5   : > { %v618_v25 = vadd.f32 %v617_v22, %v2468_v13 }
  0xd7   : > { %v663_v28 = vadd.f32 %v618_v25, %v416_v19  ;;  %v652_v25 = vadd.f32 %v1855_v7, %v651_v16 }
  0xd9   : > { %v1811_v34 = vmul.f32 -1.442695, %v663_v28  ;;  %v657_v28 = vand.u32 2147483647, %v647_v32  ;;  %v656_v36 = vsel %vm655_vm2, %v1855_v7, %v652_v25 }
  0xdb   : > { %1856 = vpow2.f32 %v1811_v34  ;;  %v2474_v34 = vperm.slane %v1809_v4, 2  ;;  %vm658_vm3 = vcmp.eq.f32.partialorder %v657_v28, 8.507059e+37 }
  0xe1   : > { %v1857_v26 = vpop.eup %1856 }
  0xe2   : > { %v667_v39 = vadd.f32 1.0, %v1857_v26  ;;  %v462_v26 = vpop.f32.mrf.mxu2 }
  0xe3   : > { %v463_v58 = vadd.f32 %v462_v26, %v2476_v57 }
  0xe4   : > { %1858 = vrcp.f32 %v667_v39  ;;  %vm673_vm4 = vweird.f32 %v667_v39  ;;  %v679_v32 = vand.u32 2147483648, %v667_v39  ;;  %v677_v16 = vand.u32 2147483647, %v667_v39 }
  0xe6   : > { %v680_v10 = vor.u32 1.1754944e-38, %v679_v32  ;;  %vm678_vm7 = vcmp.eq.f32.partialorder %v677_v16, 8.507059e+37 }
  0xea   : > { %v1859_v22 = vpop.eup %1858 }
  0xeb   : > { %v669_v13 = vmul.f32 %v1859_v22, %v667_v39  ;;  %vm674_vm5 = vweird.f32 %v1859_v22 }
  0xec   : > { %vm675_vm6 = vmor %vm673_vm4, %vm674_vm5 }
  0xed   : > { %v670_v19 = vsub.f32 1.0, %v669_v13  ;;  %v661_v13 = vsel %vm658_vm3, %v660_v23, %v656_v36 }
  0xef   : > { %v671_v40 = vmul.f32 %v1859_v22, %v670_v19 }
  0xf1   : > { %v672_v20 = vadd.f32 %v1859_v22, %v671_v40 }
  0xf3   : > { %v676_v19 = vsel %vm675_vm6, %v1859_v22, %v672_v20 }
  0xf4   : > { %v637_v60 = vpop.f32.mrf.mxu3  ;;  %v681_v7 = vsel %vm678_vm7, %v680_v10, %v676_v19 }
  0xf5   : > { %v638_v55 = vadd.f32 %v637_v60, %v2474_v34  ;;  %v686_v25 = vsub.f32 1.0, %v681_v7  ;;  %v688_v26 = vmul.f32 %v681_v7, %v2155_v43 }
  0xf7   : > { %v683_v4 = vmul.f32 %v661_v13, %v638_v55 }
  0xf9   : > { %v684_v62 = vadd.f32 %v683_v4, %v463_v58 }
  0xfb   : > { %1860 = vtanh.f32 %v684_v62 }
 0x101   : > { %v1861_v28 = vpop.eup %1860 }
 0x102   : > { %v687_v60 = vmul.f32 %v1861_v28, %v686_v25 }
 0x104   : > { %v2488_v36 = vadd.f32 %v688_v26, %v687_v60 }
 0x106   : > { %690 = vst [vmem:[%s2486_s14] sm:$0xff] %v2488_v36  ;;  %707 = vmatmul.f32.vlgmr.msrb.gmra.mxu0 %v2488_v36  ;;  %727 = vmatmul.f32.vlgmr.msrb.gmra.mxu1 %v2488_v36 }
 0x107   : > { %747 = vmatmul.f32.vlgmr.msrb.gmra.mxu2 %v2488_v36  ;;  %957 = vmatpush.msrb.mxu0 %v2273_v29 }
 0x108   : > { %1030 = vmatpush.msrb.mxu1 %v2055_v0  ;;  %1050 = vmatpush.msrb.mxu2 %v2149_v41  ;;  %v3181_v0 = vld [vmem:[#allocation5_spill] sm:$0xff] }
 0x109   : > { %958 = vmatpush.msrb.mxu0 %v2280_v31 }
 0x10a   : > { %1031 = vmatpush.msrb.mxu1 %v2058_v1  ;;  %1051 = vmatpush.msrb.mxu2 %v2167_v45  ;;  %v3182_v1 = vld [vmem:[#allocation8_spill] sm:$0xff] }
 0x10b   : > { %959 = vmatpush.msrb.mxu0 %v2286_v35 }
 0x10c   : > { %1032 = vmatpush.msrb.mxu1 %v2067_v2  ;;  %1052 = vmatpush.msrb.mxu2 %v2174_v49  ;;  %v3183_v2 = vld [vmem:[#allocation3_spill] sm:$0xff] }
 0x10d   : > { %960 = vmatpush.msrb.mxu0 %v2291_v37 }
 0x10e   : > { %1033 = vmatpush.msrb.mxu1 %v2071_v3  ;;  %1053 = vmatpush.msrb.mxu2 %v2184_v53  ;;  %v3184_v3 = vld [vmem:[#allocation6_spill] sm:$0xff] }
 0x10f   : > { %961 = vmatpush.msrb.mxu0 %v2298_v38 }
 0x110   : > { %1034 = vmatpush.msrb.mxu1 %v2077_v6  ;;  %1054 = vmatpush.msrb.mxu2 %v2191_v56  ;;  %v3185_v6 = vld [vmem:[#allocation9_spill] sm:$0xff] }
 0x111   : > { %962 = vmatpush.msrb.mxu0 %v2306_v42 }
 0x112   : > { %1035 = vmatpush.msrb.mxu1 %v2082_v8  ;;  %1055 = vmatpush.msrb.mxu2 %v2198_v59  ;;  %v3186_v8 = vld [vmem:[#allocation4_spill] sm:$0xff] }
 0x113   : > { %963 = vmatpush.msrb.mxu0 %v2312_v44 }
 0x114   : > { %1036 = vmatpush.msrb.mxu1 %v2089_v12  ;;  %1056 = vmatpush.msrb.mxu2 %v2204_v61  ;;  %v3187_v12 = vld [vmem:[#allocation7_spill] sm:$0xff] }
 0x115   : > { %964 = vmatpush.msrb.mxu0 %v2317_v46 }
 0x116   : > { %1037 = vmatpush.msrb.mxu1 %v2095_v15  ;;  %1057 = vmatpush.msrb.mxu2 %v2210_v63  ;;  %v371_v15 = vpop.f32.mrf.mxu0 }
 0x117   : > { %965 = vmatpush.msrb.mxu0 %v2324_v47 }
 0x118   : > { %1038 = vmatpush.msrb.mxu1 %v2101_v18  ;;  %1058 = vmatpush.msrb.mxu2 %v2217_v5  ;;  %v418_v18 = vpop.f32.mrf.mxu1 }
 0x119   : > { %966 = vmatpush.msrb.mxu0 %v2331_v48 }
 0x11a   : > { %1039 = vmatpush.msrb.mxu1 %v2107_v21  ;;  %1059 = vmatpush.msrb.mxu2 %v2224_v9 }
 0x11b   : > { %967 = vmatpush.msrb.mxu0 %v2338_v50 }
 0x11c   : > { %1040 = vmatpush.msrb.mxu1 %v2113_v24  ;;  %1060 = vmatpush.msrb.mxu2 %v2231_v11 }
 0x11d   : > { %968 = vmatpush.msrb.mxu0 %v2344_v51 }
 0x11e   : > { %1041 = vmatpush.msrb.mxu1 %v2119_v27  ;;  %1061 = vmatpush.msrb.mxu2 %v2238_v14  ;;  %v2543_v21 = vpop.f32.mrf.mxu0 }
 0x11f   : > { %969 = vmatpush.msrb.mxu0 %v2351_v52 }
 0x120   : > { %1042 = vmatpush.msrb.mxu1 %v2125_v30  ;;  %1062 = vmatpush.msrb.mxu2 %v2245_v17  ;;  %v2545_v24 = vpop.f32.mrf.mxu1 }
 0x121   : > { %970 = vmatpush.msrb.mxu0 %v2358_v54 }
 0x122   : > { %1043 = vmatpush.msrb.mxu1 %v2131_v33  ;;  %1063 = vmatpush.msrb.mxu2 %v3181_v0  ;;  %v465_v33 = vpop.f32.mrf.mxu2 }
 0x123   : > { %971 = vmatpush.msrb.mxu0 %v3182_v1 }
 0x124   : > { %1044 = vmatpush.msrb.mxu1 %v3183_v2  ;;  %1064 = vmatpush.msrb.mxu2 %v3184_v3  ;;  %v3206_v2 = vld [vmem:[#allocation10_spill] sm:$0xff] }
 0x125   : > { %972 = vmatpush.msrb.mxu0 %v3185_v6 }
 0x126   : > { %1045 = vmatpush.msrb.mxu1 %v3186_v8  ;;  %1065 = vmatpush.msrb.mxu2 %v3187_v12  ;;  %v2547_v27 = vpop.f32.mrf.mxu0  ;;  %v372_v8 = vadd.f32 %v371_v15, %v3206_v2 }
 0x128   : > { %v2549_v30 = vpop.f32.mrf.mxu1 }
 0x129   : > { %3188 = vst [vmem:[#allocation5_spill] sm:$0xff] %v2549_v30 }
 0x12a   : > { %v2555_v20 = vpop.f32.mrf.mxu2 }
 0x12e   : > { %v2551_v39 = vpop.f32.mrf.mxu0 }
 0x12f   : > { %3189 = vst [vmem:[#allocation8_spill] sm:$0xff] %v2551_v39 }
 0x130   : > { %v2553_v43 = vpop.f32.mrf.mxu1 }
 0x131   : > { %3190 = vst [vmem:[#allocation3_spill] sm:$0xff] %v2553_v43 }
 0x132   : > { %v2561_v22 = vpop.f32.mrf.mxu2 }
 0x133   : > { %3193 = vst [vmem:[#allocation4_spill] sm:$0xff] %v2561_v22 }
 0x136   : > { %v2557_v23 = vpop.f32.mrf.mxu0 }
 0x137   : > { %3191 = vst [vmem:[#allocation6_spill] sm:$0xff] %v2557_v23 }
 0x138   : > { %v2559_v55 = vpop.f32.mrf.mxu1 }
 0x139   : > { %3192 = vst [vmem:[#allocation9_spill] sm:$0xff] %v2559_v55 }
 0x13a   : > { %v2567_v13 = vpop.f32.mrf.mxu2 }
 0x13b   : > { %3196 = vst [vmem:[#allocation15_spill] sm:$0xff] %v2567_v13 }
 0x13e   : > { %v2563_v40 = vpop.f32.mrf.mxu0 }
 0x13f   : > { %3194 = vst [vmem:[#allocation7_spill] sm:$0xff] %v2563_v40  ;;  %v3208_v40 = vld [vmem:[#allocation11_spill] sm:$0xff] }
 0x140   : > { %v2565_v58 = vpop.f32.mrf.mxu1 }
 0x141   : > { %3195 = vst [vmem:[#allocation14_spill] sm:$0xff] %v2565_v58 }
 0x142   : > { %v2573_v16 = vpop.f32.mrf.mxu2 }
 0x143   : > { %3199 = vst [vmem:[#allocation18_spill] sm:$0xff] %v2573_v16  ;;  %v3209_v16 = vld [vmem:[#allocation13_spill] sm:$0xff] }
 0x146   : > { %v2569_v32 = vpop.f32.mrf.mxu0 }
 0x147   : > { %3197 = vst [vmem:[#allocation16_spill] sm:$0xff] %v2569_v32  ;;  %v3207_v32 = vld [vmem:[#allocation12_spill] sm:$0xff] }
 0x148   : > { %v2571_v4 = vpop.f32.mrf.mxu1 }
 0x149   : > { %3198 = vst [vmem:[#allocation17_spill] sm:$0xff] %v2571_v4  ;;  %v419_v4 = vadd.f32 %v418_v18, %v3207_v32 }
 0x14a   : > { %v2579_v10 = vpop.f32.mrf.mxu2 }
 0x14b   : > { %3202 = vst [vmem:[#allocation21_spill] sm:$0xff] %v2579_v10 }
 0x14e   : > { %v2575_v62 = vpop.f32.mrf.mxu0 }
 0x14f   : > { %3200 = vst [vmem:[#allocation19_spill] sm:$0xff] %v2575_v62 }
 0x150   : > { %v2577_v19 = vpop.f32.mrf.mxu1 }
 0x151   : > { %3201 = vst [vmem:[#allocation20_spill] sm:$0xff] %v2577_v19 }
 0x152   : > { %v2585_v28 = vpop.f32.mrf.mxu2 }
 0x153   : > { %3205 = vst [vmem:[#allocation24_spill] sm:$0xff] %v2585_v28 }
 0x156   : > { %v2581_v7 = vpop.f32.mrf.mxu0 }
 0x157   : > { %3203 = vst [vmem:[#allocation22_spill] sm:$0xff] %v2581_v7 }
 0x158   : > { %v2583_v25 = vpop.f32.mrf.mxu1 }
 0x159   : > { %3204 = vst [vmem:[#allocation23_spill] sm:$0xff] %v2583_v25 }
 0x15a   : > { %v2591_v7 = vpop.f32.mrf.mxu2 }
 0x15b   : > { %3210 = vst [vmem:[#allocation25_spill] sm:$0xff] %v2591_v7 }
 0x162   : > { %v2593_v15 = vpop.f32.mrf.mxu2 }
 0x163   : > { %3211 = vst [vmem:[#allocation26_spill] sm:$0xff] %v2593_v15 }
 0x183   : > { %v708_v60 = vpop.f32.mrf.mxu0  ;;  %v728_v26 = vpop.f32.mrf.mxu1 }
 0x184   : > { %v709_v58 = vadd.f32 %v708_v60, %v3208_v40  ;;  %v729_v62 = vadd.f32 %v728_v26, %v3209_v16 }
 0x186   : > { %v755_v55 = vadd.f32 %v709_v58, %v372_v8  ;;  %v775_v19 = vadd.f32 %v729_v62, %v419_v4 }
 0x188   : > { %v1812_v23 = vmul.f32 -1.442695, %v755_v55  ;;  %v1813_v10 = vmul.f32 -1.442695, %v775_v19 }
 0x18a   : > { %1862 = vpow2.f32 %v1812_v23 }
 0x18b   : > { %1864 = vpow2.f32 %v1813_v10  ;;  %v748_v10 = vpop.f32.mrf.mxu2 }
 0x190   : > { %v1863_v25 = vpop.eup %1862 }
 0x191   : > { %v1865_v28 = vpop.eup %1864  ;;  %v759_v13 = vadd.f32 1.0, %v1863_v25 }
 0x192   : > { %v779_v43 = vadd.f32 1.0, %v1865_v28  ;;  %v749_v28 = vadd.f32 %v748_v10, %v2474_v34 }
 0x193   : > { %1866 = vrcp.f32 %v759_v13  ;;  %v771_v55 = vand.u32 2147483648, %v759_v13  ;;  %v769_v23 = vand.u32 2147483647, %v759_v13  ;;  %vm765_vm9 = vweird.f32 %v759_v13 }
 0x194   : > { %1868 = vrcp.f32 %v779_v43  ;;  %vm785_vm13 = vweird.f32 %v779_v43  ;;  %v789_v30 = vand.u32 2147483647, %v779_v43 }
 0x195   : > { %v772_v25 = vor.u32 1.1754944e-38, %v771_v55  ;;  %vm770_vm11 = vcmp.eq.f32.partialorder %v769_v23, 8.507059e+37 }
 0x196   : > { %vm790_vm15 = vcmp.eq.f32.partialorder %v789_v30, 8.507059e+37  ;;  %v2607_v30 = vld [vmem:[%s2052_s23 + $0x168] sm:$0xff] }
 0x199   : > { %v1867_v18 = vpop.eup %1866 }
 0x19a   : > { %v1869_v60 = vpop.eup %1868  ;;  %v761_v39 = vmul.f32 %v1867_v18, %v759_v13  ;;  %vm766_vm8 = vweird.f32 %v1867_v18 }
 0x19b   : > { %v781_v26 = vmul.f32 %v1869_v60, %v779_v43  ;;  %vm767_vm10 = vmor %vm765_vm9, %vm766_vm8  ;;  %vm786_vm12 = vweird.f32 %v1869_v60 }
 0x19c   : > { %v762_v58 = vsub.f32 1.0, %v761_v39  ;;  %v466_v39 = vadd.f32 %v465_v33, %v2476_v57  ;;  %vm787_vm14 = vmor %vm785_vm13, %vm786_vm12 }
 0x19d   : > { %v782_v4 = vsub.f32 1.0, %v781_v26  ;;  %v791_v26 = vand.u32 2147483648, %v779_v43  ;;  %v2619_v43 = vld [vmem:[%s2052_s23 + $0x138] sm:$0xff] }
 0x19e   : > { %v763_v62 = vmul.f32 %v1867_v18, %v762_v58 }
 0x19f   : > { %v783_v19 = vmul.f32 %v1869_v60, %v782_v4 }
 0x1a0   : > { %v764_v8 = vadd.f32 %v1867_v18, %v763_v62  ;;  %v792_v62 = vor.u32 1.1754944e-38, %v791_v26 }
 0x1a1   : > { %v784_v22 = vadd.f32 %v1869_v60, %v783_v19 }
 0x1a2   : > { %v768_v7 = vsel %vm767_vm10, %v1867_v18, %v764_v8 }
 0x1a3   : > { %v773_v15 = vsel %vm770_vm11, %v772_v25, %v768_v7  ;;  %v788_v13 = vsel %vm787_vm14, %v1869_v60, %v784_v22  ;;  %v2691_v22 = vld [vmem:[%s2052_s23 + $0x18] sm:$0xff] }
 0x1a4   : > { %v795_v58 = vmul.f32 %v773_v15, %v749_v28  ;;  %v793_v18 = vsel %vm790_vm15, %v792_v62, %v788_v13  ;;  %3213 = vst [vmem:[#allocation28_spill] sm:$0xff] %v2691_v22 }
 0x1a5   : > { %v798_v55 = vsub.f32 1.0, %v793_v18  ;;  %v800_v33 = vmul.f32 %v793_v18, %v2488_v36  ;;  %v2613_v36 = vld [vmem:[%s2052_s23 + $0x150] sm:$0xff] }
 0x1a6   : > { %v796_v4 = vadd.f32 %v795_v58, %v466_v39 }
 0x1a8   : > { %1870 = vtanh.f32 %v796_v4 }
 0x1ae   : > { %v1871_v23 = vpop.eup %1870 }
 0x1af   : > { %v799_v7 = vmul.f32 %v1871_v23, %v798_v55 }
 0x1b1   : > { %v2598_v19 = vadd.f32 %v800_v33, %v799_v7 }
 0x1b3   : > { %1814 = vst [vmem:[%s2486_s14 + $0x8] sm:$0xff] %v2598_v19  ;;  %820 = vmatmul.f32.vlgmr.msrb.gmra.mxu3 %v2598_v19  ;;  %840 = vmatmul.f32.vlgmr.msra.gmra.mxu0 %v2598_v19 }
 0x1b4   : > { %860 = vmatmul.f32.vlgmr.msra.gmra.mxu1 %v2598_v19  ;;  %1070 = vmatpush.msrb.mxu3 %v2273_v29 }
 0x1b5   : > { %1143 = vmatpush.msra.mxu0 %v2607_v30  ;;  %1163 = vmatpush.msra.mxu1 %v2149_v41  ;;  %v2625_v41 = vld [vmem:[%s2052_s23 + $0x120] sm:$0xff] }
 0x1b6   : > { %1071 = vmatpush.msrb.mxu3 %v2280_v31 }
 0x1b7   : > { %1144 = vmatpush.msra.mxu0 %v2613_v36  ;;  %1164 = vmatpush.msra.mxu1 %v2167_v45  ;;  %v2631_v45 = vld [vmem:[%s2052_s23 + $0x108] sm:$0xff] }
 0x1b8   : > { %1072 = vmatpush.msrb.mxu3 %v2286_v35 }
 0x1b9   : > { %1145 = vmatpush.msra.mxu0 %v2619_v43  ;;  %1165 = vmatpush.msra.mxu1 %v2174_v49  ;;  %v2637_v49 = vld [vmem:[%s2052_s23 + $0xf0] sm:$0xff] }
 0x1ba   : > { %1073 = vmatpush.msrb.mxu3 %v2291_v37 }
 0x1bb   : > { %1146 = vmatpush.msra.mxu0 %v2625_v41  ;;  %1166 = vmatpush.msra.mxu1 %v2184_v53  ;;  %v2643_v53 = vld [vmem:[%s2052_s23 + $0xd8] sm:$0xff] }
 0x1bc   : > { %1074 = vmatpush.msrb.mxu3 %v2298_v38 }
 0x1bd   : > { %1147 = vmatpush.msra.mxu0 %v2631_v45  ;;  %1167 = vmatpush.msra.mxu1 %v2191_v56  ;;  %v2649_v56 = vld [vmem:[%s2052_s23 + $0xc0] sm:$0xff] }
 0x1be   : > { %1075 = vmatpush.msrb.mxu3 %v2306_v42 }
 0x1bf   : > { %1148 = vmatpush.msra.mxu0 %v2637_v49  ;;  %1168 = vmatpush.msra.mxu1 %v2198_v59  ;;  %v2655_v59 = vld [vmem:[%s2052_s23 + $0xa8] sm:$0xff] }
 0x1c0   : > { %1076 = vmatpush.msrb.mxu3 %v2312_v44 }
 0x1c1   : > { %1149 = vmatpush.msra.mxu0 %v2643_v53  ;;  %1169 = vmatpush.msra.mxu1 %v2204_v61  ;;  %v2661_v61 = vld [vmem:[%s2052_s23 + $0x90] sm:$0xff] }
 0x1c2   : > { %1077 = vmatpush.msrb.mxu3 %v2317_v46 }
 0x1c3   : > { %1150 = vmatpush.msra.mxu0 %v2649_v56  ;;  %1170 = vmatpush.msra.mxu1 %v2210_v63  ;;  %v2667_v63 = vld [vmem:[%s2052_s23 + $0x78] sm:$0xff] }
 0x1c4   : > { %1078 = vmatpush.msrb.mxu3 %v2324_v47 }
 0x1c5   : > { %1151 = vmatpush.msra.mxu0 %v2655_v59  ;;  %1171 = vmatpush.msra.mxu1 %v2217_v5  ;;  %v2673_v5 = vld [vmem:[%s2052_s23 + $0x60] sm:$0xff] }
 0x1c6   : > { %1079 = vmatpush.msrb.mxu3 %v2331_v48 }
 0x1c7   : > { %1152 = vmatpush.msra.mxu0 %v2661_v61  ;;  %1172 = vmatpush.msra.mxu1 %v2224_v9  ;;  %v2679_v9 = vld [vmem:[%s2052_s23 + $0x48] sm:$0xff] }
 0x1c8   : > { %1080 = vmatpush.msrb.mxu3 %v2338_v50 }
 0x1c9   : > { %1153 = vmatpush.msra.mxu0 %v2667_v63  ;;  %1173 = vmatpush.msra.mxu1 %v2231_v11  ;;  %v2685_v11 = vld [vmem:[%s2052_s23 + $0x30] sm:$0xff] }
 0x1ca   : > { %1081 = vmatpush.msrb.mxu3 %v2344_v51  ;;  %3212 = vst [vmem:[#allocation27_spill] sm:$0xff] %v2685_v11 }
 0x1cb   : > { %1154 = vmatpush.msra.mxu0 %v2673_v5  ;;  %1174 = vmatpush.msra.mxu1 %v2238_v14  ;;  %v2697_v14 = vld [vmem:[%s2052_s23] sm:$0xff] }
 0x1cc   : > { %1082 = vmatpush.msrb.mxu3 %v2351_v52  ;;  %3214 = vst [vmem:[#allocation29_spill] sm:$0xff] %v2697_v14 }
 0x1cd   : > { %1155 = vmatpush.msra.mxu0 %v2679_v9  ;;  %1175 = vmatpush.msra.mxu1 %v2245_v17 }
 0x1ce   : > { %1083 = vmatpush.msrb.mxu3 %v2358_v54 }
 0x1cf   : > { %1156 = vmatpush.msra.mxu0 %v2685_v11  ;;  %1176 = vmatpush.msra.mxu1 %v3181_v0  ;;  %v422_v0 = vadd.f32 %v2545_v24, %v3207_v32 }
 0x1d0   : > { %1084 = vmatpush.msrb.mxu3 %v3182_v1 }
 0x1d1   : > { %1157 = vmatpush.msra.mxu0 %v2691_v22  ;;  %1177 = vmatpush.msra.mxu1 %v3184_v3  ;;  %v375_v3 = vadd.f32 %v2543_v21, %v3206_v2 }
 0x1d2   : > { %1085 = vmatpush.msrb.mxu3 %v3185_v6 }
 0x1d3   : > { %1158 = vmatpush.msra.mxu0 %v2697_v14  ;;  %1178 = vmatpush.msra.mxu1 %v3187_v12 }
 0x230   : > { %v841_v17 = vpop.f32.mrf.mxu0 }
 0x231   : > { %v842_v15 = vadd.f32 %v841_v17, %v3209_v16 }
 0x233   : > { %v888_v60 = vadd.f32 %v842_v15, %v422_v0  ;;  %v861_v0 = vpop.f32.mrf.mxu1 }
 0x235   : > { %v1816_v10 = vmul.f32 -1.442695, %v888_v60 }
 0x236   : > { %v821_v8 = vpop.f32.mrf.mxu3 }
 0x237   : > { %1872 = vpow2.f32 %v1816_v10  ;;  %v822_v25 = vadd.f32 %v821_v8, %v3208_v40  ;;  %v862_v10 = vadd.f32 %v861_v0, %v2474_v34 }
 0x239   : > { %v868_v28 = vadd.f32 %v822_v25, %v375_v3 }
 0x23b   : > { %v1815_v39 = vmul.f32 -1.442695, %v868_v28  ;;  %v469_v28 = vadd.f32 %v2555_v20, %v2476_v57 }
 0x23d   : > { %v1873_v26 = vpop.eup %1872  ;;  %1874 = vpow2.f32 %v1815_v39 }
 0x23e   : > { %v892_v12 = vadd.f32 1.0, %v1873_v26 }
 0x240   : > { %1876 = vrcp.f32 %v892_v12  ;;  %v904_v39 = vand.u32 2147483648, %v892_v12  ;;  %vm898_vm5 = vweird.f32 %v892_v12 }
 0x243   : > { %v1875_v58 = vpop.eup %1874 }
 0x244   : > { %v872_v4 = vadd.f32 1.0, %v1875_v58  ;;  %v902_v58 = vand.u32 2147483647, %v892_v12 }
 0x246   : > { %1878 = vrcp.f32 %v872_v4  ;;  %v1877_v24 = vpop.eup %1876  ;;  %v884_v7 = vand.u32 2147483648, %v872_v4  ;;  %v882_v33 = vand.u32 2147483647, %v872_v4  ;;  %vm878_vm1 = vweird.f32 %v872_v4 }
 0x247   : > { %v894_v13 = vmul.f32 %v1877_v24, %v892_v12  ;;  %vm899_vm4 = vweird.f32 %v1877_v24  ;;  %vm903_vm7 = vcmp.eq.f32.partialorder %v902_v58, 8.507059e+37  ;;  %v2721_v12 = vld [vmem:[%s2052_s23 + $0x170] sm:$0xff] }
 0x248   : > { %v885_v60 = vor.u32 1.1754944e-38, %v884_v7  ;;  %vm883_vm3 = vcmp.eq.f32.partialorder %v882_v33, 8.507059e+37  ;;  %vm900_vm6 = vmor %vm898_vm5, %vm899_vm4 }
 0x249   : > { %v895_v55 = vsub.f32 1.0, %v894_v13 }
 0x24b   : > { %v896_v17 = vmul.f32 %v1877_v24, %v895_v55 }
 0x24c   : > { %v1879_v62 = vpop.eup %1878 }
 0x24d   : > { %v874_v18 = vmul.f32 %v1879_v62, %v872_v4  ;;  %vm879_vm0 = vweird.f32 %v1879_v62  ;;  %v897_v25 = vadd.f32 %v1877_v24, %v896_v17  ;;  %v378_v17 = vadd.f32 %v2547_v27, %v3206_v2 }
 0x24e   : > { %vm880_vm2 = vmor %vm878_vm1, %vm879_vm0 }
 0x24f   : > { %v875_v23 = vsub.f32 1.0, %v874_v18  ;;  %v901_v4 = vsel %vm900_vm6, %v1877_v24, %v897_v25  ;;  %v905_v18 = vor.u32 1.1754944e-38, %v904_v39  ;;  %v2805_v24 = vld [vmem:[%s2052_s23 + $0x20] sm:$0xff] }
 0x250   : > { %3216 = vst [vmem:[#allocation31_spill] sm:$0xff] %v2805_v24 }
 0x251   : > { %v876_v21 = vmul.f32 %v1879_v62, %v875_v23 }
 0x253   : > { %v877_v15 = vadd.f32 %v1879_v62, %v876_v21 }
 0x255   : > { %v881_v8 = vsel %vm880_vm2, %v1879_v62, %v877_v15  ;;  %v906_v62 = vsel %vm903_vm7, %v905_v18, %v901_v4 }
 0x256   : > { %v886_v3 = vsel %vm883_vm3, %v885_v60, %v881_v8  ;;  %v911_v55 = vsub.f32 1.0, %v906_v62  ;;  %v913_v21 = vmul.f32 %v906_v62, %v2598_v19  ;;  %v2727_v19 = vld [vmem:[%s2052_s23 + $0x158] sm:$0xff] }
 0x257   : > { %v908_v26 = vmul.f32 %v886_v3, %v862_v10 }
 0x259   : > { %v909_v13 = vadd.f32 %v908_v26, %v469_v28 }
 0x25b   : > { %1880 = vtanh.f32 %v909_v13 }
 0x261   : > { %v1881_v23 = vpop.eup %1880 }
 0x262   : > { %v912_v7 = vmul.f32 %v1881_v23, %v911_v55 }
 0x264   : > { %v2711_v20 = vadd.f32 %v913_v21, %v912_v7 }
 0x266   : > { %1817 = vst [vmem:[%s2486_s14 + $0x10] sm:$0xff] %v2711_v20  ;;  %933 = vmatmul.f32.vlgmr.msra.gmra.mxu2 %v2711_v20  ;;  %953 = vmatmul.f32.vlgmr.msra.gmra.mxu3 %v2711_v20 }
 0x267   : > { %973 = vmatmul.f32.vlgmr.msrb.gmra.mxu0 %v2711_v20  ;;  %1183 = vmatpush.msra.mxu2 %v2273_v29  ;;  %v2733_v29 = vld [vmem:[%s2052_s23 + $0x140] sm:$0xff] }
 0x268   : > { %1256 = vmatpush.msra.mxu3 %v2607_v30  ;;  %1276 = vmatpush.msrb.mxu0 %v2721_v12 }
 0x269   : > { %1184 = vmatpush.msra.mxu2 %v2280_v31  ;;  %v2739_v31 = vld [vmem:[%s2052_s23 + $0x128] sm:$0xff] }
 0x26a   : > { %1257 = vmatpush.msra.mxu3 %v2613_v36  ;;  %1277 = vmatpush.msrb.mxu0 %v2727_v19 }
 0x26b   : > { %1185 = vmatpush.msra.mxu2 %v2286_v35  ;;  %v2745_v35 = vld [vmem:[%s2052_s23 + $0x110] sm:$0xff] }
 0x26c   : > { %1258 = vmatpush.msra.mxu3 %v2619_v43  ;;  %1278 = vmatpush.msrb.mxu0 %v2733_v29 }
 0x26d   : > { %1186 = vmatpush.msra.mxu2 %v2291_v37  ;;  %v2751_v37 = vld [vmem:[%s2052_s23 + $0xf8] sm:$0xff] }
 0x26e   : > { %1259 = vmatpush.msra.mxu3 %v2625_v41  ;;  %1279 = vmatpush.msrb.mxu0 %v2739_v31 }
 0x26f   : > { %1187 = vmatpush.msra.mxu2 %v2298_v38  ;;  %v2757_v38 = vld [vmem:[%s2052_s23 + $0xe0] sm:$0xff] }
 0x270   : > { %1260 = vmatpush.msra.mxu3 %v2631_v45  ;;  %1280 = vmatpush.msrb.mxu0 %v2745_v35 }
 0x271   : > { %1188 = vmatpush.msra.mxu2 %v2306_v42  ;;  %v2763_v42 = vld [vmem:[%s2052_s23 + $0xc8] sm:$0xff] }
 0x272   : > { %1261 = vmatpush.msra.mxu3 %v2637_v49  ;;  %1281 = vmatpush.msrb.mxu0 %v2751_v37 }
 0x273   : > { %1189 = vmatpush.msra.mxu2 %v2312_v44  ;;  %v2769_v44 = vld [vmem:[%s2052_s23 + $0xb0] sm:$0xff] }
 0x274   : > { %1262 = vmatpush.msra.mxu3 %v2643_v53  ;;  %1282 = vmatpush.msrb.mxu0 %v2757_v38 }
 0x275   : > { %1190 = vmatpush.msra.mxu2 %v2317_v46  ;;  %v2775_v46 = vld [vmem:[%s2052_s23 + $0x98] sm:$0xff] }
 0x276   : > { %1263 = vmatpush.msra.mxu3 %v2649_v56  ;;  %1283 = vmatpush.msrb.mxu0 %v2763_v42 }
 0x277   : > { %1191 = vmatpush.msra.mxu2 %v2324_v47  ;;  %v2781_v47 = vld [vmem:[%s2052_s23 + $0x80] sm:$0xff] }
 0x278   : > { %1264 = vmatpush.msra.mxu3 %v2655_v59  ;;  %1284 = vmatpush.msrb.mxu0 %v2769_v44 }
 0x279   : > { %1192 = vmatpush.msra.mxu2 %v2331_v48  ;;  %v2787_v48 = vld [vmem:[%s2052_s23 + $0x68] sm:$0xff] }
 0x27a   : > { %1265 = vmatpush.msra.mxu3 %v2661_v61  ;;  %1285 = vmatpush.msrb.mxu0 %v2775_v46 }
 0x27b   : > { %1193 = vmatpush.msra.mxu2 %v2338_v50  ;;  %v2793_v50 = vld [vmem:[%s2052_s23 + $0x50] sm:$0xff] }
 0x27c   : > { %1266 = vmatpush.msra.mxu3 %v2667_v63  ;;  %1286 = vmatpush.msrb.mxu0 %v2781_v47 }
 0x27d   : > { %1194 = vmatpush.msra.mxu2 %v2344_v51  ;;  %v2799_v51 = vld [vmem:[%s2052_s23 + $0x38] sm:$0xff] }
 0x27e   : > { %1267 = vmatpush.msra.mxu3 %v2673_v5  ;;  %1287 = vmatpush.msrb.mxu0 %v2787_v48  ;;  %3215 = vst [vmem:[#allocation30_spill] sm:$0xff] %v2799_v51 }
 0x27f   : > { %1195 = vmatpush.msra.mxu2 %v2351_v52  ;;  %v2811_v52 = vld [vmem:[%s2052_s23 + $0x8] sm:$0xff] }
 0x280   : > { %1268 = vmatpush.msra.mxu3 %v2679_v9  ;;  %1288 = vmatpush.msrb.mxu0 %v2793_v50  ;;  %3217 = vst [vmem:[#allocation32_spill] sm:$0xff] %v2811_v52 }
 0x281   : > { %1196 = vmatpush.msra.mxu2 %v2358_v54 }
 0x282   : > { %1269 = vmatpush.msra.mxu3 %v2685_v11  ;;  %1289 = vmatpush.msrb.mxu0 %v2799_v51 }
 0x283   : > { %1197 = vmatpush.msra.mxu2 %v3182_v1  ;;  %v3218_v1 = vld [vmem:[#allocation5_spill] sm:$0xff] }
 0x284   : > { %1270 = vmatpush.msra.mxu3 %v2691_v22  ;;  %1290 = vmatpush.msrb.mxu0 %v2805_v24  ;;  %v425_v0 = vadd.f32 %v3218_v1, %v3207_v32 }
 0x285   : > { %1198 = vmatpush.msra.mxu2 %v3185_v6 }
 0x286   : > { %1271 = vmatpush.msra.mxu3 %v2697_v14  ;;  %1291 = vmatpush.msrb.mxu0 %v2811_v52 }
 0x2e4   : > { %v974_v21 = vpop.f32.mrf.mxu0 }
 0x2e5   : > { %v975_v1 = vadd.f32 %v974_v21, %v2474_v34  ;;  %v2856_v21 = vld [vmem:[%s2052_s23 + $0x118] sm:$0xff] }
 0x2e9   : > { %v934_v54 = vpop.f32.mrf.mxu2  ;;  %v954_v33 = vpop.f32.mrf.mxu3 }
 0x2ea   : > { %v935_v15 = vadd.f32 %v934_v54, %v3208_v40  ;;  %v955_v60 = vadd.f32 %v954_v33, %v3209_v16 }
 0x2ec   : > { %v981_v10 = vadd.f32 %v935_v15, %v378_v17  ;;  %v1001_v6 = vadd.f32 %v955_v60, %v425_v0 }
 0x2ee   : > { %v1818_v8 = vmul.f32 -1.442695, %v981_v10  ;;  %v1819_v3 = vmul.f32 -1.442695, %v1001_v6  ;;  %v3219_v10 = vld [vmem:[#allocation4_spill] sm:$0xff] }
 0x2ef   : > { %v472_v6 = vadd.f32 %v3219_v10, %v2476_v57  ;;  %v2904_v10 = vld [vmem:[%s2052_s23 + $0x58] sm:$0xff] }
 0x2f0   : > { %1882 = vpow2.f32 %v1818_v8 }
 0x2f1   : > { %1884 = vpow2.f32 %v1819_v3 }
 0x2f6   : > { %v1883_v25 = vpop.eup %1882 }
 0x2f7   : > { %v1885_v28 = vpop.eup %1884  ;;  %v985_v39 = vadd.f32 1.0, %v1883_v25 }
 0x2f8   : > { %v1005_v26 = vadd.f32 1.0, %v1885_v28 }
 0x2f9   : > { %1886 = vrcp.f32 %v985_v39  ;;  %v997_v62 = vand.u32 2147483648, %v985_v39  ;;  %v995_v7 = vand.u32 2147483647, %v985_v39  ;;  %vm991_vm9 = vweird.f32 %v985_v39 }
 0x2fa   : > { %1888 = vrcp.f32 %v1005_v26  ;;  %v1017_v3 = vand.u32 2147483648, %v1005_v26  ;;  %vm1011_vm13 = vweird.f32 %v1005_v26  ;;  %v1015_v25 = vand.u32 2147483647, %v1005_v26 }
 0x2fb   : > { %v998_v17 = vor.u32 1.1754944e-38, %v997_v62  ;;  %vm996_vm11 = vcmp.eq.f32.partialorder %v995_v7, 8.507059e+37  ;;  %v2850_v7 = vld [vmem:[%s2052_s23 + $0x130] sm:$0xff] }
 0x2fc   : > { %vm1016_vm15 = vcmp.eq.f32.partialorder %v1015_v25, 8.507059e+37 }
 0x2ff   : > { %v1887_v27 = vpop.eup %1886 }
 0x300   : > { %v1889_v58 = vpop.eup %1888  ;;  %v987_v13 = vmul.f32 %v1887_v27, %v985_v39  ;;  %vm992_vm8 = vweird.f32 %v1887_v27 }
 0x301   : > { %v1007_v4 = vmul.f32 %v1889_v58, %v1005_v26  ;;  %vm993_vm10 = vmor %vm991_vm9, %vm992_vm8  ;;  %vm1012_vm12 = vweird.f32 %v1889_v58  ;;  %v2832_v26 = vld [vmem:[%s2052_s23 + $0x178] sm:$0xff] }
 0x302   : > { %v988_v18 = vsub.f32 1.0, %v987_v13  ;;  %vm1013_vm14 = vmor %vm1011_vm13, %vm1012_vm12  ;;  %v1018_v13 = vor.u32 1.1754944e-38, %v1017_v3  ;;  %v2922_v3 = vld [vmem:[%s2052_s23 + $0x10] sm:$0xff] }
 0x303   : > { %v1008_v55 = vsub.f32 1.0, %v1007_v4  ;;  %3221 = vst [vmem:[#allocation4_spill] sm:$0xff] %v2922_v3 }
 0x304   : > { %v989_v23 = vmul.f32 %v1887_v27, %v988_v18 }
 0x305   : > { %v1009_v54 = vmul.f32 %v1889_v58, %v1008_v55 }
 0x306   : > { %v990_v33 = vadd.f32 %v1887_v27, %v989_v23 }
 0x307   : > { %v1010_v60 = vadd.f32 %v1889_v58, %v1009_v54  ;;  %v2862_v54 = vld [vmem:[%s2052_s23 + $0x100] sm:$0xff] }
 0x308   : > { %v994_v0 = vsel %vm993_vm10, %v1887_v27, %v990_v33  ;;  %v2868_v33 = vld [vmem:[%s2052_s23 + $0xe8] sm:$0xff] }
 0x309   : > { %v999_v15 = vsel %vm996_vm11, %v998_v17, %v994_v0  ;;  %v1014_v39 = vsel %vm1013_vm14, %v1889_v58, %v1010_v60  ;;  %v2844_v58 = vld [vmem:[%s2052_s23 + $0x148] sm:$0xff]  ;;  %v2874_v17 = vld [vmem:[%s2052_s23 + $0xd0] sm:$0xff]  ;;  %v2886_v0 = vld [vmem:[%s2052_s23 + $0xa0] sm:$0xff] }
 0x30a   : > { %v1021_v8 = vmul.f32 %v999_v15, %v975_v1  ;;  %v1019_v27 = vsel %vm1016_vm15, %v1018_v13, %v1014_v39  ;;  %v2880_v1 = vld [vmem:[%s2052_s23 + $0xb8] sm:$0xff]  ;;  %v2892_v15 = vld [vmem:[%s2052_s23 + $0x88] sm:$0xff]  ;;  %v2898_v60 = vld [vmem:[%s2052_s23 + $0x70] sm:$0xff] }
 0x30b   : > { %v1024_v4 = vsub.f32 1.0, %v1019_v27  ;;  %v1026_v55 = vmul.f32 %v1019_v27, %v2711_v20  ;;  %v2838_v20 = vld [vmem:[%s2052_s23 + $0x160] sm:$0xff] }
 0x30c   : > { %v1022_v28 = vadd.f32 %v1021_v8, %v472_v6  ;;  %v2910_v6 = vld [vmem:[%s2052_s23 + $0x40] sm:$0xff]  ;;  %v2916_v8 = vld [vmem:[%s2052_s23 + $0x28] sm:$0xff] }
 0x30d   : > { %3220 = vst [vmem:[#allocation5_spill] sm:$0xff] %v2916_v8 }
 0x30e   : > { %1890 = vtanh.f32 %v1022_v28  ;;  %v3222_v28 = vld [vmem:[#allocation8_spill] sm:$0xff] }
 0x30f   : > { %v381_v39 = vadd.f32 %v3222_v28, %v3206_v2 }
 0x314   : > { %v1891_v18 = vpop.eup %1890 }
 0x315   : > { %v1025_v62 = vmul.f32 %v1891_v18, %v1024_v4 }
 0x317   : > { %v2824_v23 = vadd.f32 %v1026_v55, %v1025_v62  ;;  %v3223_v62 = vld [vmem:[#allocation3_spill] sm:$0xff] }
 0x318   : > { %v428_v55 = vadd.f32 %v3223_v62, %v3207_v32 }
 0x319   : > { %1820 = vst [vmem:[%s2486_s14 + $0x18] sm:$0xff] %v2824_v23  ;;  %1046 = vmatmul.f32.vlgmr.msrb.gmra.mxu1 %v2824_v23  ;;  %1066 = vmatmul.f32.vlgmr.msrb.gmra.mxu2 %v2824_v23 }
 0x31a   : > { %1086 = vmatmul.f32.vlgmr.msrb.gmra.mxu3 %v2824_v23  ;;  %1296 = vmatpush.msrb.mxu1 %v2832_v26 }
 0x31b   : > { %1369 = vmatpush.msrb.mxu2 %v2607_v30  ;;  %1389 = vmatpush.msrb.mxu3 %v2721_v12 }
 0x31c   : > { %1297 = vmatpush.msrb.mxu1 %v2838_v20 }
 0x31d   : > { %1370 = vmatpush.msrb.mxu2 %v2613_v36  ;;  %1390 = vmatpush.msrb.mxu3 %v2727_v19 }
 0x31e   : > { %1298 = vmatpush.msrb.mxu1 %v2844_v58 }
 0x31f   : > { %1371 = vmatpush.msrb.mxu2 %v2619_v43  ;;  %1391 = vmatpush.msrb.mxu3 %v2733_v29 }
 0x320   : > { %1299 = vmatpush.msrb.mxu1 %v2850_v7 }
 0x321   : > { %1372 = vmatpush.msrb.mxu2 %v2625_v41  ;;  %1392 = vmatpush.msrb.mxu3 %v2739_v31 }
 0x322   : > { %1300 = vmatpush.msrb.mxu1 %v2856_v21 }
 0x323   : > { %1373 = vmatpush.msrb.mxu2 %v2631_v45  ;;  %1393 = vmatpush.msrb.mxu3 %v2745_v35 }
 0x324   : > { %1301 = vmatpush.msrb.mxu1 %v2862_v54 }
 0x325   : > { %1374 = vmatpush.msrb.mxu2 %v2637_v49  ;;  %1394 = vmatpush.msrb.mxu3 %v2751_v37 }
 0x326   : > { %1302 = vmatpush.msrb.mxu1 %v2868_v33 }
 0x327   : > { %1375 = vmatpush.msrb.mxu2 %v2643_v53  ;;  %1395 = vmatpush.msrb.mxu3 %v2757_v38 }
 0x328   : > { %1303 = vmatpush.msrb.mxu1 %v2874_v17 }
 0x329   : > { %1376 = vmatpush.msrb.mxu2 %v2649_v56  ;;  %1396 = vmatpush.msrb.mxu3 %v2763_v42 }
 0x32a   : > { %1304 = vmatpush.msrb.mxu1 %v2880_v1 }
 0x32b   : > { %1377 = vmatpush.msrb.mxu2 %v2655_v59  ;;  %1397 = vmatpush.msrb.mxu3 %v2769_v44 }
 0x32c   : > { %1305 = vmatpush.msrb.mxu1 %v2886_v0 }
 0x32d   : > { %1378 = vmatpush.msrb.mxu2 %v2661_v61  ;;  %1398 = vmatpush.msrb.mxu3 %v2775_v46 }
 0x32e   : > { %1306 = vmatpush.msrb.mxu1 %v2892_v15 }
 0x32f   : > { %1379 = vmatpush.msrb.mxu2 %v2667_v63  ;;  %1399 = vmatpush.msrb.mxu3 %v2781_v47 }
 0x330   : > { %1307 = vmatpush.msrb.mxu1 %v2898_v60 }
 0x331   : > { %1380 = vmatpush.msrb.mxu2 %v2673_v5  ;;  %1400 = vmatpush.msrb.mxu3 %v2787_v48 }
 0x332   : > { %1308 = vmatpush.msrb.mxu1 %v2904_v10 }
 0x333   : > { %1381 = vmatpush.msrb.mxu2 %v2679_v9  ;;  %1401 = vmatpush.msrb.mxu3 %v2793_v50 }
 0x334   : > { %1309 = vmatpush.msrb.mxu1 %v2910_v6 }
 0x335   : > { %1382 = vmatpush.msrb.mxu2 %v2685_v11  ;;  %1402 = vmatpush.msrb.mxu3 %v2799_v51 }
 0x336   : > { %1310 = vmatpush.msrb.mxu1 %v2916_v8 }
 0x337   : > { %1383 = vmatpush.msrb.mxu2 %v2691_v22  ;;  %1403 = vmatpush.msrb.mxu3 %v2805_v24 }
 0x338   : > { %1311 = vmatpush.msrb.mxu1 %v2922_v3 }
 0x339   : > { %1384 = vmatpush.msrb.mxu2 %v2697_v14  ;;  %1404 = vmatpush.msrb.mxu3 %v2811_v52 }
 0x396   : > { %v1047_v25 = vpop.f32.mrf.mxu1 }
 0x397   : > { %v1048_v13 = vadd.f32 %v1047_v25, %v3208_v40 }
 0x399   : > { %v1094_v27 = vadd.f32 %v1048_v13, %v381_v39 }
 0x39b   : > { %v1821_v4 = vmul.f32 -1.442695, %v1094_v27 }
 0x39c   : > { %v1067_v18 = vpop.f32.mrf.mxu2 }
 0x39d   : > { %1892 = vpow2.f32 %v1821_v4  ;;  %v1068_v24 = vadd.f32 %v1067_v18, %v3209_v16  ;;  %v1087_v4 = vpop.f32.mrf.mxu3 }
 0x39f   : > { %v1114_v3 = vadd.f32 %v1068_v24, %v428_v55 }
 0x3a1   : > { %v1822_v22 = vmul.f32 -1.442695, %v1114_v3 }
 0x3a3   : > { %v1893_v14 = vpop.eup %1892  ;;  %1894 = vpow2.f32 %v1822_v22 }
 0x3a4   : > { %v1098_v52 = vadd.f32 1.0, %v1893_v14  ;;  %v1088_v14 = vadd.f32 %v1087_v4, %v2474_v34 }
 0x3a6   : > { %1896 = vrcp.f32 %v1098_v52  ;;  %v1110_v13 = vand.u32 2147483648, %v1098_v52  ;;  %v1108_v40 = vand.u32 2147483647, %v1098_v52  ;;  %vm1104_vm1 = vweird.f32 %v1098_v52 }
 0x3a8   : > { %v1111_v24 = vor.u32 1.1754944e-38, %v1110_v13  ;;  %vm1109_vm3 = vcmp.eq.f32.partialorder %v1108_v40, 8.507059e+37 }
 0x3a9   : > { %v1895_v8 = vpop.eup %1894 }
 0x3aa   : > { %v1118_v51 = vadd.f32 1.0, %v1895_v8  ;;  %v3224_v8 = vld [vmem:[#allocation15_spill] sm:$0xff] }
 0x3ab   : > { %v475_v55 = vadd.f32 %v3224_v8, %v2476_v57 }
 0x3ac   : > { %v1897_v28 = vpop.eup %1896  ;;  %1898 = vrcp.f32 %v1118_v51  ;;  %v1128_v11 = vand.u32 2147483647, %v1118_v51  ;;  %vm1124_vm5 = vweird.f32 %v1118_v51 }
 0x3ad   : > { %v1100_v25 = vmul.f32 %v1897_v28, %v1098_v52  ;;  %vm1105_vm0 = vweird.f32 %v1897_v28 }
 0x3ae   : > { %vm1106_vm2 = vmor %vm1104_vm1, %vm1105_vm0  ;;  %vm1129_vm7 = vcmp.eq.f32.partialorder %v1128_v11, 8.507059e+37  ;;  %v3227_v11 = vld [vmem:[#allocation5_spill] sm:$0xff] }
 0x3af   : > { %v1101_v39 = vsub.f32 1.0, %v1100_v25 }
 0x3b1   : > { %v1102_v27 = vmul.f32 %v1897_v28, %v1101_v39  ;;  %v1130_v39 = vand.u32 2147483648, %v1118_v51 }
 0x3b2   : > { %v1899_v62 = vpop.eup %1898 }
 0x3b3   : > { %v1120_v32 = vmul.f32 %v1899_v62, %v1118_v51  ;;  %v1103_v18 = vadd.f32 %v1897_v28, %v1102_v27  ;;  %vm1125_vm4 = vweird.f32 %v1899_v62  ;;  %v1131_v13 = vor.u32 1.1754944e-38, %v1130_v39  ;;  %v3228_v51 = vld [vmem:[#allocation28_spill] sm:$0xff]  ;;  %v3234_v39 = vld [vmem:[#allocation6_spill] sm:$0xff] }
 0x3b4   : > { %vm1126_vm6 = vmor %vm1124_vm5, %vm1125_vm4 }
 0x3b5   : > { %v1121_v22 = vsub.f32 1.0, %v1120_v32  ;;  %v1107_v3 = vsel %vm1106_vm2, %v1897_v28, %v1103_v18 }
 0x3b6   : > { %v1112_v25 = vsel %vm1109_vm3, %v1111_v24, %v1107_v3  ;;  %v3232_v3 = vld [vmem:[#allocation32_spill] sm:$0xff] }
 0x3b7   : > { %v1122_v16 = vmul.f32 %v1899_v62, %v1121_v22  ;;  %v1134_v2 = vmul.f32 %v1112_v25, %v1088_v14  ;;  %v3231_v14 = vld [vmem:[#allocation29_spill] sm:$0xff]  ;;  %v3233_v25 = vld [vmem:[#allocation10_spill] sm:$0xff] }
 0x3b9   : > { %v1123_v27 = vadd.f32 %v1899_v62, %v1122_v16  ;;  %v1135_v52 = vadd.f32 %v1134_v2, %v475_v55  ;;  %v3225_v16 = vld [vmem:[#allocation27_spill] sm:$0xff]  ;;  %v3226_v2 = vld [vmem:[#allocation30_spill] sm:$0xff] }
 0x3bb   : > { %v1127_v32 = vsel %vm1126_vm6, %v1899_v62, %v1123_v27  ;;  %1900 = vtanh.f32 %v1135_v52  ;;  %v3230_v62 = vld [vmem:[#allocation4_spill] sm:$0xff]  ;;  %v384_v27 = vadd.f32 %v3234_v39, %v3233_v25 }
 0x3bc   : > { %v1132_v28 = vsel %vm1129_vm7, %v1131_v13, %v1127_v32  ;;  %v3235_v52 = vld [vmem:[#allocation12_spill] sm:$0xff]  ;;  %v3236_v13 = vld [vmem:[#allocation9_spill] sm:$0xff] }
 0x3bd   : > { %v1137_v40 = vsub.f32 1.0, %v1132_v28  ;;  %v1139_v24 = vmul.f32 %v1132_v28, %v2824_v23  ;;  %v3229_v23 = vld [vmem:[#allocation31_spill] sm:$0xff]  ;;  %v431_v32 = vadd.f32 %v3236_v13, %v3235_v52 }
 0x3be   : > { %v3237_v28 = vld [vmem:[#allocation11_spill] sm:$0xff] }
 0x3c1   : > { %v1901_v4 = vpop.eup %1900 }
 0x3c2   : > { %v1138_v18 = vmul.f32 %v1901_v4, %v1137_v40  ;;  %v3238_v4 = vld [vmem:[#allocation13_spill] sm:$0xff] }
 0x3c4   : > { %v2937_v22 = vadd.f32 %v1139_v24, %v1138_v18 }
 0x3c6   : > { %1823 = vst [vmem:[%s2486_s14 + $0x20] sm:$0xff] %v2937_v22  ;;  %1159 = vmatmul.f32.vlgmr.msra.gmra.mxu0 %v2937_v22  ;;  %1179 = vmatmul.f32.vlgmr.msra.gmra.mxu1 %v2937_v22 }
 0x3c7   : > { %1199 = vmatmul.f32.vlgmr.msra.gmra.mxu2 %v2937_v22  ;;  %1409 = vmatpush.msra.mxu0 %v2832_v26 }
 0x3c8   : > { %1482 = vmatpush.msra.mxu1 %v2607_v30  ;;  %1502 = vmatpush.msra.mxu2 %v2721_v12 }
 0x3c9   : > { %1410 = vmatpush.msra.mxu0 %v2838_v20 }
 0x3ca   : > { %1483 = vmatpush.msra.mxu1 %v2613_v36  ;;  %1503 = vmatpush.msra.mxu2 %v2727_v19 }
 0x3cb   : > { %1411 = vmatpush.msra.mxu0 %v2844_v58 }
 0x3cc   : > { %1484 = vmatpush.msra.mxu1 %v2619_v43  ;;  %1504 = vmatpush.msra.mxu2 %v2733_v29 }
 0x3cd   : > { %1412 = vmatpush.msra.mxu0 %v2850_v7 }
 0x3ce   : > { %1485 = vmatpush.msra.mxu1 %v2625_v41  ;;  %1505 = vmatpush.msra.mxu2 %v2739_v31 }
 0x3cf   : > { %1413 = vmatpush.msra.mxu0 %v2856_v21 }
 0x3d0   : > { %1486 = vmatpush.msra.mxu1 %v2631_v45  ;;  %1506 = vmatpush.msra.mxu2 %v2745_v35 }
 0x3d1   : > { %1414 = vmatpush.msra.mxu0 %v2862_v54 }
 0x3d2   : > { %1487 = vmatpush.msra.mxu1 %v2637_v49  ;;  %1507 = vmatpush.msra.mxu2 %v2751_v37 }
 0x3d3   : > { %1415 = vmatpush.msra.mxu0 %v2868_v33 }
 0x3d4   : > { %1488 = vmatpush.msra.mxu1 %v2643_v53  ;;  %1508 = vmatpush.msra.mxu2 %v2757_v38 }
 0x3d5   : > { %1416 = vmatpush.msra.mxu0 %v2874_v17 }
 0x3d6   : > { %1489 = vmatpush.msra.mxu1 %v2649_v56  ;;  %1509 = vmatpush.msra.mxu2 %v2763_v42 }
 0x3d7   : > { %1417 = vmatpush.msra.mxu0 %v2880_v1 }
 0x3d8   : > { %1490 = vmatpush.msra.mxu1 %v2655_v59  ;;  %1510 = vmatpush.msra.mxu2 %v2769_v44 }
 0x3d9   : > { %1418 = vmatpush.msra.mxu0 %v2886_v0 }
 0x3da   : > { %1491 = vmatpush.msra.mxu1 %v2661_v61  ;;  %1511 = vmatpush.msra.mxu2 %v2775_v46 }
 0x3db   : > { %1419 = vmatpush.msra.mxu0 %v2892_v15 }
 0x3dc   : > { %1492 = vmatpush.msra.mxu1 %v2667_v63  ;;  %1512 = vmatpush.msra.mxu2 %v2781_v47 }
 0x3dd   : > { %1420 = vmatpush.msra.mxu0 %v2898_v60 }
 0x3de   : > { %1493 = vmatpush.msra.mxu1 %v2673_v5  ;;  %1513 = vmatpush.msra.mxu2 %v2787_v48 }
 0x3df   : > { %1421 = vmatpush.msra.mxu0 %v2904_v10 }
 0x3e0   : > { %1494 = vmatpush.msra.mxu1 %v2679_v9  ;;  %1514 = vmatpush.msra.mxu2 %v2793_v50 }
 0x3e1   : > { %1422 = vmatpush.msra.mxu0 %v2910_v6 }
 0x3e2   : > { %1495 = vmatpush.msra.mxu1 %v3225_v16  ;;  %1515 = vmatpush.msra.mxu2 %v3226_v2 }
 0x3e3   : > { %1423 = vmatpush.msra.mxu0 %v3227_v11 }
 0x3e4   : > { %1496 = vmatpush.msra.mxu1 %v3228_v51  ;;  %1516 = vmatpush.msra.mxu2 %v3229_v23 }
 0x3e5   : > { %1424 = vmatpush.msra.mxu0 %v3230_v62 }
 0x3e6   : > { %1497 = vmatpush.msra.mxu1 %v3231_v14  ;;  %1517 = vmatpush.msra.mxu2 %v3232_v3 }
 0x443   : > { %v1160_v8 = vpop.f32.mrf.mxu0  ;;  %v1180_v55 = vpop.f32.mrf.mxu1 }
 0x444   : > { %v1161_v40 = vadd.f32 %v1160_v8, %v3237_v28  ;;  %v1181_v18 = vadd.f32 %v1180_v55, %v3238_v4 }
 0x446   : > { %v1207_v24 = vadd.f32 %v1161_v40, %v384_v27  ;;  %v1227_v23 = vadd.f32 %v1181_v18, %v431_v32 }
 0x448   : > { %v1824_v51 = vmul.f32 -1.442695, %v1207_v24  ;;  %v1825_v62 = vmul.f32 -1.442695, %v1227_v23 }
 0x44a   : > { %1902 = vpow2.f32 %v1824_v51  ;;  %v1200_v23 = vpop.f32.mrf.mxu2 }
 0x44b   : > { %1904 = vpow2.f32 %v1825_v62 }
 0x450   : > { %v1903_v14 = vpop.eup %1902 }
 0x451   : > { %v1905_v3 = vpop.eup %1904  ;;  %v1211_v11 = vadd.f32 1.0, %v1903_v14  ;;  %v1201_v14 = vadd.f32 %v1200_v23, %v2474_v34 }
 0x452   : > { %v1231_v2 = vadd.f32 1.0, %v1905_v3 }
 0x453   : > { %1906 = vrcp.f32 %v1211_v11  ;;  %v1223_v28 = vand.u32 2147483648, %v1211_v11  ;;  %v1221_v27 = vand.u32 2147483647, %v1211_v11  ;;  %vm1217_vm9 = vweird.f32 %v1211_v11 }
 0x454   : > { %1908 = vrcp.f32 %v1231_v2  ;;  %vm1237_vm13 = vweird.f32 %v1231_v2 }
 0x455   : > { %v1224_v62 = vor.u32 1.1754944e-38, %v1223_v28  ;;  %vm1222_vm11 = vcmp.eq.f32.partialorder %v1221_v27, 8.507059e+37 }
 0x459   : > { %v1907_v39 = vpop.eup %1906 }
 0x45a   : > { %v1909_v25 = vpop.eup %1908  ;;  %v1213_v16 = vmul.f32 %v1907_v39, %v1211_v11  ;;  %vm1218_vm8 = vweird.f32 %v1907_v39 }
 0x45b   : > { %v1233_v13 = vmul.f32 %v1909_v25, %v1231_v2  ;;  %vm1219_vm10 = vmor %vm1217_vm9, %vm1218_vm8  ;;  %vm1238_vm12 = vweird.f32 %v1909_v25 }
 0x45c   : > { %v1214_v52 = vsub.f32 1.0, %v1213_v16  ;;  %v3239_v16 = vld [vmem:[#allocation18_spill] sm:$0xff]  ;;  %vm1239_vm14 = vmor %vm1237_vm13, %vm1238_vm12 }
 0x45d   : > { %v1234_v8 = vsub.f32 1.0, %v1233_v13  ;;  %v478_v24 = vadd.f32 %v3239_v16, %v2476_v57  ;;  %v1243_v13 = vand.u32 2147483648, %v1231_v2 }
 0x45e   : > { %v1215_v55 = vmul.f32 %v1907_v39, %v1214_v52 }
 0x45f   : > { %v1235_v32 = vmul.f32 %v1909_v25, %v1234_v8  ;;  %v1241_v8 = vand.u32 2147483647, %v1231_v2  ;;  %v1244_v4 = vor.u32 1.1754944e-38, %v1243_v13 }
 0x460   : > { %v1216_v51 = vadd.f32 %v1907_v39, %v1215_v55 }
 0x461   : > { %v1236_v18 = vadd.f32 %v1909_v25, %v1235_v32  ;;  %vm1242_vm15 = vcmp.eq.f32.partialorder %v1241_v8, 8.507059e+37 }
 0x462   : > { %v1220_v3 = vsel %vm1219_vm10, %v1907_v39, %v1216_v51 }
 0x463   : > { %v1225_v40 = vsel %vm1222_vm11, %v1224_v62, %v1220_v3  ;;  %v1240_v11 = vsel %vm1239_vm14, %v1909_v25, %v1236_v18 }
 0x464   : > { %v1247_v52 = vmul.f32 %v1225_v40, %v1201_v14  ;;  %v1245_v28 = vsel %vm1242_vm15, %v1244_v4, %v1240_v11 }
 0x465   : > { %v1250_v39 = vsub.f32 1.0, %v1245_v28  ;;  %v1252_v32 = vmul.f32 %v1245_v28, %v2937_v22 }
 0x466   : > { %v1248_v55 = vadd.f32 %v1247_v52, %v478_v24 }
 0x468   : > { %1910 = vtanh.f32 %v1248_v55 }
 0x46e   : > { %v1911_v27 = vpop.eup %1910 }
 0x46f   : > { %v1251_v23 = vmul.f32 %v1911_v27, %v1250_v39 }
 0x471   : > { %v3002_v51 = vadd.f32 %v1252_v32, %v1251_v23  ;;  %v3254_v23 = vld [vmem:[#allocation21_spill] sm:$0xff] }
 0x472   : > { %v481_v32 = vadd.f32 %v3254_v23, %v2476_v57 }
 0x473   : > { %1826 = vst [vmem:[%s2486_s14 + $0x28] sm:$0xff] %v3002_v51  ;;  %1272 = vmatmul.f32.vlgmr.msra.gmra.mxu3 %v3002_v51  ;;  %1292 = vmatmul.f32.vlgmr.msrb.gmra.mxu0 %v3002_v51 }
 0x474   : > { %1312 = vmatmul.f32.vlgmr.msrb.gmra.mxu1 %v3002_v51  ;;  %1522 = vmatpush.msra.mxu3 %v2832_v26 }
 0x475   : > { %1595 = vmatpush.msrb.mxu0 %v2607_v30  ;;  %1615 = vmatpush.msrb.mxu1 %v2721_v12  ;;  %v3240_v30 = vld [vmem:[#allocation27_spill] sm:$0xff] }
 0x476   : > { %1523 = vmatpush.msra.mxu3 %v2838_v20 }
 0x477   : > { %1596 = vmatpush.msrb.mxu0 %v2613_v36  ;;  %1616 = vmatpush.msrb.mxu1 %v2727_v19  ;;  %v3241_v36 = vld [vmem:[#allocation30_spill] sm:$0xff] }
 0x478   : > { %1524 = vmatpush.msra.mxu3 %v2844_v58 }
 0x479   : > { %1597 = vmatpush.msrb.mxu0 %v2619_v43  ;;  %1617 = vmatpush.msrb.mxu1 %v2733_v29  ;;  %v3242_v43 = vld [vmem:[#allocation5_spill] sm:$0xff] }
 0x47a   : > { %1525 = vmatpush.msra.mxu3 %v2850_v7 }
 0x47b   : > { %1598 = vmatpush.msrb.mxu0 %v2625_v41  ;;  %1618 = vmatpush.msrb.mxu1 %v2739_v31  ;;  %v3243_v41 = vld [vmem:[#allocation28_spill] sm:$0xff] }
 0x47c   : > { %1526 = vmatpush.msra.mxu3 %v2856_v21 }
 0x47d   : > { %1599 = vmatpush.msrb.mxu0 %v2631_v45  ;;  %1619 = vmatpush.msrb.mxu1 %v2745_v35  ;;  %v3244_v45 = vld [vmem:[#allocation31_spill] sm:$0xff]  ;;  %v3251_v35 = vld [vmem:[#allocation10_spill] sm:$0xff] }
 0x47e   : > { %1527 = vmatpush.msra.mxu3 %v2862_v54 }
 0x47f   : > { %1600 = vmatpush.msrb.mxu0 %v2637_v49  ;;  %1620 = vmatpush.msrb.mxu1 %v2751_v37  ;;  %v3245_v49 = vld [vmem:[#allocation4_spill] sm:$0xff]  ;;  %v3252_v37 = vld [vmem:[#allocation7_spill] sm:$0xff] }
 0x480   : > { %1528 = vmatpush.msra.mxu3 %v2868_v33 }
 0x481   : > { %1601 = vmatpush.msrb.mxu0 %v2643_v53  ;;  %1621 = vmatpush.msrb.mxu1 %v2757_v38  ;;  %v3246_v53 = vld [vmem:[#allocation29_spill] sm:$0xff]  ;;  %v387_v38 = vadd.f32 %v3252_v37, %v3251_v35 }
 0x482   : > { %1529 = vmatpush.msra.mxu3 %v2874_v17 }
 0x483   : > { %1602 = vmatpush.msrb.mxu0 %v2649_v56  ;;  %1622 = vmatpush.msrb.mxu1 %v2763_v42  ;;  %v3247_v56 = vld [vmem:[#allocation32_spill] sm:$0xff]  ;;  %v3253_v42 = vld [vmem:[#allocation11_spill] sm:$0xff] }
 0x484   : > { %1530 = vmatpush.msra.mxu3 %v2880_v1 }
 0x485   : > { %1603 = vmatpush.msrb.mxu0 %v2655_v59  ;;  %1623 = vmatpush.msrb.mxu1 %v2769_v44 }
 0x486   : > { %1531 = vmatpush.msra.mxu3 %v2886_v0 }
 0x487   : > { %1604 = vmatpush.msrb.mxu0 %v2661_v61  ;;  %1624 = vmatpush.msrb.mxu1 %v2775_v46  ;;  %v3248_v61 = vld [vmem:[#allocation12_spill] sm:$0xff] }
 0x488   : > { %1532 = vmatpush.msra.mxu3 %v2892_v15 }
 0x489   : > { %1605 = vmatpush.msrb.mxu0 %v2667_v63  ;;  %1625 = vmatpush.msrb.mxu1 %v2781_v47  ;;  %v3249_v63 = vld [vmem:[#allocation14_spill] sm:$0xff] }
 0x48a   : > { %1533 = vmatpush.msra.mxu3 %v2898_v60 }
 0x48b   : > { %1606 = vmatpush.msrb.mxu0 %v2673_v5  ;;  %1626 = vmatpush.msrb.mxu1 %v2787_v48  ;;  %v434_v5 = vadd.f32 %v3249_v63, %v3248_v61 }
 0x48c   : > { %1534 = vmatpush.msra.mxu3 %v2904_v10 }
 0x48d   : > { %1607 = vmatpush.msrb.mxu0 %v2679_v9  ;;  %1627 = vmatpush.msrb.mxu1 %v2793_v50  ;;  %v3250_v9 = vld [vmem:[#allocation13_spill] sm:$0xff] }
 0x48e   : > { %1535 = vmatpush.msra.mxu3 %v2910_v6 }
 0x48f   : > { %1608 = vmatpush.msrb.mxu0 %v3240_v30  ;;  %1628 = vmatpush.msrb.mxu1 %v3241_v36 }
 0x490   : > { %1536 = vmatpush.msra.mxu3 %v3242_v43 }
 0x491   : > { %1609 = vmatpush.msrb.mxu0 %v3243_v41  ;;  %1629 = vmatpush.msrb.mxu1 %v3244_v45 }
 0x492   : > { %1537 = vmatpush.msra.mxu3 %v3245_v49 }
 0x493   : > { %1610 = vmatpush.msrb.mxu0 %v3246_v53  ;;  %1630 = vmatpush.msrb.mxu1 %v3247_v56 }
 0x4f0   : > { %v1293_v59 = vpop.f32.mrf.mxu0 }
 0x4f1   : > { %v1294_v12 = vadd.f32 %v1293_v59, %v3250_v9  ;;  %v1313_v52 = vpop.f32.mrf.mxu1 }
 0x4f2   : > { %v1314_v11 = vadd.f32 %v1313_v52, %v2474_v34 }
 0x4f3   : > { %v1340_v19 = vadd.f32 %v1294_v12, %v434_v5 }
 0x4f5   : > { %v1828_v29 = vmul.f32 -1.442695, %v1340_v19 }
 0x4f6   : > { %v1273_v31 = vpop.f32.mrf.mxu3 }
 0x4f7   : > { %1912 = vpow2.f32 %v1828_v29  ;;  %v1274_v44 = vadd.f32 %v1273_v31, %v3253_v42 }
 0x4f9   : > { %v1320_v46 = vadd.f32 %v1274_v44, %v387_v38 }
 0x4fb   : > { %v1827_v47 = vmul.f32 -1.442695, %v1320_v46 }
 0x4fd   : > { %v1913_v48 = vpop.eup %1912  ;;  %1914 = vpow2.f32 %v1827_v47 }
 0x4fe   : > { %v1344_v50 = vadd.f32 1.0, %v1913_v48 }
 0x500   : > { %1916 = vrcp.f32 %v1344_v50  ;;  %v1356_v30 = vand.u32 2147483648, %v1344_v50  ;;  %vm1350_vm5 = vweird.f32 %v1344_v50  ;;  %v1354_v41 = vand.u32 2147483647, %v1344_v50 }
 0x502   : > { %v1357_v56 = vor.u32 1.1754944e-38, %v1356_v30  ;;  %vm1355_vm7 = vcmp.eq.f32.partialorder %v1354_v41, 8.507059e+37  ;;  %v3258_v41 = vld [vmem:[#allocation19_spill] sm:$0xff] }
 0x503   : > { %v1915_v22 = vpop.eup %1914 }
 0x504   : > { %v1324_v2 = vadd.f32 1.0, %v1915_v22 }
 0x506   : > { %1918 = vrcp.f32 %v1324_v2  ;;  %v1917_v25 = vpop.eup %1916  ;;  %v1336_v18 = vand.u32 2147483648, %v1324_v2  ;;  %v1334_v24 = vand.u32 2147483647, %v1324_v2  ;;  %vm1330_vm1 = vweird.f32 %v1324_v2 }
 0x507   : > { %v1346_v4 = vmul.f32 %v1917_v25, %v1344_v50  ;;  %vm1351_vm4 = vweird.f32 %v1917_v25 }
 0x508   : > { %v1337_v55 = vor.u32 1.1754944e-38, %v1336_v18  ;;  %vm1335_vm3 = vcmp.eq.f32.partialorder %v1334_v24, 8.507059e+37  ;;  %vm1352_vm6 = vmor %vm1350_vm5, %vm1351_vm4  ;;  %v3257_v18 = vld [vmem:[#allocation24_spill] sm:$0xff] }
 0x509   : > { %v1347_v3 = vsub.f32 1.0, %v1346_v4 }
 0x50b   : > { %v1348_v13 = vmul.f32 %v1917_v25, %v1347_v3 }
 0x50c   : > { %v1919_v62 = vpop.eup %1918 }
 0x50d   : > { %v1326_v14 = vmul.f32 %v1919_v62, %v1324_v2  ;;  %vm1331_vm0 = vweird.f32 %v1919_v62  ;;  %v1349_v27 = vadd.f32 %v1917_v25, %v1348_v13 }
 0x50e   : > { %vm1332_vm2 = vmor %vm1330_vm1, %vm1331_vm0 }
 0x50f   : > { %v1327_v40 = vsub.f32 1.0, %v1326_v14  ;;  %v1353_v53 = vsel %vm1352_vm6, %v1917_v25, %v1349_v27 }
 0x510   : > { %v1358_v59 = vsel %vm1355_vm7, %v1357_v56, %v1353_v53 }
 0x511   : > { %v1328_v16 = vmul.f32 %v1919_v62, %v1327_v40  ;;  %v1363_v63 = vsub.f32 1.0, %v1358_v59  ;;  %v1365_v19 = vmul.f32 %v1358_v59, %v3002_v51 }
 0x513   : > { %v1329_v8 = vadd.f32 %v1919_v62, %v1328_v16  ;;  %v484_v16 = vadd.f32 %v3257_v18, %v2476_v57 }
 0x515   : > { %v1333_v28 = vsel %vm1332_vm2, %v1919_v62, %v1329_v8 }
 0x516   : > { %v1338_v39 = vsel %vm1335_vm3, %v1337_v55, %v1333_v28 }
 0x517   : > { %v1360_v36 = vmul.f32 %v1338_v39, %v1314_v11 }
 0x519   : > { %v1361_v45 = vadd.f32 %v1360_v36, %v481_v32 }
 0x51b   : > { %1920 = vtanh.f32 %v1361_v45  ;;  %v393_v45 = vadd.f32 %v3258_v41, %v3251_v35 }
 0x521   : > { %v1921_v5 = vpop.eup %1920 }
 0x522   : > { %v1364_v12 = vmul.f32 %v1921_v5, %v1363_v63  ;;  %v3259_v5 = vld [vmem:[#allocation20_spill] sm:$0xff] }
 0x524   : > { %v3067_v29 = vadd.f32 %v1365_v19, %v1364_v12  ;;  %v440_v12 = vadd.f32 %v3259_v5, %v3248_v61 }
 0x526   : > { %1829 = vst [vmem:[%s2486_s14 + $0x30] sm:$0xff] %v3067_v29  ;;  %1385 = vmatmul.f32.vlgmr.msrb.gmra.mxu2 %v3067_v29  ;;  %1405 = vmatmul.f32.vlgmr.msrb.gmra.mxu3 %v3067_v29 }
 0x527   : > { %1425 = vmatmul.f32.vlgmr.msra.gmra.mxu0 %v3067_v29  ;;  %1635 = vmatpush.msrb.mxu2 %v2832_v26 }
 0x529   : > { %1636 = vmatpush.msrb.mxu2 %v2838_v20 }
 0x52b   : > { %1637 = vmatpush.msrb.mxu2 %v2844_v58  ;;  %v3255_v58 = vld [vmem:[#allocation16_spill] sm:$0xff] }
 0x52d   : > { %1638 = vmatpush.msrb.mxu2 %v2850_v7  ;;  %v390_v7 = vadd.f32 %v3255_v58, %v3251_v35 }
 0x52f   : > { %1639 = vmatpush.msrb.mxu2 %v2856_v21  ;;  %v3256_v21 = vld [vmem:[#allocation17_spill] sm:$0xff] }
 0x531   : > { %1640 = vmatpush.msrb.mxu2 %v2862_v54  ;;  %v437_v54 = vadd.f32 %v3256_v21, %v3248_v61 }
 0x533   : > { %1641 = vmatpush.msrb.mxu2 %v2868_v33 }
 0x535   : > { %1642 = vmatpush.msrb.mxu2 %v2874_v17 }
 0x537   : > { %1643 = vmatpush.msrb.mxu2 %v2880_v1 }
 0x539   : > { %1644 = vmatpush.msrb.mxu2 %v2886_v0 }
 0x53b   : > { %1645 = vmatpush.msrb.mxu2 %v2892_v15 }
 0x53d   : > { %1646 = vmatpush.msrb.mxu2 %v2898_v60 }
 0x53f   : > { %1647 = vmatpush.msrb.mxu2 %v2904_v10 }
 0x541   : > { %1648 = vmatpush.msrb.mxu2 %v2910_v6 }
 0x543   : > { %1649 = vmatpush.msrb.mxu2 %v3242_v43 }
 0x545   : > { %1650 = vmatpush.msrb.mxu2 %v3245_v49 }
 0x5a4   : > { %v1426_v22 = vpop.f32.mrf.mxu0 }
 0x5a5   : > { %v1427_v62 = vadd.f32 %v1426_v22, %v2474_v34 }
 0x5a9   : > { %v1386_v26 = vpop.f32.mrf.mxu2  ;;  %v1406_v20 = vpop.f32.mrf.mxu3 }
 0x5aa   : > { %v1387_v33 = vadd.f32 %v1386_v26, %v3253_v42  ;;  %v1407_v17 = vadd.f32 %v1406_v20, %v3250_v9 }
 0x5ac   : > { %v1433_v1 = vadd.f32 %v1387_v33, %v390_v7  ;;  %v1453_v0 = vadd.f32 %v1407_v17, %v437_v54 }
 0x5ae   : > { %v1830_v15 = vmul.f32 -1.442695, %v1433_v1  ;;  %v1831_v60 = vmul.f32 -1.442695, %v1453_v0 }
 0x5b0   : > { %1922 = vpow2.f32 %v1830_v15 }
 0x5b1   : > { %1924 = vpow2.f32 %v1831_v60 }
 0x5b6   : > { %v1923_v10 = vpop.eup %1922 }
 0x5b7   : > { %v1925_v6 = vpop.eup %1924  ;;  %v1437_v51 = vadd.f32 1.0, %v1923_v10 }
 0x5b8   : > { %v1457_v43 = vadd.f32 1.0, %v1925_v6 }
 0x5b9   : > { %1926 = vrcp.f32 %v1437_v51  ;;  %v1449_v46 = vand.u32 2147483648, %v1437_v51  ;;  %v1447_v50 = vand.u32 2147483647, %v1437_v51  ;;  %vm1443_vm9 = vweird.f32 %v1437_v51 }
 0x5ba   : > { %1928 = vrcp.f32 %v1457_v43  ;;  %v1469_v13 = vand.u32 2147483648, %v1457_v43  ;;  %vm1463_vm13 = vweird.f32 %v1457_v43  ;;  %v1467_v52 = vand.u32 2147483647, %v1457_v43 }
 0x5bb   : > { %v1450_v4 = vor.u32 1.1754944e-38, %v1449_v46  ;;  %vm1448_vm11 = vcmp.eq.f32.partialorder %v1447_v50, 8.507059e+37 }
 0x5bc   : > { %v1470_v11 = vor.u32 1.1754944e-38, %v1469_v13  ;;  %vm1468_vm15 = vcmp.eq.f32.partialorder %v1467_v52, 8.507059e+37 }
 0x5bf   : > { %v1927_v49 = vpop.eup %1926 }
 0x5c0   : > { %v1929_v31 = vpop.eup %1928  ;;  %v1439_v37 = vmul.f32 %v1927_v49, %v1437_v51  ;;  %vm1444_vm8 = vweird.f32 %v1927_v49 }
 0x5c1   : > { %v1459_v38 = vmul.f32 %v1929_v31, %v1457_v43  ;;  %vm1445_vm10 = vmor %vm1443_vm9, %vm1444_vm8  ;;  %vm1464_vm12 = vweird.f32 %v1929_v31 }
 0x5c2   : > { %v1440_v44 = vsub.f32 1.0, %v1439_v37  ;;  %vm1465_vm14 = vmor %vm1463_vm13, %vm1464_vm12 }
 0x5c3   : > { %v1460_v47 = vsub.f32 1.0, %v1459_v38  ;;  %v3260_v38 = vld [vmem:[#allocation25_spill] sm:$0xff] }
 0x5c4   : > { %v1441_v48 = vmul.f32 %v1927_v49, %v1440_v44  ;;  %v487_v44 = vadd.f32 %v3260_v38, %v2476_v57 }
 0x5c5   : > { %v1461_v2 = vmul.f32 %v1929_v31, %v1460_v47 }
 0x5c6   : > { %v1442_v25 = vadd.f32 %v1927_v49, %v1441_v48 }
 0x5c7   : > { %v1462_v40 = vadd.f32 %v1929_v31, %v1461_v2 }
 0x5c8   : > { %v1446_v14 = vsel %vm1445_vm10, %v1927_v49, %v1442_v25 }
 0x5c9   : > { %v1451_v3 = vsel %vm1448_vm11, %v1450_v4, %v1446_v14  ;;  %v1466_v55 = vsel %vm1465_vm14, %v1929_v31, %v1462_v40 }
 0x5ca   : > { %v1473_v24 = vmul.f32 %v1451_v3, %v1427_v62  ;;  %v1471_v28 = vsel %vm1468_vm15, %v1470_v11, %v1466_v55  ;;  %v3262_v11 = vld [vmem:[#allocation23_spill] sm:$0xff] }
 0x5cb   : > { %v1476_v39 = vsub.f32 1.0, %v1471_v28  ;;  %v1478_v32 = vmul.f32 %v1471_v28, %v3067_v29  ;;  %v443_v28 = vadd.f32 %v3262_v11, %v3248_v61 }
 0x5cc   : > { %v1474_v8 = vadd.f32 %v1473_v24, %v484_v16 }
 0x5ce   : > { %1930 = vtanh.f32 %v1474_v8  ;;  %v3261_v8 = vld [vmem:[#allocation22_spill] sm:$0xff] }
 0x5cf   : > { %v396_v55 = vadd.f32 %v3261_v8, %v3251_v35 }
 0x5d4   : > { %v1931_v27 = vpop.eup %1930 }
 0x5d5   : > { %v1477_v23 = vmul.f32 %v1931_v27, %v1476_v39 }
 0x5d7   : > { %v1479_v30 = vadd.f32 %v1478_v32, %v1477_v23 }
 0x5d9   : > { %1832 = vst [vmem:[%s2486_s14 + $0x38] sm:$0xff] %v1479_v30  ;;  %1498 = vmatmul.f32.vlgmr.msra.gmra.mxu1 %v1479_v30  ;;  %1518 = vmatmul.f32.vlgmr.msra.gmra.mxu2 %v1479_v30 }
 0x5da   : > { %1538 = vmatmul.f32.vlgmr.msra.gmra.mxu3 %v1479_v30 }
 0x656   : > { %v1499_v36 = vpop.f32.mrf.mxu1 }
 0x657   : > { %v1500_v53 = vadd.f32 %v1499_v36, %v3253_v42 }
 0x659   : > { %v1546_v56 = vadd.f32 %v1500_v53, %v393_v45 }
 0x65b   : > { %v1833_v59 = vmul.f32 -1.442695, %v1546_v56 }
 0x65c   : > { %v1519_v63 = vpop.f32.mrf.mxu2 }
 0x65d   : > { %1932 = vpow2.f32 %v1833_v59  ;;  %v1520_v19 = vadd.f32 %v1519_v63, %v3250_v9  ;;  %v1539_v10 = vpop.f32.mrf.mxu3 }
 0x65e   : > { %v1540_v31 = vadd.f32 %v1539_v10, %v2474_v34 }
 0x65f   : > { %v1566_v29 = vadd.f32 %v1520_v19, %v440_v12 }
 0x661   : > { %v1834_v26 = vmul.f32 -1.442695, %v1566_v29 }
 0x663   : > { %v1933_v20 = vpop.eup %1932  ;;  %1934 = vpow2.f32 %v1834_v26 }
 0x664   : > { %v1550_v58 = vadd.f32 1.0, %v1933_v20 }
 0x666   : > { %1936 = vrcp.f32 %v1550_v58  ;;  %v1562_v1 = vand.u32 2147483648, %v1550_v58  ;;  %v1560_v15 = vand.u32 2147483647, %v1550_v58  ;;  %vm1556_vm1 = vweird.f32 %v1550_v58 }
 0x668   : > { %v1563_v43 = vor.u32 1.1754944e-38, %v1562_v1  ;;  %vm1561_vm3 = vcmp.eq.f32.partialorder %v1560_v15, 8.507059e+37 }
 0x669   : > { %v1935_v7 = vpop.eup %1934 }
 0x66a   : > { %v1570_v21 = vadd.f32 1.0, %v1935_v7 }
 0x66c   : > { %v1937_v54 = vpop.eup %1936  ;;  %1938 = vrcp.f32 %v1570_v21  ;;  %v1582_v48 = vand.u32 2147483648, %v1570_v21  ;;  %v1580_v22 = vand.u32 2147483647, %v1570_v21  ;;  %vm1576_vm5 = vweird.f32 %v1570_v21 }
 0x66d   : > { %v1552_v33 = vmul.f32 %v1937_v54, %v1550_v58  ;;  %vm1557_vm0 = vweird.f32 %v1937_v54 }
 0x66e   : > { %vm1558_vm2 = vmor %vm1556_vm1, %vm1557_vm0  ;;  %v1583_v4 = vor.u32 1.1754944e-38, %v1582_v48  ;;  %vm1581_vm7 = vcmp.eq.f32.partialorder %v1580_v22, 8.507059e+37 }
 0x66f   : > { %v1553_v17 = vsub.f32 1.0, %v1552_v33 }
 0x671   : > { %v1554_v0 = vmul.f32 %v1937_v54, %v1553_v17  ;;  %v3263_v17 = vld [vmem:[#allocation26_spill] sm:$0xff] }
 0x672   : > { %v1939_v60 = vpop.eup %1938  ;;  %v490_v1 = vadd.f32 %v3263_v17, %v2476_v57 }
 0x673   : > { %v1572_v6 = vmul.f32 %v1939_v60, %v1570_v21  ;;  %v1555_v51 = vadd.f32 %v1937_v54, %v1554_v0  ;;  %vm1577_vm4 = vweird.f32 %v1939_v60 }
 0x674   : > { %vm1578_vm6 = vmor %vm1576_vm5, %vm1577_vm4 }
 0x675   : > { %v1573_v49 = vsub.f32 1.0, %v1572_v6  ;;  %v1559_v37 = vsel %vm1558_vm2, %v1937_v54, %v1555_v51 }
 0x676   : > { %v1564_v46 = vsel %vm1561_vm3, %v1563_v43, %v1559_v37 }
 0x677   : > { %v1574_v47 = vmul.f32 %v1939_v60, %v1573_v49  ;;  %v1586_v50 = vmul.f32 %v1564_v46, %v1540_v31 }
 0x679   : > { %v1575_v2 = vadd.f32 %v1939_v60, %v1574_v47  ;;  %v1587_v25 = vadd.f32 %v1586_v50, %v487_v44 }
 0x67b   : > { %v1579_v62 = vsel %vm1578_vm6, %v1939_v60, %v1575_v2  ;;  %1940 = vtanh.f32 %v1587_v25 }
 0x67c   : > { %v1584_v14 = vsel %vm1581_vm7, %v1583_v4, %v1579_v62 }
 0x67d   : > { %v1589_v3 = vsub.f32 1.0, %v1584_v14  ;;  %v1591_v16 = vmul.f32 %v1584_v14, %v1479_v30 }
 0x681   : > { %v1941_v40 = vpop.eup %1940 }
 0x682   : > { %v1590_v18 = vmul.f32 %v1941_v40, %v1589_v3 }
 0x684   : > { %v1592_v24 = vadd.f32 %v1591_v16, %v1590_v18 }
 0x686   : > { %1835 = vst [vmem:[%s2486_s14 + $0x40] sm:$0xff] %v1592_v24  ;;  %1611 = vmatmul.f32.vlgmr.msrb.gmra.mxu0 %v1592_v24  ;;  %1631 = vmatmul.f32.vlgmr.msrb.gmra.mxu1 %v1592_v24 }
 0x687   : > { %1651 = vmatmul.f32.vlgmr.msrb.gmra.mxu2 %v1592_v24 }
 0x703   : > { %v1612_v13 = vpop.f32.mrf.mxu0  ;;  %v1632_v52 = vpop.f32.mrf.mxu1 }
 0x704   : > { %v1613_v39 = vadd.f32 %v1612_v13, %v3253_v42  ;;  %v1633_v27 = vadd.f32 %v1632_v52, %v3250_v9 }
 0x706   : > { %v1659_v23 = vadd.f32 %v1613_v39, %v396_v55  ;;  %v1679_v32 = vadd.f32 %v1633_v27, %v443_v28 }
 0x708   : > { %v1836_v30 = vmul.f32 -1.442695, %v1659_v23  ;;  %v1837_v36 = vmul.f32 -1.442695, %v1679_v32 }
 0x70a   : > { %1942 = vpow2.f32 %v1836_v30  ;;  %v1652_v26 = vpop.f32.mrf.mxu2 }
 0x70b   : > { %1944 = vpow2.f32 %v1837_v36  ;;  %v1653_v7 = vadd.f32 %v1652_v26, %v2474_v34 }
 0x710   : > { %v1943_v41 = vpop.eup %1942 }
 0x711   : > { %v1945_v45 = vpop.eup %1944  ;;  %v1663_v53 = vadd.f32 1.0, %v1943_v41 }
 0x712   : > { %v1683_v56 = vadd.f32 1.0, %v1945_v45 }
 0x713   : > { %1946 = vrcp.f32 %v1663_v53  ;;  %v1675_v12 = vand.u32 2147483648, %v1663_v53  ;;  %v1673_v19 = vand.u32 2147483647, %v1663_v53  ;;  %vm1669_vm9 = vweird.f32 %v1663_v53 }
 0x714   : > { %1948 = vrcp.f32 %v1683_v56  ;;  %v1695_v0 = vand.u32 2147483648, %v1683_v56  ;;  %vm1689_vm13 = vweird.f32 %v1683_v56  ;;  %v1693_v60 = vand.u32 2147483647, %v1683_v56 }
 0x715   : > { %v1676_v58 = vor.u32 1.1754944e-38, %v1675_v12  ;;  %vm1674_vm11 = vcmp.eq.f32.partialorder %v1673_v19, 8.507059e+37 }
 0x716   : > { %v1696_v51 = vor.u32 1.1754944e-38, %v1695_v0  ;;  %vm1694_vm15 = vcmp.eq.f32.partialorder %v1693_v60, 8.507059e+37 }
 0x719   : > { %v1947_v35 = vpop.eup %1946 }
 0x71a   : > { %v1949_v59 = vpop.eup %1948  ;;  %v1665_v63 = vmul.f32 %v1947_v35, %v1663_v53  ;;  %vm1670_vm8 = vweird.f32 %v1947_v35 }
 0x71b   : > { %v1685_v61 = vmul.f32 %v1949_v59, %v1683_v56  ;;  %vm1671_vm10 = vmor %vm1669_vm9, %vm1670_vm8  ;;  %vm1690_vm12 = vweird.f32 %v1949_v59 }
 0x71c   : > { %v1666_v5 = vsub.f32 1.0, %v1665_v63  ;;  %vm1691_vm14 = vmor %vm1689_vm13, %vm1690_vm12 }
 0x71d   : > { %v1686_v42 = vsub.f32 1.0, %v1685_v61 }
 0x71e   : > { %v1667_v9 = vmul.f32 %v1947_v35, %v1666_v5 }
 0x71f   : > { %v1687_v29 = vmul.f32 %v1949_v59, %v1686_v42 }
 0x720   : > { %v1668_v20 = vadd.f32 %v1947_v35, %v1667_v9 }
 0x721   : > { %v1688_v33 = vadd.f32 %v1949_v59, %v1687_v29 }
 0x722   : > { %v1672_v21 = vsel %vm1671_vm10, %v1947_v35, %v1668_v20 }
 0x723   : > { %v1677_v54 = vsel %vm1674_vm11, %v1676_v58, %v1672_v21  ;;  %v1692_v6 = vsel %vm1691_vm14, %v1949_v59, %v1688_v33 }
 0x724   : > { %v1699_v15 = vmul.f32 %v1677_v54, %v1653_v7  ;;  %v1697_v34 = vsel %vm1694_vm15, %v1696_v51, %v1692_v6 }
 0x725   : > { %v1702_v43 = vsub.f32 1.0, %v1697_v34  ;;  %v1704_v37 = vmul.f32 %v1697_v34, %v1592_v24 }
 0x726   : > { %v1700_v10 = vadd.f32 %v1699_v15, %v490_v1 }
 0x728   : > { %1950 = vtanh.f32 %v1700_v10 }
 0x72e   : > { %v1951_v49 = vpop.eup %1950 }
 0x72f   : > { %v1703_v31 = vmul.f32 %v1951_v49, %v1702_v43 }
 0x731   : > { %v1705_v38 = vadd.f32 %v1704_v37, %v1703_v31 }
 0x733   : > { %1838 = vst [vmem:[%s2486_s14 + $0x48] sm:$0xff] %v1705_v38 }
 0x734 PF: > { %s15_s18 = sadd.s32 1, %s2006_s18  }
 0x735   : > { %p12_p4 = scmp.ge.s32.totalorder %s15_s18, 12  }
 0x737   :  { %14 = sbr.rel (!%p12_p4) target bundleno = 1 (0x1), region = 98 }

</bundles_post_ra>
